<compile_context>
chip_gen: v6e
topology: v6e:2x2x1
jax: 0.10.0
libtpu: 0.0.40
codegen_flags: <defaults>
</compile_context>

<pallas_src>
import jax
import jax.numpy as jnp
import numpy as np
from jax.experimental import pallas as pl
from jax.experimental.pallas import tpu as pltpu


def encoder_rnn_kernel(x_ref, h0_ref, gamma_ref, beta_ref,
                       wih_ref, whh_ref, bih_ref, bhh_ref,
                       out_ref, hT_ref, h_scratch):
    """One grid step == one chunk of Tc timesteps.

    x_ref   : (B, Tc, Hin)   batch-first input chunk
    wih_ref : (3, Hin, H)    per-gate input weights  (gate order r, z, n)
    whh_ref : (3, H,  H)     per-gate hidden weights
    bih_ref : (3, 1,  H)     per-gate input biases
    bhh_ref : (3, 1,  H)     per-gate hidden biases
    h_scratch : (B, H) f32   hidden state carried across grid steps
    """
    c = pl.program_id(0)
    B, Tc, Hin = x_ref.shape

    @pl.when(c == 0)
    def _():
        h_scratch[...] = h0_ref[...].astype(jnp.float32)

    # TODO(synk): `self.embedding` is undefined in the reference __init__;
    # treated as identity (demo uses input_size == hidden_size so shapes work).

    # ---- LayerNorm over feature dim, hoisted over the whole chunk (eps = 1e-5) ----
    x = x_ref[...].astype(jnp.float32)                    # (B, Tc, Hin)
    mean = jnp.mean(x, axis=-1, keepdims=True)
    xc = x - mean
    var = jnp.mean(xc * xc, axis=-1, keepdims=True)
    x_ln = xc * jax.lax.rsqrt(var + 1e-5)
    x_ln = x_ln * gamma_ref[...] + beta_ref[...]          # (1, Hin) broadcast

    # ---- Hoisted input-side projections: one (B*Tc, Hin) x (Hin, H) matmul per gate ----
    x2 = x_ln.reshape(B * Tc, Hin)
    gi = []
    for g in range(3):
        gi_g = jnp.dot(x2, wih_ref[g], preferred_element_type=jnp.float32) + bih_ref[g]
        gi.append(gi_g.reshape(B, Tc, x2.shape[-1] * 0 + gi_g.shape[-1]))  # (B, Tc, H)

    # Load constant hidden weights/biases once per chunk.
    whh = [whh_ref[g] for g in range(3)]                  # each (H, H)
    bhh = [bhh_ref[g] for g in range(3)]                  # each (1, H)

    # ---- Serial GRU recurrence over the chunk (statically unrolled; PyTorch gate order r,z,n) ----
    h = h_scratch[...]                                    # (B, H) f32
    for t in range(Tc):
        gh_r = jnp.dot(h, whh[0], preferred_element_type=jnp.float32) + bhh[0]
        gh_z = jnp.dot(h, whh[1], preferred_element_type=jnp.float32) + bhh[1]
        gh_n = jnp.dot(h, whh[2], preferred_element_type=jnp.float32) + bhh[2]
        r = jax.nn.sigmoid(gi[0][:, t, :] + gh_r)
        z = jax.nn.sigmoid(gi[1][:, t, :] + gh_z)
        n = jnp.tanh(gi[2][:, t, :] + r * gh_n)
        h = (1.0 - z) * n + z * h                         # (B, H)
        out_ref[:, t, :] = h.astype(out_ref.dtype)
    h_scratch[...] = h

    @pl.when(c == pl.num_programs(0) - 1)
    def _():
        hT_ref[...] = h.astype(hT_ref.dtype)


def encoder_rnn_forward(x_bth, h0_1bh, params, tc=8):
    """x_bth: (B, T, input_size) batch_first; h0_1bh: (1, B, H). Returns (output, hidden)."""
    gamma, beta, w_ih, w_hh, b_ih, b_hh = params
    B, T, Hin = x_bth.shape
    H = w_hh.shape[1]                       # w_hh: (3H, H) in PyTorch layout
    assert T % tc == 0, "T must be a multiple of the time-chunk size"
    n_chunks = T // tc

    # Glue: gate-major weight layout so the kernel never slices along the lane axis.
    h0 = h0_1bh[0]                                        # (B, H)
    wih3 = jnp.transpose(w_ih.reshape(3, H, Hin), (0, 2, 1))   # (3, Hin, H)
    whh3 = jnp.transpose(w_hh.reshape(3, H, H), (0, 2, 1))     # (3, H, H)
    bih3 = b_ih.reshape(3, 1, H)
    bhh3 = b_hh.reshape(3, 1, H)
    gamma2 = gamma.reshape(1, Hin)
    beta2 = beta.reshape(1, Hin)

    out, hT = pl.pallas_call(
        encoder_rnn_kernel,
        out_shape=(jax.ShapeDtypeStruct((B, T, H), x_bth.dtype),
                   jax.ShapeDtypeStruct((B, H), x_bth.dtype)),
        grid_spec=pltpu.PrefetchScalarGridSpec(
            num_scalar_prefetch=0,
            grid=(n_chunks,),
            in_specs=[
                pl.BlockSpec((B, tc, Hin), lambda c: (0, c, 0)),   # x chunk (batch-first)
                pl.BlockSpec((B, H),       lambda c: (0, 0)),      # h0
                pl.BlockSpec((1, Hin),     lambda c: (0, 0)),      # LN gamma
                pl.BlockSpec((1, Hin),     lambda c: (0, 0)),      # LN beta
                pl.BlockSpec((3, Hin, H),  lambda c: (0, 0, 0)),   # W_ih per gate
                pl.BlockSpec((3, H, H),    lambda c: (0, 0, 0)),   # W_hh per gate
                pl.BlockSpec((3, 1, H),    lambda c: (0, 0, 0)),   # b_ih per gate
                pl.BlockSpec((3, 1, H),    lambda c: (0, 0, 0)),   # b_hh per gate
            ],
            out_specs=[
                pl.BlockSpec((B, tc, H), lambda c: (0, c, 0)),     # output sequence (batch-first)
                pl.BlockSpec((B, H),     lambda c: (0, 0)),        # final hidden
            ],
            scratch_shapes=[pltpu.VMEM((B, H), jnp.float32)],
        ),
        compiler_params=pltpu.CompilerParams(
            dimension_semantics=("arbitrary",)),   # sequential recurrence over time chunks
    )(x_bth, h0, gamma2, beta2, wih3, whh3, bih3, bhh3)

    return out, hT[None]                                   # (B, T, H), (1, B, H)


def reference_forward(x_bth, h0_1bh, params):
    """Pure-JAX reference (mirrors PyTorch LayerNorm + GRU) for validation."""
    gamma, beta, w_ih, w_hh, b_ih, b_hh = params
    H = w_hh.shape[1]

    mean = jnp.mean(x_bth, axis=-1, keepdims=True)
    var = jnp.mean((x_bth - mean) ** 2, axis=-1, keepdims=True)
    x_ln = (x_bth - mean) / jnp.sqrt(var + 1e-5) * gamma + beta

    def step(h, x_t):
        gi = x_t @ w_ih.T + b_ih
        gh = h @ w_hh.T + b_hh
        r = jax.nn.sigmoid(gi[:, :H] + gh[:, :H])
        z = jax.nn.sigmoid(gi[:, H:2 * H] + gh[:, H:2 * H])
        n = jnp.tanh(gi[:, 2 * H:] + r * gh[:, 2 * H:])
        h_new = (1.0 - z) * n + z * h
        return h_new, h_new

    hT, ys = jax.lax.scan(step, h0_1bh[0], jnp.transpose(x_ln, (1, 0, 2)))
    return jnp.transpose(ys, (1, 0, 2)), hT[None]


if __name__ == "__main__":
    B, T, H = 8, 16, 32          # input_size == hidden_size == 32 (see TODO above); B padded to sublane width
    TC = 8                       # timesteps per grid step (chunked recurrence)
    key = jax.random.PRNGKey(0)
    k_x, k_wih, k_whh, k_bih, k_bhh = jax.random.split(key, 5)

    # Deterministic parameter init (PyTorch-style uniform(-1/sqrt(H), 1/sqrt(H)))
    scale = 1.0 / jnp.sqrt(jnp.float32(H))
    gamma = jnp.ones((H,), jnp.float32)
    beta = jnp.zeros((H,), jnp.float32)
    w_ih = jax.random.uniform(k_wih, (3 * H, H), jnp.float32, -scale, scale)
    w_hh = jax.random.uniform(k_whh, (3 * H, H), jnp.float32, -scale, scale)
    b_ih = jax.random.uniform(k_bih, (3 * H,), jnp.float32, -scale, scale)
    b_hh = jax.random.uniform(k_bhh, (3 * H,), jnp.float32, -scale, scale)
    params = (gamma, beta, w_ih, w_hh, b_ih, b_hh)

    x = jax.random.normal(k_x, (B, T, H), jnp.float32)
    h0 = jnp.zeros((1, B, H), jnp.float32)           # initHidden(batch_size)

    out, hid = encoder_rnn_forward(x, h0, params, tc=TC)
    out = jax.block_until_ready(out)
    hid = jax.block_until_ready(hid)

    ref_out, ref_hid = reference_forward(x, h0, params)
    assert out.shape == (B, T, H) and hid.shape == (1, B, H)
    assert np.allclose(np.asarray(out), np.asarray(ref_out), rtol=1e-4, atol=1e-4)
    assert np.allclose(np.asarray(hid), np.asarray(ref_hid), rtol=1e-4, atol=1e-4)

    print("KERNEL_OK")
</pallas_src>

<mosaic_0001>
module attributes {stable_mosaic.version = 11 : i64} {
  func.func @encoder_rnn_kernel(%arg0: i32, %arg1: memref<8x8x32xf32, #tpu.memory_space<vmem>>, %arg2: memref<8x32xf32, #tpu.memory_space<vmem>>, %arg3: memref<1x32xf32, #tpu.memory_space<vmem>>, %arg4: memref<1x32xf32, #tpu.memory_space<vmem>>, %arg5: memref<3x32x32xf32, #tpu.memory_space<vmem>>, %arg6: memref<3x32x32xf32, #tpu.memory_space<vmem>>, %arg7: memref<3x1x32xf32, #tpu.memory_space<vmem>>, %arg8: memref<3x1x32xf32, #tpu.memory_space<vmem>>, %arg9: memref<8x8x32xf32, #tpu.memory_space<vmem>>, %arg10: memref<8x32xf32, #tpu.memory_space<vmem>>, %arg11: memref<8x32xf32, #tpu.memory_space<vmem>>) attributes {dimension_semantics = [#tpu.dimension_semantics<arbitrary>], iteration_bounds = array<i64: 2>, scalar_prefetch = 0 : i64, scratch_operands = 1 : i64, tpu.core_type = #tpu.core_type<tc>, window_params = [{transform_indices = @transform_0, window_bounds = array<i64: 8, 8, 32>}, {pipeline_mode = #tpu.pipeline_mode<synchronous>, transform_indices = @transform_1, window_bounds = array<i64: 8, 32>}, {pipeline_mode = #tpu.pipeline_mode<synchronous>, transform_indices = @transform_2, window_bounds = array<i64: 1, 32>}, {pipeline_mode = #tpu.pipeline_mode<synchronous>, transform_indices = @transform_3, window_bounds = array<i64: 1, 32>}, {pipeline_mode = #tpu.pipeline_mode<synchronous>, transform_indices = @transform_4, window_bounds = array<i64: 3, 32, 32>}, {pipeline_mode = #tpu.pipeline_mode<synchronous>, transform_indices = @transform_5, window_bounds = array<i64: 3, 32, 32>}, {pipeline_mode = #tpu.pipeline_mode<synchronous>, transform_indices = @transform_6, window_bounds = array<i64: 3, 1, 32>}, {pipeline_mode = #tpu.pipeline_mode<synchronous>, transform_indices = @transform_7, window_bounds = array<i64: 3, 1, 32>}, {transform_indices = @transform_8, window_bounds = array<i64: 8, 8, 32>}, {pipeline_mode = #tpu.pipeline_mode<synchronous>, transform_indices = @transform_9, window_bounds = array<i64: 8, 32>}]} {
    %c0_i32 = arith.constant 0 : i32
    %0 = arith.cmpi eq, %arg0, %c0_i32 : i32
    %1 = arith.extui %0 : i1 to i32
    %c0_i32_0 = arith.constant 0 : i32
    %2 = arith.cmpi ne, %1, %c0_i32_0 : i32
    scf.if %2 {
      %c0_120 = arith.constant 0 : index
      %c0_121 = arith.constant 0 : index
      %374 = vector.load %arg2[%c0_120, %c0_121] : memref<8x32xf32, #tpu.memory_space<vmem>>, vector<8x32xf32>
      %c0_122 = arith.constant 0 : index
      %c0_123 = arith.constant 0 : index
      %375 = vector.load %arg11[%c0_122, %c0_123] : memref<8x32xf32, #tpu.memory_space<vmem>>, vector<8x32xf32>
      tpu.vector_store %arg11[%c0_122, %c0_123], %374 {strides = array<i32>} : memref<8x32xf32, #tpu.memory_space<vmem>>, vector<8x32xf32>,
    } else {
    }
    %c0 = arith.constant 0 : index
    %c0_1 = arith.constant 0 : index
    %c0_2 = arith.constant 0 : index
    %3 = vector.load %arg1[%c0, %c0_1, %c0_2] : memref<8x8x32xf32, #tpu.memory_space<vmem>>, vector<8x8x32xf32>
    %cst = arith.constant dense<0.000000e+00> : vector<8x8xf32>
    %4 = vector.multi_reduction <add>, %3, %cst [2] : vector<8x8x32xf32> to vector<8x8xf32>
    %5 = vector.shape_cast %4 : vector<8x8xf32> to vector<8x8x1xf32>
    %cst_3 = arith.constant 3.200000e+01 : f32
    %6 = vector.broadcast %cst_3 : f32 to vector<8x8x1xf32>
    %7 = arith.divf %5, %6 : vector<8x8x1xf32>
    %8 = vector.broadcast %7 : vector<8x8x1xf32> to vector<8x8x32xf32>
    %9 = arith.subf %3, %8 : vector<8x8x32xf32>
    %10 = arith.mulf %9, %9 : vector<8x8x32xf32>
    %cst_4 = arith.constant dense<0.000000e+00> : vector<8x8xf32>
    %11 = vector.multi_reduction <add>, %10, %cst_4 [2] : vector<8x8x32xf32> to vector<8x8xf32>
    %12 = vector.shape_cast %11 : vector<8x8xf32> to vector<8x8x1xf32>
    %cst_5 = arith.constant 3.200000e+01 : f32
    %13 = vector.broadcast %cst_5 : f32 to vector<8x8x1xf32>
    %14 = arith.divf %12, %13 : vector<8x8x1xf32>
    %cst_6 = arith.constant 9.99999974E-6 : f32
    %15 = vector.broadcast %cst_6 : f32 to vector<8x8x1xf32>
    %16 = arith.addf %14, %15 : vector<8x8x1xf32>
    %17 = math.rsqrt %16 : vector<8x8x1xf32>
    %18 = vector.broadcast %17 : vector<8x8x1xf32> to vector<8x8x32xf32>
    %19 = arith.mulf %9, %18 : vector<8x8x32xf32>
    %c0_7 = arith.constant 0 : index
    %c0_8 = arith.constant 0 : index
    %20 = vector.load %arg3[%c0_7, %c0_8] : memref<1x32xf32, #tpu.memory_space<vmem>>, vector<1x32xf32>
    %21 = vector.shape_cast %20 : vector<1x32xf32> to vector<1x1x32xf32>
    %22 = vector.broadcast %21 : vector<1x1x32xf32> to vector<8x8x32xf32>
    %23 = arith.mulf %19, %22 : vector<8x8x32xf32>
    %c0_9 = arith.constant 0 : index
    %c0_10 = arith.constant 0 : index
    %24 = vector.load %arg4[%c0_9, %c0_10] : memref<1x32xf32, #tpu.memory_space<vmem>>, vector<1x32xf32>
    %25 = vector.shape_cast %24 : vector<1x32xf32> to vector<1x1x32xf32>
    %26 = vector.broadcast %25 : vector<1x1x32xf32> to vector<8x8x32xf32>
    %27 = arith.addf %23, %26 : vector<8x8x32xf32>
    %28 = vector.shape_cast %27 : vector<8x8x32xf32> to vector<64x32xf32>
    %c0_11 = arith.constant 0 : index
    %c0_12 = arith.constant 0 : index
    %c0_13 = arith.constant 0 : index
    %29 = vector.load %arg5[%c0_11, %c0_12, %c0_13] : memref<3x32x32xf32, #tpu.memory_space<vmem>>, vector<1x32x32xf32>
    %30 = vector.shape_cast %29 : vector<1x32x32xf32> to vector<32x32xf32>
    %cst_14 = arith.constant dense<0.000000e+00> : vector<64x32xf32>
    %31 = tpu.matmul %28, %30, %cst_14 {dimension_numbers = #tpu.dot_dimension_numbers<[1], [0], [0], [1], [0, 0, 1, 1], [], []>} : vector<64x32xf32>, vector<32x32xf32>, vector<64x32xf32> -> vector<64x32xf32>
    %c0_15 = arith.constant 0 : index
    %c0_16 = arith.constant 0 : index
    %c0_17 = arith.constant 0 : index
    %32 = vector.load %arg7[%c0_15, %c0_16, %c0_17] : memref<3x1x32xf32, #tpu.memory_space<vmem>>, vector<1x1x32xf32>
    %33 = vector.shape_cast %32 : vector<1x1x32xf32> to vector<1x32xf32>
    %34 = vector.broadcast %33 : vector<1x32xf32> to vector<64x32xf32>
    %35 = arith.addf %31, %34 : vector<64x32xf32>
    %36 = vector.shape_cast %35 : vector<64x32xf32> to vector<8x8x32xf32>
    %c1 = arith.constant 1 : index
    %c0_18 = arith.constant 0 : index
    %c0_19 = arith.constant 0 : index
    %37 = vector.load %arg5[%c1, %c0_18, %c0_19] : memref<3x32x32xf32, #tpu.memory_space<vmem>>, vector<1x32x32xf32>
    %38 = vector.shape_cast %37 : vector<1x32x32xf32> to vector<32x32xf32>
    %cst_20 = arith.constant dense<0.000000e+00> : vector<64x32xf32>
    %39 = tpu.matmul %28, %38, %cst_20 {dimension_numbers = #tpu.dot_dimension_numbers<[1], [0], [0], [1], [0, 0, 1, 1], [], []>} : vector<64x32xf32>, vector<32x32xf32>, vector<64x32xf32> -> vector<64x32xf32>
    %c1_21 = arith.constant 1 : index
    %c0_22 = arith.constant 0 : index
    %c0_23 = arith.constant 0 : index
    %40 = vector.load %arg7[%c1_21, %c0_22, %c0_23] : memref<3x1x32xf32, #tpu.memory_space<vmem>>, vector<1x1x32xf32>
    %41 = vector.shape_cast %40 : vector<1x1x32xf32> to vector<1x32xf32>
    %42 = vector.broadcast %41 : vector<1x32xf32> to vector<64x32xf32>
    %43 = arith.addf %39, %42 : vector<64x32xf32>
    %44 = vector.shape_cast %43 : vector<64x32xf32> to vector<8x8x32xf32>
    %c2 = arith.constant 2 : index
    %c0_24 = arith.constant 0 : index
    %c0_25 = arith.constant 0 : index
    %45 = vector.load %arg5[%c2, %c0_24, %c0_25] : memref<3x32x32xf32, #tpu.memory_space<vmem>>, vector<1x32x32xf32>
    %46 = vector.shape_cast %45 : vector<1x32x32xf32> to vector<32x32xf32>
    %cst_26 = arith.constant dense<0.000000e+00> : vector<64x32xf32>
    %47 = tpu.matmul %28, %46, %cst_26 {dimension_numbers = #tpu.dot_dimension_numbers<[1], [0], [0], [1], [0, 0, 1, 1], [], []>} : vector<64x32xf32>, vector<32x32xf32>, vector<64x32xf32> -> vector<64x32xf32>
    %c2_27 = arith.constant 2 : index
    %c0_28 = arith.constant 0 : index
    %c0_29 = arith.constant 0 : index
    %48 = vector.load %arg7[%c2_27, %c0_28, %c0_29] : memref<3x1x32xf32, #tpu.memory_space<vmem>>, vector<1x1x32xf32>
    %49 = vector.shape_cast %48 : vector<1x1x32xf32> to vector<1x32xf32>
    %50 = vector.broadcast %49 : vector<1x32xf32> to vector<64x32xf32>
    %51 = arith.addf %47, %50 : vector<64x32xf32>
    %52 = vector.shape_cast %51 : vector<64x32xf32> to vector<8x8x32xf32>
    %c0_30 = arith.constant 0 : index
    %c0_31 = arith.constant 0 : index
    %c0_32 = arith.constant 0 : index
    %53 = vector.load %arg6[%c0_30, %c0_31, %c0_32] : memref<3x32x32xf32, #tpu.memory_space<vmem>>, vector<1x32x32xf32>
    %54 = vector.shape_cast %53 : vector<1x32x32xf32> to vector<32x32xf32>
    %c1_33 = arith.constant 1 : index
    %c0_34 = arith.constant 0 : index
    %c0_35 = arith.constant 0 : index
    %55 = vector.load %arg6[%c1_33, %c0_34, %c0_35] : memref<3x32x32xf32, #tpu.memory_space<vmem>>, vector<1x32x32xf32>
    %56 = vector.shape_cast %55 : vector<1x32x32xf32> to vector<32x32xf32>
    %c2_36 = arith.constant 2 : index
    %c0_37 = arith.constant 0 : index
    %c0_38 = arith.constant 0 : index
    %57 = vector.load %arg6[%c2_36, %c0_37, %c0_38] : memref<3x32x32xf32, #tpu.memory_space<vmem>>, vector<1x32x32xf32>
    %58 = vector.shape_cast %57 : vector<1x32x32xf32> to vector<32x32xf32>
    %c0_39 = arith.constant 0 : index
    %c0_40 = arith.constant 0 : index
    %c0_41 = arith.constant 0 : index
    %59 = vector.load %arg8[%c0_39, %c0_40, %c0_41] : memref<3x1x32xf32, #tpu.memory_space<vmem>>, vector<1x1x32xf32>
    %60 = vector.shape_cast %59 : vector<1x1x32xf32> to vector<1x32xf32>
    %c1_42 = arith.constant 1 : index
    %c0_43 = arith.constant 0 : index
    %c0_44 = arith.constant 0 : index
    %61 = vector.load %arg8[%c1_42, %c0_43, %c0_44] : memref<3x1x32xf32, #tpu.memory_space<vmem>>, vector<1x1x32xf32>
    %62 = vector.shape_cast %61 : vector<1x1x32xf32> to vector<1x32xf32>
    %c2_45 = arith.constant 2 : index
    %c0_46 = arith.constant 0 : index
    %c0_47 = arith.constant 0 : index
    %63 = vector.load %arg8[%c2_45, %c0_46, %c0_47] : memref<3x1x32xf32, #tpu.memory_space<vmem>>, vector<1x1x32xf32>
    %64 = vector.shape_cast %63 : vector<1x1x32xf32> to vector<1x32xf32>
    %c0_48 = arith.constant 0 : index
    %c0_49 = arith.constant 0 : index
    %65 = vector.load %arg11[%c0_48, %c0_49] : memref<8x32xf32, #tpu.memory_space<vmem>>, vector<8x32xf32>
    %cst_50 = arith.constant dense<0.000000e+00> : vector<8x32xf32>
    %66 = tpu.matmul %65, %54, %cst_50 {dimension_numbers = #tpu.dot_dimension_numbers<[1], [0], [0], [1], [0, 0, 1, 1], [], []>} : vector<8x32xf32>, vector<32x32xf32>, vector<8x32xf32> -> vector<8x32xf32>
    %67 = vector.broadcast %60 : vector<1x32xf32> to vector<8x32xf32>
    %68 = arith.addf %66, %67 : vector<8x32xf32>
    %cst_51 = arith.constant dense<0.000000e+00> : vector<8x32xf32>
    %69 = tpu.matmul %65, %56, %cst_51 {dimension_numbers = #tpu.dot_dimension_numbers<[1], [0], [0], [1], [0, 0, 1, 1], [], []>} : vector<8x32xf32>, vector<32x32xf32>, vector<8x32xf32> -> vector<8x32xf32>
    %70 = vector.broadcast %62 : vector<1x32xf32> to vector<8x32xf32>
    %71 = arith.addf %69, %70 : vector<8x32xf32>
    %cst_52 = arith.constant dense<0.000000e+00> : vector<8x32xf32>
    %72 = tpu.matmul %65, %58, %cst_52 {dimension_numbers = #tpu.dot_dimension_numbers<[1], [0], [0], [1], [0, 0, 1, 1], [], []>} : vector<8x32xf32>, vector<32x32xf32>, vector<8x32xf32> -> vector<8x32xf32>
    %73 = vector.broadcast %64 : vector<1x32xf32> to vector<8x32xf32>
    %74 = arith.addf %72, %73 : vector<8x32xf32>
    %75 = vector.extract_strided_slice %36 {offsets = [0, 0, 0], sizes = [8, 1, 32], strides = [1, 1, 1]} : vector<8x8x32xf32> to vector<8x1x32xf32>
    %76 = vector.shape_cast %75 : vector<8x1x32xf32> to vector<8x32xf32>
    %77 = arith.addf %76, %68 : vector<8x32xf32>
    %78 = arith.negf %77 : vector<8x32xf32>
    %79 = math.exp %78 : vector<8x32xf32>
    %cst_53 = arith.constant 1.000000e+00 : f32
    %80 = vector.broadcast %cst_53 : f32 to vector<8x32xf32>
    %81 = arith.addf %80, %79 : vector<8x32xf32>
    %82 = arith.divf %80, %81 : vector<8x32xf32>
    %83 = vector.extract_strided_slice %44 {offsets = [0, 0, 0], sizes = [8, 1, 32], strides = [1, 1, 1]} : vector<8x8x32xf32> to vector<8x1x32xf32>
    %84 = vector.shape_cast %83 : vector<8x1x32xf32> to vector<8x32xf32>
    %85 = arith.addf %84, %71 : vector<8x32xf32>
    %86 = arith.negf %85 : vector<8x32xf32>
    %87 = math.exp %86 : vector<8x32xf32>
    %cst_54 = arith.constant 1.000000e+00 : f32
    %88 = vector.broadcast %cst_54 : f32 to vector<8x32xf32>
    %89 = arith.addf %88, %87 : vector<8x32xf32>
    %90 = arith.divf %88, %89 : vector<8x32xf32>
    %91 = vector.extract_strided_slice %52 {offsets = [0, 0, 0], sizes = [8, 1, 32], strides = [1, 1, 1]} : vector<8x8x32xf32> to vector<8x1x32xf32>
    %92 = vector.shape_cast %91 : vector<8x1x32xf32> to vector<8x32xf32>
    %93 = arith.mulf %82, %74 : vector<8x32xf32>
    %94 = arith.addf %92, %93 : vector<8x32xf32>
    %95 = math.tanh %94 : vector<8x32xf32>
    %cst_55 = arith.constant 1.000000e+00 : f32
    %96 = vector.broadcast %cst_55 : f32 to vector<8x32xf32>
    %97 = arith.subf %96, %90 : vector<8x32xf32>
    %98 = arith.mulf %97, %95 : vector<8x32xf32>
    %99 = arith.mulf %90, %65 : vector<8x32xf32>
    %100 = arith.addf %98, %99 : vector<8x32xf32>
    %c0_56 = arith.constant 0 : index
    %c0_57 = arith.constant 0 : index
    %c0_58 = arith.constant 0 : index
    %101 = vector.load %arg9[%c0_56, %c0_57, %c0_58] : memref<8x8x32xf32, #tpu.memory_space<vmem>>, vector<8x1x32xf32>
    %102 = vector.shape_cast %101 : vector<8x1x32xf32> to vector<8x32xf32>
    %103 = vector.shape_cast %100 : vector<8x32xf32> to vector<8x1x32xf32>
    tpu.vector_store %arg9[%c0_56, %c0_57, %c0_58], %103 {strides = array<i32>} : memref<8x8x32xf32, #tpu.memory_space<vmem>>, vector<8x1x32xf32>,
    %cst_59 = arith.constant dense<0.000000e+00> : vector<8x32xf32>
    %104 = tpu.matmul %100, %54, %cst_59 {dimension_numbers = #tpu.dot_dimension_numbers<[1], [0], [0], [1], [0, 0, 1, 1], [], []>} : vector<8x32xf32>, vector<32x32xf32>, vector<8x32xf32> -> vector<8x32xf32>
    %105 = vector.broadcast %60 : vector<1x32xf32> to vector<8x32xf32>
    %106 = arith.addf %104, %105 : vector<8x32xf32>
    %cst_60 = arith.constant dense<0.000000e+00> : vector<8x32xf32>
    %107 = tpu.matmul %100, %56, %cst_60 {dimension_numbers = #tpu.dot_dimension_numbers<[1], [0], [0], [1], [0, 0, 1, 1], [], []>} : vector<8x32xf32>, vector<32x32xf32>, vector<8x32xf32> -> vector<8x32xf32>
    %108 = vector.broadcast %62 : vector<1x32xf32> to vector<8x32xf32>
    %109 = arith.addf %107, %108 : vector<8x32xf32>
    %cst_61 = arith.constant dense<0.000000e+00> : vector<8x32xf32>
    %110 = tpu.matmul %100, %58, %cst_61 {dimension_numbers = #tpu.dot_dimension_numbers<[1], [0], [0], [1], [0, 0, 1, 1], [], []>} : vector<8x32xf32>, vector<32x32xf32>, vector<8x32xf32> -> vector<8x32xf32>
    %111 = vector.broadcast %64 : vector<1x32xf32> to vector<8x32xf32>
    %112 = arith.addf %110, %111 : vector<8x32xf32>
    %113 = vector.extract_strided_slice %36 {offsets = [0, 1, 0], sizes = [8, 1, 32], strides = [1, 1, 1]} : vector<8x8x32xf32> to vector<8x1x32xf32>
    %114 = vector.shape_cast %113 : vector<8x1x32xf32> to vector<8x32xf32>
    %115 = arith.addf %114, %106 : vector<8x32xf32>
    %116 = arith.negf %115 : vector<8x32xf32>
    %117 = math.exp %116 : vector<8x32xf32>
    %cst_62 = arith.constant 1.000000e+00 : f32
    %118 = vector.broadcast %cst_62 : f32 to vector<8x32xf32>
    %119 = arith.addf %118, %117 : vector<8x32xf32>
    %120 = arith.divf %118, %119 : vector<8x32xf32>
    %121 = vector.extract_strided_slice %44 {offsets = [0, 1, 0], sizes = [8, 1, 32], strides = [1, 1, 1]} : vector<8x8x32xf32> to vector<8x1x32xf32>
    %122 = vector.shape_cast %121 : vector<8x1x32xf32> to vector<8x32xf32>
    %123 = arith.addf %122, %109 : vector<8x32xf32>
    %124 = arith.negf %123 : vector<8x32xf32>
    %125 = math.exp %124 : vector<8x32xf32>
    %cst_63 = arith.constant 1.000000e+00 : f32
    %126 = vector.broadcast %cst_63 : f32 to vector<8x32xf32>
    %127 = arith.addf %126, %125 : vector<8x32xf32>
    %128 = arith.divf %126, %127 : vector<8x32xf32>
    %129 = vector.extract_strided_slice %52 {offsets = [0, 1, 0], sizes = [8, 1, 32], strides = [1, 1, 1]} : vector<8x8x32xf32> to vector<8x1x32xf32>
    %130 = vector.shape_cast %129 : vector<8x1x32xf32> to vector<8x32xf32>
    %131 = arith.mulf %120, %112 : vector<8x32xf32>
    %132 = arith.addf %130, %131 : vector<8x32xf32>
    %133 = math.tanh %132 : vector<8x32xf32>
    %cst_64 = arith.constant 1.000000e+00 : f32
    %134 = vector.broadcast %cst_64 : f32 to vector<8x32xf32>
    %135 = arith.subf %134, %128 : vector<8x32xf32>
    %136 = arith.mulf %135, %133 : vector<8x32xf32>
    %137 = arith.mulf %128, %100 : vector<8x32xf32>
    %138 = arith.addf %136, %137 : vector<8x32xf32>
    %c0_65 = arith.constant 0 : index
    %c1_66 = arith.constant 1 : index
    %c0_67 = arith.constant 0 : index
    %139 = vector.load %arg9[%c0_65, %c1_66, %c0_67] : memref<8x8x32xf32, #tpu.memory_space<vmem>>, vector<8x1x32xf32>
    %140 = vector.shape_cast %139 : vector<8x1x32xf32> to vector<8x32xf32>
    %141 = vector.shape_cast %138 : vector<8x32xf32> to vector<8x1x32xf32>
    tpu.vector_store %arg9[%c0_65, %c1_66, %c0_67], %141 {strides = array<i32>} : memref<8x8x32xf32, #tpu.memory_space<vmem>>, vector<8x1x32xf32>,
    %cst_68 = arith.constant dense<0.000000e+00> : vector<8x32xf32>
    %142 = tpu.matmul %138, %54, %cst_68 {dimension_numbers = #tpu.dot_dimension_numbers<[1], [0], [0], [1], [0, 0, 1, 1], [], []>} : vector<8x32xf32>, vector<32x32xf32>, vector<8x32xf32> -> vector<8x32xf32>
    %143 = vector.broadcast %60 : vector<1x32xf32> to vector<8x32xf32>
    %144 = arith.addf %142, %143 : vector<8x32xf32>
    %cst_69 = arith.constant dense<0.000000e+00> : vector<8x32xf32>
    %145 = tpu.matmul %138, %56, %cst_69 {dimension_numbers = #tpu.dot_dimension_numbers<[1], [0], [0], [1], [0, 0, 1, 1], [], []>} : vector<8x32xf32>, vector<32x32xf32>, vector<8x32xf32> -> vector<8x32xf32>
    %146 = vector.broadcast %62 : vector<1x32xf32> to vector<8x32xf32>
    %147 = arith.addf %145, %146 : vector<8x32xf32>
    %cst_70 = arith.constant dense<0.000000e+00> : vector<8x32xf32>
    %148 = tpu.matmul %138, %58, %cst_70 {dimension_numbers = #tpu.dot_dimension_numbers<[1], [0], [0], [1], [0, 0, 1, 1], [], []>} : vector<8x32xf32>, vector<32x32xf32>, vector<8x32xf32> -> vector<8x32xf32>
    %149 = vector.broadcast %64 : vector<1x32xf32> to vector<8x32xf32>
    %150 = arith.addf %148, %149 : vector<8x32xf32>
    %151 = vector.extract_strided_slice %36 {offsets = [0, 2, 0], sizes = [8, 1, 32], strides = [1, 1, 1]} : vector<8x8x32xf32> to vector<8x1x32xf32>
    %152 = vector.shape_cast %151 : vector<8x1x32xf32> to vector<8x32xf32>
    %153 = arith.addf %152, %144 : vector<8x32xf32>
    %154 = arith.negf %153 : vector<8x32xf32>
    %155 = math.exp %154 : vector<8x32xf32>
    %cst_71 = arith.constant 1.000000e+00 : f32
    %156 = vector.broadcast %cst_71 : f32 to vector<8x32xf32>
    %157 = arith.addf %156, %155 : vector<8x32xf32>
    %158 = arith.divf %156, %157 : vector<8x32xf32>
    %159 = vector.extract_strided_slice %44 {offsets = [0, 2, 0], sizes = [8, 1, 32], strides = [1, 1, 1]} : vector<8x8x32xf32> to vector<8x1x32xf32>
    %160 = vector.shape_cast %159 : vector<8x1x32xf32> to vector<8x32xf32>
    %161 = arith.addf %160, %147 : vector<8x32xf32>
    %162 = arith.negf %161 : vector<8x32xf32>
    %163 = math.exp %162 : vector<8x32xf32>
    %cst_72 = arith.constant 1.000000e+00 : f32
    %164 = vector.broadcast %cst_72 : f32 to vector<8x32xf32>
    %165 = arith.addf %164, %163 : vector<8x32xf32>
    %166 = arith.divf %164, %165 : vector<8x32xf32>
    %167 = vector.extract_strided_slice %52 {offsets = [0, 2, 0], sizes = [8, 1, 32], strides = [1, 1, 1]} : vector<8x8x32xf32> to vector<8x1x32xf32>
    %168 = vector.shape_cast %167 : vector<8x1x32xf32> to vector<8x32xf32>
    %169 = arith.mulf %158, %150 : vector<8x32xf32>
    %170 = arith.addf %168, %169 : vector<8x32xf32>
    %171 = math.tanh %170 : vector<8x32xf32>
    %cst_73 = arith.constant 1.000000e+00 : f32
    %172 = vector.broadcast %cst_73 : f32 to vector<8x32xf32>
    %173 = arith.subf %172, %166 : vector<8x32xf32>
    %174 = arith.mulf %173, %171 : vector<8x32xf32>
    %175 = arith.mulf %166, %138 : vector<8x32xf32>
    %176 = arith.addf %174, %175 : vector<8x32xf32>
    %c0_74 = arith.constant 0 : index
    %c2_75 = arith.constant 2 : index
    %c0_76 = arith.constant 0 : index
    %177 = vector.load %arg9[%c0_74, %c2_75, %c0_76] : memref<8x8x32xf32, #tpu.memory_space<vmem>>, vector<8x1x32xf32>
    %178 = vector.shape_cast %177 : vector<8x1x32xf32> to vector<8x32xf32>
    %179 = vector.shape_cast %176 : vector<8x32xf32> to vector<8x1x32xf32>
    tpu.vector_store %arg9[%c0_74, %c2_75, %c0_76], %179 {strides = array<i32>} : memref<8x8x32xf32, #tpu.memory_space<vmem>>, vector<8x1x32xf32>,
    %cst_77 = arith.constant dense<0.000000e+00> : vector<8x32xf32>
    %180 = tpu.matmul %176, %54, %cst_77 {dimension_numbers = #tpu.dot_dimension_numbers<[1], [0], [0], [1], [0, 0, 1, 1], [], []>} : vector<8x32xf32>, vector<32x32xf32>, vector<8x32xf32> -> vector<8x32xf32>
    %181 = vector.broadcast %60 : vector<1x32xf32> to vector<8x32xf32>
    %182 = arith.addf %180, %181 : vector<8x32xf32>
    %cst_78 = arith.constant dense<0.000000e+00> : vector<8x32xf32>
    %183 = tpu.matmul %176, %56, %cst_78 {dimension_numbers = #tpu.dot_dimension_numbers<[1], [0], [0], [1], [0, 0, 1, 1], [], []>} : vector<8x32xf32>, vector<32x32xf32>, vector<8x32xf32> -> vector<8x32xf32>
    %184 = vector.broadcast %62 : vector<1x32xf32> to vector<8x32xf32>
    %185 = arith.addf %183, %184 : vector<8x32xf32>
    %cst_79 = arith.constant dense<0.000000e+00> : vector<8x32xf32>
    %186 = tpu.matmul %176, %58, %cst_79 {dimension_numbers = #tpu.dot_dimension_numbers<[1], [0], [0], [1], [0, 0, 1, 1], [], []>} : vector<8x32xf32>, vector<32x32xf32>, vector<8x32xf32> -> vector<8x32xf32>
    %187 = vector.broadcast %64 : vector<1x32xf32> to vector<8x32xf32>
    %188 = arith.addf %186, %187 : vector<8x32xf32>
    %189 = vector.extract_strided_slice %36 {offsets = [0, 3, 0], sizes = [8, 1, 32], strides = [1, 1, 1]} : vector<8x8x32xf32> to vector<8x1x32xf32>
    %190 = vector.shape_cast %189 : vector<8x1x32xf32> to vector<8x32xf32>
    %191 = arith.addf %190, %182 : vector<8x32xf32>
    %192 = arith.negf %191 : vector<8x32xf32>
    %193 = math.exp %192 : vector<8x32xf32>
    %cst_80 = arith.constant 1.000000e+00 : f32
    %194 = vector.broadcast %cst_80 : f32 to vector<8x32xf32>
    %195 = arith.addf %194, %193 : vector<8x32xf32>
    %196 = arith.divf %194, %195 : vector<8x32xf32>
    %197 = vector.extract_strided_slice %44 {offsets = [0, 3, 0], sizes = [8, 1, 32], strides = [1, 1, 1]} : vector<8x8x32xf32> to vector<8x1x32xf32>
    %198 = vector.shape_cast %197 : vector<8x1x32xf32> to vector<8x32xf32>
    %199 = arith.addf %198, %185 : vector<8x32xf32>
    %200 = arith.negf %199 : vector<8x32xf32>
    %201 = math.exp %200 : vector<8x32xf32>
    %cst_81 = arith.constant 1.000000e+00 : f32
    %202 = vector.broadcast %cst_81 : f32 to vector<8x32xf32>
    %203 = arith.addf %202, %201 : vector<8x32xf32>
    %204 = arith.divf %202, %203 : vector<8x32xf32>
    %205 = vector.extract_strided_slice %52 {offsets = [0, 3, 0], sizes = [8, 1, 32], strides = [1, 1, 1]} : vector<8x8x32xf32> to vector<8x1x32xf32>
    %206 = vector.shape_cast %205 : vector<8x1x32xf32> to vector<8x32xf32>
    %207 = arith.mulf %196, %188 : vector<8x32xf32>
    %208 = arith.addf %206, %207 : vector<8x32xf32>
    %209 = math.tanh %208 : vector<8x32xf32>
    %cst_82 = arith.constant 1.000000e+00 : f32
    %210 = vector.broadcast %cst_82 : f32 to vector<8x32xf32>
    %211 = arith.subf %210, %204 : vector<8x32xf32>
    %212 = arith.mulf %211, %209 : vector<8x32xf32>
    %213 = arith.mulf %204, %176 : vector<8x32xf32>
    %214 = arith.addf %212, %213 : vector<8x32xf32>
    %c0_83 = arith.constant 0 : index
    %c3 = arith.constant 3 : index
    %c0_84 = arith.constant 0 : index
    %215 = vector.load %arg9[%c0_83, %c3, %c0_84] : memref<8x8x32xf32, #tpu.memory_space<vmem>>, vector<8x1x32xf32>
    %216 = vector.shape_cast %215 : vector<8x1x32xf32> to vector<8x32xf32>
    %217 = vector.shape_cast %214 : vector<8x32xf32> to vector<8x1x32xf32>
    tpu.vector_store %arg9[%c0_83, %c3, %c0_84], %217 {strides = array<i32>} : memref<8x8x32xf32, #tpu.memory_space<vmem>>, vector<8x1x32xf32>,
    %cst_85 = arith.constant dense<0.000000e+00> : vector<8x32xf32>
    %218 = tpu.matmul %214, %54, %cst_85 {dimension_numbers = #tpu.dot_dimension_numbers<[1], [0], [0], [1], [0, 0, 1, 1], [], []>} : vector<8x32xf32>, vector<32x32xf32>, vector<8x32xf32> -> vector<8x32xf32>
    %219 = vector.broadcast %60 : vector<1x32xf32> to vector<8x32xf32>
    %220 = arith.addf %218, %219 : vector<8x32xf32>
    %cst_86 = arith.constant dense<0.000000e+00> : vector<8x32xf32>
    %221 = tpu.matmul %214, %56, %cst_86 {dimension_numbers = #tpu.dot_dimension_numbers<[1], [0], [0], [1], [0, 0, 1, 1], [], []>} : vector<8x32xf32>, vector<32x32xf32>, vector<8x32xf32> -> vector<8x32xf32>
    %222 = vector.broadcast %62 : vector<1x32xf32> to vector<8x32xf32>
    %223 = arith.addf %221, %222 : vector<8x32xf32>
    %cst_87 = arith.constant dense<0.000000e+00> : vector<8x32xf32>
    %224 = tpu.matmul %214, %58, %cst_87 {dimension_numbers = #tpu.dot_dimension_numbers<[1], [0], [0], [1], [0, 0, 1, 1], [], []>} : vector<8x32xf32>, vector<32x32xf32>, vector<8x32xf32> -> vector<8x32xf32>
    %225 = vector.broadcast %64 : vector<1x32xf32> to vector<8x32xf32>
    %226 = arith.addf %224, %225 : vector<8x32xf32>
    %227 = vector.extract_strided_slice %36 {offsets = [0, 4, 0], sizes = [8, 1, 32], strides = [1, 1, 1]} : vector<8x8x32xf32> to vector<8x1x32xf32>
    %228 = vector.shape_cast %227 : vector<8x1x32xf32> to vector<8x32xf32>
    %229 = arith.addf %228, %220 : vector<8x32xf32>
    %230 = arith.negf %229 : vector<8x32xf32>
    %231 = math.exp %230 : vector<8x32xf32>
    %cst_88 = arith.constant 1.000000e+00 : f32
    %232 = vector.broadcast %cst_88 : f32 to vector<8x32xf32>
    %233 = arith.addf %232, %231 : vector<8x32xf32>
    %234 = arith.divf %232, %233 : vector<8x32xf32>
    %235 = vector.extract_strided_slice %44 {offsets = [0, 4, 0], sizes = [8, 1, 32], strides = [1, 1, 1]} : vector<8x8x32xf32> to vector<8x1x32xf32>
    %236 = vector.shape_cast %235 : vector<8x1x32xf32> to vector<8x32xf32>
    %237 = arith.addf %236, %223 : vector<8x32xf32>
    %238 = arith.negf %237 : vector<8x32xf32>
    %239 = math.exp %238 : vector<8x32xf32>
    %cst_89 = arith.constant 1.000000e+00 : f32
    %240 = vector.broadcast %cst_89 : f32 to vector<8x32xf32>
    %241 = arith.addf %240, %239 : vector<8x32xf32>
    %242 = arith.divf %240, %241 : vector<8x32xf32>
    %243 = vector.extract_strided_slice %52 {offsets = [0, 4, 0], sizes = [8, 1, 32], strides = [1, 1, 1]} : vector<8x8x32xf32> to vector<8x1x32xf32>
    %244 = vector.shape_cast %243 : vector<8x1x32xf32> to vector<8x32xf32>
    %245 = arith.mulf %234, %226 : vector<8x32xf32>
    %246 = arith.addf %244, %245 : vector<8x32xf32>
    %247 = math.tanh %246 : vector<8x32xf32>
    %cst_90 = arith.constant 1.000000e+00 : f32
    %248 = vector.broadcast %cst_90 : f32 to vector<8x32xf32>
    %249 = arith.subf %248, %242 : vector<8x32xf32>
    %250 = arith.mulf %249, %247 : vector<8x32xf32>
    %251 = arith.mulf %242, %214 : vector<8x32xf32>
    %252 = arith.addf %250, %251 : vector<8x32xf32>
    %c0_91 = arith.constant 0 : index
    %c4 = arith.constant 4 : index
    %c0_92 = arith.constant 0 : index
    %253 = vector.load %arg9[%c0_91, %c4, %c0_92] : memref<8x8x32xf32, #tpu.memory_space<vmem>>, vector<8x1x32xf32>
    %254 = vector.shape_cast %253 : vector<8x1x32xf32> to vector<8x32xf32>
    %255 = vector.shape_cast %252 : vector<8x32xf32> to vector<8x1x32xf32>
    tpu.vector_store %arg9[%c0_91, %c4, %c0_92], %255 {strides = array<i32>} : memref<8x8x32xf32, #tpu.memory_space<vmem>>, vector<8x1x32xf32>,
    %cst_93 = arith.constant dense<0.000000e+00> : vector<8x32xf32>
    %256 = tpu.matmul %252, %54, %cst_93 {dimension_numbers = #tpu.dot_dimension_numbers<[1], [0], [0], [1], [0, 0, 1, 1], [], []>} : vector<8x32xf32>, vector<32x32xf32>, vector<8x32xf32> -> vector<8x32xf32>
    %257 = vector.broadcast %60 : vector<1x32xf32> to vector<8x32xf32>
    %258 = arith.addf %256, %257 : vector<8x32xf32>
    %cst_94 = arith.constant dense<0.000000e+00> : vector<8x32xf32>
    %259 = tpu.matmul %252, %56, %cst_94 {dimension_numbers = #tpu.dot_dimension_numbers<[1], [0], [0], [1], [0, 0, 1, 1], [], []>} : vector<8x32xf32>, vector<32x32xf32>, vector<8x32xf32> -> vector<8x32xf32>
    %260 = vector.broadcast %62 : vector<1x32xf32> to vector<8x32xf32>
    %261 = arith.addf %259, %260 : vector<8x32xf32>
    %cst_95 = arith.constant dense<0.000000e+00> : vector<8x32xf32>
    %262 = tpu.matmul %252, %58, %cst_95 {dimension_numbers = #tpu.dot_dimension_numbers<[1], [0], [0], [1], [0, 0, 1, 1], [], []>} : vector<8x32xf32>, vector<32x32xf32>, vector<8x32xf32> -> vector<8x32xf32>
    %263 = vector.broadcast %64 : vector<1x32xf32> to vector<8x32xf32>
    %264 = arith.addf %262, %263 : vector<8x32xf32>
    %265 = vector.extract_strided_slice %36 {offsets = [0, 5, 0], sizes = [8, 1, 32], strides = [1, 1, 1]} : vector<8x8x32xf32> to vector<8x1x32xf32>
    %266 = vector.shape_cast %265 : vector<8x1x32xf32> to vector<8x32xf32>
    %267 = arith.addf %266, %258 : vector<8x32xf32>
    %268 = arith.negf %267 : vector<8x32xf32>
    %269 = math.exp %268 : vector<8x32xf32>
    %cst_96 = arith.constant 1.000000e+00 : f32
    %270 = vector.broadcast %cst_96 : f32 to vector<8x32xf32>
    %271 = arith.addf %270, %269 : vector<8x32xf32>
    %272 = arith.divf %270, %271 : vector<8x32xf32>
    %273 = vector.extract_strided_slice %44 {offsets = [0, 5, 0], sizes = [8, 1, 32], strides = [1, 1, 1]} : vector<8x8x32xf32> to vector<8x1x32xf32>
    %274 = vector.shape_cast %273 : vector<8x1x32xf32> to vector<8x32xf32>
    %275 = arith.addf %274, %261 : vector<8x32xf32>
    %276 = arith.negf %275 : vector<8x32xf32>
    %277 = math.exp %276 : vector<8x32xf32>
    %cst_97 = arith.constant 1.000000e+00 : f32
    %278 = vector.broadcast %cst_97 : f32 to vector<8x32xf32>
    %279 = arith.addf %278, %277 : vector<8x32xf32>
    %280 = arith.divf %278, %279 : vector<8x32xf32>
    %281 = vector.extract_strided_slice %52 {offsets = [0, 5, 0], sizes = [8, 1, 32], strides = [1, 1, 1]} : vector<8x8x32xf32> to vector<8x1x32xf32>
    %282 = vector.shape_cast %281 : vector<8x1x32xf32> to vector<8x32xf32>
    %283 = arith.mulf %272, %264 : vector<8x32xf32>
    %284 = arith.addf %282, %283 : vector<8x32xf32>
    %285 = math.tanh %284 : vector<8x32xf32>
    %cst_98 = arith.constant 1.000000e+00 : f32
    %286 = vector.broadcast %cst_98 : f32 to vector<8x32xf32>
    %287 = arith.subf %286, %280 : vector<8x32xf32>
    %288 = arith.mulf %287, %285 : vector<8x32xf32>
    %289 = arith.mulf %280, %252 : vector<8x32xf32>
    %290 = arith.addf %288, %289 : vector<8x32xf32>
    %c0_99 = arith.constant 0 : index
    %c5 = arith.constant 5 : index
    %c0_100 = arith.constant 0 : index
    %291 = vector.load %arg9[%c0_99, %c5, %c0_100] : memref<8x8x32xf32, #tpu.memory_space<vmem>>, vector<8x1x32xf32>
    %292 = vector.shape_cast %291 : vector<8x1x32xf32> to vector<8x32xf32>
    %293 = vector.shape_cast %290 : vector<8x32xf32> to vector<8x1x32xf32>
    tpu.vector_store %arg9[%c0_99, %c5, %c0_100], %293 {strides = array<i32>} : memref<8x8x32xf32, #tpu.memory_space<vmem>>, vector<8x1x32xf32>,
    %cst_101 = arith.constant dense<0.000000e+00> : vector<8x32xf32>
    %294 = tpu.matmul %290, %54, %cst_101 {dimension_numbers = #tpu.dot_dimension_numbers<[1], [0], [0], [1], [0, 0, 1, 1], [], []>} : vector<8x32xf32>, vector<32x32xf32>, vector<8x32xf32> -> vector<8x32xf32>
    %295 = vector.broadcast %60 : vector<1x32xf32> to vector<8x32xf32>
    %296 = arith.addf %294, %295 : vector<8x32xf32>
    %cst_102 = arith.constant dense<0.000000e+00> : vector<8x32xf32>
    %297 = tpu.matmul %290, %56, %cst_102 {dimension_numbers = #tpu.dot_dimension_numbers<[1], [0], [0], [1], [0, 0, 1, 1], [], []>} : vector<8x32xf32>, vector<32x32xf32>, vector<8x32xf32> -> vector<8x32xf32>
    %298 = vector.broadcast %62 : vector<1x32xf32> to vector<8x32xf32>
    %299 = arith.addf %297, %298 : vector<8x32xf32>
    %cst_103 = arith.constant dense<0.000000e+00> : vector<8x32xf32>
    %300 = tpu.matmul %290, %58, %cst_103 {dimension_numbers = #tpu.dot_dimension_numbers<[1], [0], [0], [1], [0, 0, 1, 1], [], []>} : vector<8x32xf32>, vector<32x32xf32>, vector<8x32xf32> -> vector<8x32xf32>
    %301 = vector.broadcast %64 : vector<1x32xf32> to vector<8x32xf32>
    %302 = arith.addf %300, %301 : vector<8x32xf32>
    %303 = vector.extract_strided_slice %36 {offsets = [0, 6, 0], sizes = [8, 1, 32], strides = [1, 1, 1]} : vector<8x8x32xf32> to vector<8x1x32xf32>
    %304 = vector.shape_cast %303 : vector<8x1x32xf32> to vector<8x32xf32>
    %305 = arith.addf %304, %296 : vector<8x32xf32>
    %306 = arith.negf %305 : vector<8x32xf32>
    %307 = math.exp %306 : vector<8x32xf32>
    %cst_104 = arith.constant 1.000000e+00 : f32
    %308 = vector.broadcast %cst_104 : f32 to vector<8x32xf32>
    %309 = arith.addf %308, %307 : vector<8x32xf32>
    %310 = arith.divf %308, %309 : vector<8x32xf32>
    %311 = vector.extract_strided_slice %44 {offsets = [0, 6, 0], sizes = [8, 1, 32], strides = [1, 1, 1]} : vector<8x8x32xf32> to vector<8x1x32xf32>
    %312 = vector.shape_cast %311 : vector<8x1x32xf32> to vector<8x32xf32>
    %313 = arith.addf %312, %299 : vector<8x32xf32>
    %314 = arith.negf %313 : vector<8x32xf32>
    %315 = math.exp %314 : vector<8x32xf32>
    %cst_105 = arith.constant 1.000000e+00 : f32
    %316 = vector.broadcast %cst_105 : f32 to vector<8x32xf32>
    %317 = arith.addf %316, %315 : vector<8x32xf32>
    %318 = arith.divf %316, %317 : vector<8x32xf32>
    %319 = vector.extract_strided_slice %52 {offsets = [0, 6, 0], sizes = [8, 1, 32], strides = [1, 1, 1]} : vector<8x8x32xf32> to vector<8x1x32xf32>
    %320 = vector.shape_cast %319 : vector<8x1x32xf32> to vector<8x32xf32>
    %321 = arith.mulf %310, %302 : vector<8x32xf32>
    %322 = arith.addf %320, %321 : vector<8x32xf32>
    %323 = math.tanh %322 : vector<8x32xf32>
    %cst_106 = arith.constant 1.000000e+00 : f32
    %324 = vector.broadcast %cst_106 : f32 to vector<8x32xf32>
    %325 = arith.subf %324, %318 : vector<8x32xf32>
    %326 = arith.mulf %325, %323 : vector<8x32xf32>
    %327 = arith.mulf %318, %290 : vector<8x32xf32>
    %328 = arith.addf %326, %327 : vector<8x32xf32>
    %c0_107 = arith.constant 0 : index
    %c6 = arith.constant 6 : index
    %c0_108 = arith.constant 0 : index
    %329 = vector.load %arg9[%c0_107, %c6, %c0_108] : memref<8x8x32xf32, #tpu.memory_space<vmem>>, vector<8x1x32xf32>
    %330 = vector.shape_cast %329 : vector<8x1x32xf32> to vector<8x32xf32>
    %331 = vector.shape_cast %328 : vector<8x32xf32> to vector<8x1x32xf32>
    tpu.vector_store %arg9[%c0_107, %c6, %c0_108], %331 {strides = array<i32>} : memref<8x8x32xf32, #tpu.memory_space<vmem>>, vector<8x1x32xf32>,
    %cst_109 = arith.constant dense<0.000000e+00> : vector<8x32xf32>
    %332 = tpu.matmul %328, %54, %cst_109 {dimension_numbers = #tpu.dot_dimension_numbers<[1], [0], [0], [1], [0, 0, 1, 1], [], []>} : vector<8x32xf32>, vector<32x32xf32>, vector<8x32xf32> -> vector<8x32xf32>
    %333 = vector.broadcast %60 : vector<1x32xf32> to vector<8x32xf32>
    %334 = arith.addf %332, %333 : vector<8x32xf32>
    %cst_110 = arith.constant dense<0.000000e+00> : vector<8x32xf32>
    %335 = tpu.matmul %328, %56, %cst_110 {dimension_numbers = #tpu.dot_dimension_numbers<[1], [0], [0], [1], [0, 0, 1, 1], [], []>} : vector<8x32xf32>, vector<32x32xf32>, vector<8x32xf32> -> vector<8x32xf32>
    %336 = vector.broadcast %62 : vector<1x32xf32> to vector<8x32xf32>
    %337 = arith.addf %335, %336 : vector<8x32xf32>
    %cst_111 = arith.constant dense<0.000000e+00> : vector<8x32xf32>
    %338 = tpu.matmul %328, %58, %cst_111 {dimension_numbers = #tpu.dot_dimension_numbers<[1], [0], [0], [1], [0, 0, 1, 1], [], []>} : vector<8x32xf32>, vector<32x32xf32>, vector<8x32xf32> -> vector<8x32xf32>
    %339 = vector.broadcast %64 : vector<1x32xf32> to vector<8x32xf32>
    %340 = arith.addf %338, %339 : vector<8x32xf32>
    %341 = vector.extract_strided_slice %36 {offsets = [0, 7, 0], sizes = [8, 1, 32], strides = [1, 1, 1]} : vector<8x8x32xf32> to vector<8x1x32xf32>
    %342 = vector.shape_cast %341 : vector<8x1x32xf32> to vector<8x32xf32>
    %343 = arith.addf %342, %334 : vector<8x32xf32>
    %344 = arith.negf %343 : vector<8x32xf32>
    %345 = math.exp %344 : vector<8x32xf32>
    %cst_112 = arith.constant 1.000000e+00 : f32
    %346 = vector.broadcast %cst_112 : f32 to vector<8x32xf32>
    %347 = arith.addf %346, %345 : vector<8x32xf32>
    %348 = arith.divf %346, %347 : vector<8x32xf32>
    %349 = vector.extract_strided_slice %44 {offsets = [0, 7, 0], sizes = [8, 1, 32], strides = [1, 1, 1]} : vector<8x8x32xf32> to vector<8x1x32xf32>
    %350 = vector.shape_cast %349 : vector<8x1x32xf32> to vector<8x32xf32>
    %351 = arith.addf %350, %337 : vector<8x32xf32>
    %352 = arith.negf %351 : vector<8x32xf32>
    %353 = math.exp %352 : vector<8x32xf32>
    %cst_113 = arith.constant 1.000000e+00 : f32
    %354 = vector.broadcast %cst_113 : f32 to vector<8x32xf32>
    %355 = arith.addf %354, %353 : vector<8x32xf32>
    %356 = arith.divf %354, %355 : vector<8x32xf32>
    %357 = vector.extract_strided_slice %52 {offsets = [0, 7, 0], sizes = [8, 1, 32], strides = [1, 1, 1]} : vector<8x8x32xf32> to vector<8x1x32xf32>
    %358 = vector.shape_cast %357 : vector<8x1x32xf32> to vector<8x32xf32>
    %359 = arith.mulf %348, %340 : vector<8x32xf32>
    %360 = arith.addf %358, %359 : vector<8x32xf32>
    %361 = math.tanh %360 : vector<8x32xf32>
    %cst_114 = arith.constant 1.000000e+00 : f32
    %362 = vector.broadcast %cst_114 : f32 to vector<8x32xf32>
    %363 = arith.subf %362, %356 : vector<8x32xf32>
    %364 = arith.mulf %363, %361 : vector<8x32xf32>
    %365 = arith.mulf %356, %328 : vector<8x32xf32>
    %366 = arith.addf %364, %365 : vector<8x32xf32>
    %c0_115 = arith.constant 0 : index
    %c7 = arith.constant 7 : index
    %c0_116 = arith.constant 0 : index
    %367 = vector.load %arg9[%c0_115, %c7, %c0_116] : memref<8x8x32xf32, #tpu.memory_space<vmem>>, vector<8x1x32xf32>
    %368 = vector.shape_cast %367 : vector<8x1x32xf32> to vector<8x32xf32>
    %369 = vector.shape_cast %366 : vector<8x32xf32> to vector<8x1x32xf32>
    tpu.vector_store %arg9[%c0_115, %c7, %c0_116], %369 {strides = array<i32>} : memref<8x8x32xf32, #tpu.memory_space<vmem>>, vector<8x1x32xf32>,
    %c0_117 = arith.constant 0 : index
    %c0_118 = arith.constant 0 : index
    %370 = vector.load %arg11[%c0_117, %c0_118] : memref<8x32xf32, #tpu.memory_space<vmem>>, vector<8x32xf32>
    tpu.vector_store %arg11[%c0_117, %c0_118], %366 {strides = array<i32>} : memref<8x32xf32, #tpu.memory_space<vmem>>, vector<8x32xf32>,
    %c1_i32 = arith.constant 1 : i32
    %371 = arith.cmpi eq, %arg0, %c1_i32 : i32
    %372 = arith.extui %371 : i1 to i32
    %c0_i32_119 = arith.constant 0 : i32
    %373 = arith.cmpi ne, %372, %c0_i32_119 : i32
    scf.if %373 {
      %c0_120 = arith.constant 0 : index
      %c0_121 = arith.constant 0 : index
      %374 = vector.load %arg10[%c0_120, %c0_121] : memref<8x32xf32, #tpu.memory_space<vmem>>, vector<8x32xf32>
      tpu.vector_store %arg10[%c0_120, %c0_121], %366 {strides = array<i32>} : memref<8x32xf32, #tpu.memory_space<vmem>>, vector<8x32xf32>,
    } else {
    }
    return
  }
  func.func @transform_0(%arg0: i32) -> (i32, i32, i32) {
    %c0_i32 = arith.constant 0 : i32
    %c0_i32_0 = arith.constant 0 : i32
    %c0_i32_1 = arith.constant 0 : i32
    return %c0_i32, %arg0, %c0_i32_0 : i32, i32, i32
  }
  func.func @transform_1(%arg0: i32) -> (i32, i32) {
    %c0_i32 = arith.constant 0 : i32
    %c0_i32_0 = arith.constant 0 : i32
    %c0_i32_1 = arith.constant 0 : i32
    return %c0_i32, %c0_i32_0 : i32, i32
  }
  func.func @transform_2(%arg0: i32) -> (i32, i32) {
    %c0_i32 = arith.constant 0 : i32
    %c0_i32_0 = arith.constant 0 : i32
    %c0_i32_1 = arith.constant 0 : i32
    return %c0_i32, %c0_i32_0 : i32, i32
  }
  func.func @transform_3(%arg0: i32) -> (i32, i32) {
    %c0_i32 = arith.constant 0 : i32
    %c0_i32_0 = arith.constant 0 : i32
    %c0_i32_1 = arith.constant 0 : i32
    return %c0_i32, %c0_i32_0 : i32, i32
  }
  func.func @transform_4(%arg0: i32) -> (i32, i32, i32) {
    %c0_i32 = arith.constant 0 : i32
    %c0_i32_0 = arith.constant 0 : i32
    %c0_i32_1 = arith.constant 0 : i32
    %c0_i32_2 = arith.constant 0 : i32
    return %c0_i32, %c0_i32_0, %c0_i32_1 : i32, i32, i32
  }
  func.func @transform_5(%arg0: i32) -> (i32, i32, i32) {
    %c0_i32 = arith.constant 0 : i32
    %c0_i32_0 = arith.constant 0 : i32
    %c0_i32_1 = arith.constant 0 : i32
    %c0_i32_2 = arith.constant 0 : i32
    return %c0_i32, %c0_i32_0, %c0_i32_1 : i32, i32, i32
  }
  func.func @transform_6(%arg0: i32) -> (i32, i32, i32) {
    %c0_i32 = arith.constant 0 : i32
    %c0_i32_0 = arith.constant 0 : i32
    %c0_i32_1 = arith.constant 0 : i32
    %c0_i32_2 = arith.constant 0 : i32
    return %c0_i32, %c0_i32_0, %c0_i32_1 : i32, i32, i32
  }
  func.func @transform_7(%arg0: i32) -> (i32, i32, i32) {
    %c0_i32 = arith.constant 0 : i32
    %c0_i32_0 = arith.constant 0 : i32
    %c0_i32_1 = arith.constant 0 : i32
    %c0_i32_2 = arith.constant 0 : i32
    return %c0_i32, %c0_i32_0, %c0_i32_1 : i32, i32, i32
  }
  func.func @transform_8(%arg0: i32) -> (i32, i32, i32) {
    %c0_i32 = arith.constant 0 : i32
    %c0_i32_0 = arith.constant 0 : i32
    %c0_i32_1 = arith.constant 0 : i32
    return %c0_i32, %arg0, %c0_i32_0 : i32, i32, i32
  }
  func.func @transform_9(%arg0: i32) -> (i32, i32) {
    %c0_i32 = arith.constant 0 : i32
    %c0_i32_0 = arith.constant 0 : i32
    %c0_i32_1 = arith.constant 0 : i32
    return %c0_i32, %c0_i32_0 : i32, i32
  }
}

</mosaic_0001>

<bundles_post_ra>
// kernel: tpu_custom_call.1
= control target key start
LH: loop header
LB: loop body
LE: loop exit
PB: predicated region body
PF: predicated region fallthrough
CT: control target
= control target key end

     0   :  { %s8289_s0 = inlined_call_operand.hbm [shape: f32[8,16,32], index: 0, kind: input, shape index: {}]   ;;  %s8290_s1 = inlined_call_operand.hbm [shape: f32[8,32], index: 1, kind: input, shape index: {}]   ;;  %s8291_s2 = inlined_call_operand.vmem [shape: f32[1,32], index: 2, kind: input, shape index: {}]   ;;  %s8292_s3 = inlined_call_operand.hbm [shape: f32[1,32], index: 3, kind: input, shape index: {}]   ;;  %s8293_s4 = inlined_call_operand.hbm [shape: f32[3,32,32], index: 4, kind: input, shape index: {}]   ;;  %s8294_s5 = inlined_call_operand.hbm [shape: f32[3,32,32], index: 5, kind: input, shape index: {}]   ;;  %s8295_s6 = inlined_call_operand.vmem [shape: f32[3,1,32], index: 6, kind: input, shape index: {}]   ;;  %s8296_s7 = inlined_call_operand.vmem [shape: f32[3,1,32], index: 7, kind: input, shape index: {}]   ;;  %s8297_s8 = inlined_call_operand.hbm [shape: f32[8,16,32], index: 8, kind: output, shape index: {0}]   ;;  %s8298_s9 = inlined_call_operand.hbm [shape: f32[8,32], index: 9, kind: output, shape index: {1}]  }
   0x1   :  { %8357 = sst [smem:[#allocation34_spill]] %s8290_s1 }
   0x2   :  { %8358 = sst [smem:[#allocation35_spill]] %s8292_s3 }
   0x3   :  { %8359 = sst [smem:[#allocation36_spill]] %s8293_s4 }
   0x4   :  { %15 = vsyncpa [#allocation4], 0 }
   0x5   :  { %17 = vsyncpa [#allocation4 + $0x1], 0 }
   0x6   :  { %18 = vsyncpa [#allocation7], 0 }
   0x7   :  { %19 = vsyncpa [#allocation10], 0 }
   0x8   :  { %20 = vsyncpa [#allocation5], 0 }
   0x9   :  { %22 = vsyncpa [#allocation5 + $0x1], 0 }
   0xa   :  { %23 = vsyncpa [#allocation14], 0  ;;  %s6718_s30 = smov 0   ;;  %s6720_s10 = smov 0  }
   0xb   :  { %s6722_s11 = smov 0   ;;  %s6724_s12 = smov 0  }
   0xc LB: > { %s6739_s13 = sadd.s32 4294967295, %s6651_s12   ;;  %s4924_s14 = sadd.s32 4294967294, %s6651_s12   ;;  %s6651_s12 = sphi %s6724_s12, %s8449_s12   ;;  %s6647_s11 = sphi %s6722_s11, %s8448_s11   ;;  %s6643_s10 = sphi %s6720_s10, %s8447_s10   ;;  %s6639_s30 = sphi %s6718_s30, %s8446_s30  }
   0xd   : > { %p49_p0 = scmp.ne.s32.totalorder %s6643_s10, %s6639_s30  ;;  %p8299_p1 = scmp.eq.s32.totalorder %s6739_s13, 0 }
   0xe   : > { %p226_p3 = scmp.eq.s32.totalorder %s4924_s14, 1  ;;  %p4925_p5 = scmp.ge.s32.totalorder %s6651_s12, 1 }
   0xf   : > { %p6748_p4 = por %p8299_p1, %p49_p0  ;;  %p254_p7 = scmp.lt.s32.totalorder %s6651_s12, 3 }
  0x10   : > { %p6753_p6 = por %p226_p3, %p49_p0  ;;  %s6653_s18 = smov [#allocation6]  }
  0x11   : > { %s8360_s15 = scalar_select %p6748_p4, 1, 0 }
  0x12   : > { %s8361_s16 = scalar_select %p6753_p6, 1, 0 }
  0x13   : > { %p6759_p9 = pnand %p4925_p5, %p254_p7  ;;  %s267_s19 = sshll.u32 %s6653_s18, 4  ;;  %s268_s19 = int_to_ptr.vmem [resolvable:$true] %s267_s19 }
  0x14   : > { %s6654_s20 = smov [#allocation9]   ;;  %s6655_s23 = smov [#allocation8]  }
  0x15   : > { %s8362_s17 = scalar_select %p6759_p9, 1, 0 }
  0x16   : > { %p5640_p11 = pneg %p6759_p9  ;;  %s291_s21 = sshll.u32 %s6654_s20, 4  ;;  %s292_s21 = int_to_ptr.vmem [resolvable:$true] %s291_s21 }
  0x17   : > { %s281_s24 = sshll.u32 %s6655_s23, 4  ;;  %s6430_s25 = scalar_lea.vmem %s268_s19, 128  ;;  %s282_s24 = int_to_ptr.vmem [resolvable:$true] %s281_s24 }
  0x18   : > { %p6768_p12 = pnand %p5640_p11, %p8299_p1  ;;  %p6431_p0 = scmp.ne.s32.totalorder %s268_s19, %s6430_s25 }
  0x19   : > { %p6438_p7 = scmp.lt.s32.totalorder %s268_s19, %s268_s19  ;;  %p6439_p10 = scmp.lt.s32.totalorder %s6430_s25, %s6430_s25 }
  0x1a   : > { %p6421_p13 = pneg %p6768_p12 }
  0x1b   : > { %p6440_p8 = por %p6439_p10, %p6438_p7 }
  0x1c   : > { %p6433_p3 = pnand %p6431_p0, %p6421_p13 }
  0x1e   : > { %p6434_p5 = pneg %p6433_p3 }
  0x20   : > { %p6441_p11 = pnand %p6440_p8, %p6434_p5 }
  0x22   : > { %6444 = shalt.err (!%p6441_p11)
}
  0x23   : > { %s8364_s1 = sld [smem:[#allocation34_spill]]  ;;  %s6456_s28 = scalar_lea.vmem %s292_s21, 1536 }
  0x24   : > { %p6457_p1 = scmp.ne.s32.totalorder %s292_s21, %s6456_s28  ;;  %p6464_p0 = scmp.lt.s32.totalorder %s292_s21, %s292_s21 }
  0x25   : > { %p6465_p3 = scmp.lt.s32.totalorder %s6456_s28, %s6456_s28 }
  0x26   : > { %p6459_p2 = pnand %p6457_p1, %p6421_p13 }
  0x27   : > { %p6466_p4 = por %p6465_p3, %p6464_p0 }
  0x28   : > { %p6460_p6 = pneg %p6459_p2 }
  0x29   : > { %5643 = dma.hbm_to_vmem [thread:$0]  (!%p6768_p12), %s8364_s1, 128, %s268_s19, [#allocation7]  }
  0x2a   : > { %p6467_p9 = pnand %p6466_p4, %p6460_p6 }
  0x2c   : > { %6470 = shalt.err (!%p6467_p9)
}
  0x2d   : > { %s8302_s29 = smov 128   ;;  %s8303_s14 = smov 8  }
  0x2e   : > { %s8365_s4 = sld [smem:[#allocation36_spill]]  ;;  %s6482_s20 = scalar_lea.vmem %s282_s24, 16 }
  0x2f   : > { %p6483_p1 = scmp.ne.s32.totalorder %s282_s24, %s6482_s20  ;;  %s6489_s23 = scalar_lea.vmem %s282_s24, 32 }
  0x30   : > { %p6490_p6 = scmp.lt.s32.totalorder %s282_s24, %s282_s24  ;;  %p6491_p8 = scmp.lt.s32.totalorder %s6489_s23, %s6482_s20 }
  0x31   : > { %p6485_p2 = pnand %p6483_p1, %p6421_p13 }
  0x32   : > { %p6492_p9 = por %p6491_p8, %p6490_p6 }
  0x33   : > { %p6486_p4 = pneg %p6485_p2 }
  0x34   : > { %5649 = dma.hbm_to_vmem [thread:$0]  (!%p6768_p12), %s8365_s4, 1536, %s292_s21, [#allocation10], %s8302_s29, %s8302_s29, %s8303_s14  }
  0x35   : > { %p6493_p10 = pnand %p6492_p9, %p6486_p4 }
  0x37   : > { %6496 = shalt.err (!%p6493_p10)
}
  0x38   : > { %s8366_s3 = sld [smem:[#allocation35_spill]]  ;;  %s6658_s21 = smov [#allocation11]  }
  0x39   : > { %s304_s27 = sshll.u32 %s6658_s21, 4  ;;  %s305_s27 = int_to_ptr.vmem [resolvable:$true] %s304_s27 }
  0x3a   : > { %s6508_s28 = scalar_lea.vmem %s305_s27, 1536  ;;  %p6516_p0 = scmp.lt.s32.totalorder %s305_s27, %s305_s27 }
  0x3b   : > { %p6509_p5 = scmp.ne.s32.totalorder %s305_s27, %s6508_s28  ;;  %p6517_p3 = scmp.lt.s32.totalorder %s6508_s28, %s6508_s28 }
  0x3d   : > { %p6511_p7 = pnand %p6509_p5, %p6421_p13  ;;  %p6518_p1 = por %p6517_p3, %p6516_p0 }
  0x3e   : > { %5646 = dma.hbm_to_vmem [thread:$0]  (!%p6768_p12), %s8366_s3, 16, %s282_s24, [#allocation7]  }
  0x3f   : > { %p6512_p11 = pneg %p6511_p7 }
  0x41   : > { %p6519_p2 = pnand %p6518_p1, %p6512_p11 }
  0x43   : > { %6522 = shalt.err (!%p6519_p2)
}
  0x44   : > { %5652 = dma.hbm_to_vmem [thread:$0]  (!%p6768_p12), %s8294_s5, 1536, %s305_s27, [#allocation10], %s8302_s29, %s8302_s29, %s8303_s14  }
  0x45   : > { %s6813_s19 = sadd.s32 1, %s6651_s12   ;;  %s36_s22 = sadd.s32 1, %s6647_s11 }
  0x46   : > { %s33_s20 = ssub.s32 %s6651_s12, %s6813_s19  ;;  %p43_p13 = scmp.ne.s32.totalorder %s6647_s11, %s6643_s10 }
  0x47   : > { %p34_p4 = scmp.eq.s32.totalorder %s33_s20, 0  ;;  %p44_p6 = scmp.eq.s32.totalorder %s6651_s12, 0 }
  0x48   : > { %p8367_p8 = scmp.eq.s32.totalorder %s6739_s13, 1  ;;  %p5665_p10 = scmp.lt.s32.totalorder %s6651_s12, 2 }
  0x49   : > { %s6829_s25 = scalar_select %p34_p4, %s6647_s11, %s36_s22  }
  0x4a   : > { %p6823_p9 = por %p8367_p8, %p43_p13  ;;  %p45_p5 = por %p44_p6, %p43_p13 }
  0x4b   : > { %s324_s26 = sand.u32 1, %s6647_s11   ;;  %s4932_s27 = sshll.u32 %s6651_s12, 7 }
  0x4c   : > { %s8368_s23 = scalar_select %p6823_p9, 1, 0 }
  0x4d   : > { %s4931_s21 = sshll.u32 %s324_s26, 6  ;;  %s6836_s18 = scalar_lea.hbm %s8289_s0, %s4932_s27 }
  0x4e   : > { %s328_s20 = scalar_lea.vmem [#allocation3], %s4931_s21  ;;  %p6840_p12 = pnand %p5665_p10, %p45_p5 }
  0x4f   : > { %s334_s29 = sshll.u32 %s328_s20, 4  ;;  %s6844_s22 = scalar_lea.sflag [#allocation4], %s324_s26  ;;  %s6838_s29 = int_to_ptr.vmem [resolvable:$true] %s334_s29 }
  0x50   : > { %s6523_s1 = scalar_lea.hbm %s6836_s18, 1024  ;;  %p6525_p11 = pneg %p6840_p12 }
  0x51   : > { %p6524_p7 = scmp.ne.s32.totalorder %s6836_s18, %s6523_s1  ;;  %s6528_s21 = scalar_lea.hbm %s8289_s0, 2048 }
  0x52   : > { %p6529_p1 = scmp.lt.s32.totalorder %s6836_s18, %s8289_s0  ;;  %p6530_p2 = scmp.lt.s32.totalorder %s6528_s21, %s6523_s1 }
  0x53   : > { %p6526_p0 = pnand %p6525_p11, %p6524_p7 }
  0x54   : > { %p6531_p13 = por %p6530_p2, %p6529_p1 }
  0x55   : > { %p6527_p3 = pneg %p6526_p0 }
  0x57   : > { %p6532_p4 = pnand %p6531_p13, %p6527_p3 }
  0x59   : > { %6535 = shalt.err (!%p6532_p4)
}
  0x5a   : > { %s6536_s26 = scalar_lea.vmem %s6838_s29, 1024  ;;  %s6659_s3 = smov [#allocation3]  }
  0x5b   : > { %p6537_p6 = scmp.ne.s32.totalorder %s6838_s29, %s6536_s26  ;;  %s6541_s4 = sshll.u32 %s6659_s3, 4  ;;  %s6542_s4 = int_to_ptr.vmem [resolvable:$false] %s6541_s4 }
  0x5c   : > { %s6543_s27 = scalar_lea.vmem %s6542_s4, 2048  ;;  %p6544_p5 = scmp.lt.s32.totalorder %s6838_s29, %s6542_s4 }
  0x5d   : > { %p6539_p8 = pnand %p6537_p6, %p6525_p11  ;;  %p6545_p7 = scmp.lt.s32.totalorder %s6543_s27, %s6536_s26 }
  0x5f   : > { %p6540_p10 = pneg %p6539_p8  ;;  %p6546_p0 = por %p6545_p7, %p6544_p5 }
  0x61   : > { %p6547_p9 = pnand %p6546_p0, %p6540_p10 }
  0x63   : > { %6550 = shalt.err (!%p6547_p9)
}
  0x64   : > { %s6660_s1 = smov 256   ;;  %s8370_s28 = smov 8  }
  0x65   : > { %s8371_s21 = smov 128   ;;  %p8372_p11 = scmp.ne.s32.totalorder %s8362_s17, 0 }
  0x66   : > { %5656 = dma.hbm_to_vmem [thread:$0]  (!%p6840_p12), %s6836_s18, 1024, %s6838_s29, %s6844_s22, %s6660_s1, %s8371_s21, %s8370_s28  }
  0x67   : > { %346 = sbr.rel (%p8372_p11) target bundleno = 2608 (0xa30), region = 52 }
  0x6c   : > { %s6870_s3 = sand.u32 1, %s6643_s10   ;;  %p8373_p9 = scmp.ne.s32.totalorder %s8360_s15, 0 }
  0x6d   : > { %s4934_s4 = sshll.u32 %s6870_s3, 6  ;;  %s349_s24 = scalar_lea.sflag [#allocation4], %s6870_s3 }
  0x6e   : > { %s6874_s20 = scalar_lea.vmem [#allocation3], %s4934_s4 }
  0x6f   : > { %6618 = dma.done.wait (%p8373_p9), %s349_s24, 1024  }
  0x70   : > { %6620 = vsyncadd (%p8373_p9), %s349_s24, 4294966272  ;;  %p8374_p12 = scmp.eq.s32.totalorder %s6739_s13, 0 }
  0x72   : > { %6622 = dma.done.wait (%p8374_p12), [#allocation7], 144   ;;  %p8375_p3 = pmov %p8374_p12 }
  0x74   : > { %6624 = vsyncadd (%p8375_p3), [#allocation7], 4294967152  ;;  %p8376_p1 = pmov %p8375_p3 }
  0x76   : > { %6626 = dma.done.wait (%p8376_p1), [#allocation10], 3072   ;;  %p8377_p2 = pmov %p8376_p1 }
  0x77   : > { %s6888_s17 = scalar_lea.vmem [#allocation12], %s4934_s4  ;;  %p8378_p13 = scmp.ne.s32.totalorder %s6739_s13, 0 }
  0x78   : > { %6628 = vsyncadd (%p8377_p2), [#allocation10], 4294964224 }
  0x79   : > { %406 = sbr.rel (%p8378_p13) target bundleno = 128 (0x80), region = 76 }
  0x7e   : > { %v407_v0 = vld [vmem:[#allocation6] sm:$0xff]  ;;  %vm408_vm0 = vcmask 261120  }
  0x7f   : > { %409 = vst.msk [vmem:[#allocation2] sm:$0xff] %vm408_vm0, %v407_v0 }
  0x80 PF: > { %v410_v1 = vld [vmem:[%s6874_s20] sm:$0xff]  ;;  %vm418_vm1 = vcmask 261120   ;;  %v412_v2 = vld [vmem:[%s6874_s20 + $0x10] sm:$0xff]  ;;  %v411_v3 = vld [vmem:[%s6874_s20 + $0x8] sm:$0xff]  ;;  %vm6662_vm2 = vmmov 0   ;;  %vm1412_vm3 = vcmask 253952  }
  0x81   : > { %v419_v4 = vsel %vm418_vm1, %v410_v1, 0.0  ;;  %v425_v5 = vsel %vm418_vm1, %v412_v2, 0.0  ;;  %v413_v6 = vld [vmem:[%s6874_s20 + $0x18] sm:$0xff]  ;;  %v422_v7 = vsel %vm418_vm1, %v411_v3, 0.0  ;;  %v414_v9 = vld [vmem:[%s6874_s20 + $0x20] sm:$0xff]  ;;  %v415_v10 = vld [vmem:[%s6874_s20 + $0x28] sm:$0xff] }
  0x82   : > { %420 = vadd.xlane.f32.xlu0 %v419_v4  ;;  %426 = vadd.xlane.f32.xlu1 %v425_v5  ;;  %v428_v8 = vsel %vm418_vm1, %v413_v6, 0.0  ;;  %v431_v11 = vsel %vm418_vm1, %v414_v9, 0.0  ;;  %v434_v12 = vsel %vm418_vm1, %v415_v10, 0.0  ;;  %v416_v13 = vld [vmem:[%s6874_s20 + $0x30] sm:$0xff]  ;;  %v417_v14 = vld [vmem:[%s6874_s20 + $0x38] sm:$0xff]  ;;  %v698_v57 = vld [vmem:[#allocation9 + $0x38] sm:$0xff] }
  0x83   : > { %v437_v15 = vsel %vm418_vm1, %v416_v13, 0.0  ;;  %v440_v16 = vsel %vm418_vm1, %v417_v14, 0.0  ;;  %v557_v58 = vld [vmem:[#allocation9 + $0x18] sm:$0xff]  ;;  %v697_v59 = vld [vmem:[#allocation9 + $0x30] sm:$0xff]  ;;  %5312 = vmatprep.subr.mxu1 %v698_v57  ;;  %v696_v61 = vld [vmem:[#allocation9 + $0x28] sm:$0xff]  ;;  %vm1430_vm4 = vcmask 1041409  }
  0x84   : > { %5292 = vmatprep.subr.mxu0 %v557_v58  ;;  %v556_v60 = vld [vmem:[#allocation9 + $0x10] sm:$0xff]  ;;  %5313 = vmatpush3.msra.mxu1 %v698_v57  ;;  %v555_v62 = vld [vmem:[#allocation9 + $0x8] sm:$0xff]  ;;  %v695_v63 = vld [vmem:[#allocation9 + $0x20] sm:$0xff]  ;;  %vm1433_vm5 = vcmask 1042434   ;;  %vm1436_vm6 = vcmask 1043459   ;;  %vm1439_vm7 = vcmask 1044484  }
  0x85   : > { %5293 = vmatpush3.msra.mxu0 %v557_v58  ;;  %5314 = vmatprep.subr.mxu1 %v697_v59  ;;  %v554_v0 = vld [vmem:[#allocation9] sm:$0xff]  ;;  %v815_v58 = vld [vmem:[#allocation9 + $0x50] sm:$0xff]  ;;  %vm1442_vm8 = vcmask 1045509   ;;  %vm1445_vm9 = vcmask 1046534   ;;  %vm1448_vm10 = vcmask 1047559   ;;  %vm1893_vm11 = vcmask 254977  }
  0x86   : > { %423 = vadd.xlane.f32.xlu0 %v422_v7  ;;  %429 = vadd.xlane.f32.xlu1 %v428_v8  ;;  %vm2367_vm12 = vcmask 256002   ;;  %vm2841_vm13 = vcmask 257027   ;;  %vm3315_vm14 = vcmask 258052   ;;  %vm3789_vm15 = vcmask 259077   ;;  %p5129_p4 = scmp.ne.s32.totalorder %s6739_s13, 1 }
  0x87   : > { %5294 = vmatprep.subr.mxu0 %v556_v60  ;;  %5315 = vmatpush3.msra.mxu1 %v697_v59  ;;  %vm4263_vm0 = vcmask 260102  }
  0x88   : > { %5295 = vmatpush3.msra.mxu0 %v556_v60  ;;  %5316 = vmatprep.subr.mxu1 %v696_v61  ;;  %v6982_v60 = vld [vmem:[#allocation11 + $0x8] sm:$0xff] }
  0x89   : > { %5296 = vmatprep.subr.mxu0 %v555_v62  ;;  %5317 = vmatpush3.msra.mxu1 %v696_v61 }
  0x8a   : > { %432 = vadd.xlane.f32.xlu0 %v431_v11  ;;  %435 = vadd.xlane.f32.xlu1 %v434_v12 }
  0x8b   : > { %5297 = vmatpush3.msra.mxu0 %v555_v62  ;;  %5318 = vmatprep.subr.mxu1 %v695_v63 }
  0x8c   : > { %5298 = vmatprep.subr.mxu0 %v554_v0  ;;  %5319 = vmatpush3.msra.mxu1 %v695_v63 }
  0x8d   : > { %5299 = vmatpush3.msra.mxu0 %v554_v0  ;;  %v814_v0 = vld [vmem:[#allocation9 + $0x48] sm:$0xff] }
  0x8e   : > { %438 = vadd.xlane.f32.xlu0 %v437_v15  ;;  %441 = vadd.xlane.f32.xlu1 %v440_v16 }
 0x10b   : > { %v421_v17 = vpop.xlane.xlu0 %420  ;;  %v427_v18 = vpop.xlane.xlu1 %426 }
 0x10c   : > { %v444_v19 = vmul.f32 0.03125, %v421_v17  ;;  %v446_v20 = vmul.f32 0.03125, %v427_v18 }
 0x10e   : > { %v6908_v21 = vsub.f32 %v410_v1, %v444_v19  ;;  %v6910_v22 = vsub.f32 %v412_v2, %v446_v20  ;;  %v8305_v1 = vmov 0.0   ;;  %v6949_v2 = vld [vmem:[#allocation9 + $0x58] sm:$0xff] }
 0x10f   : > { %v424_v23 = vpop.xlane.xlu0 %423  ;;  %v430_v24 = vpop.xlane.xlu1 %429  ;;  %5352 = vmatprep.subr.mxu1 %v8305_v1  ;;  %5332 = vmatprep.subr.mxu0 %v6949_v2 }
 0x110   : > { %v445_v25 = vmul.f32 0.03125, %v424_v23  ;;  %v447_v26 = vmul.f32 0.03125, %v430_v24  ;;  %v460_v27 = vmul.f32 %v6908_v21, %v6908_v21  ;;  %v462_v28 = vmul.f32 %v6910_v22, %v6910_v22 }
 0x112   : > { %v6916_v29 = vsub.f32 %v411_v3, %v445_v25  ;;  %v6918_v30 = vsub.f32 %v413_v6, %v447_v26  ;;  %v468_v31 = vsel %vm418_vm1, %v460_v27, 0.0  ;;  %v474_v34 = vsel %vm418_vm1, %v462_v28, 0.0 }
 0x113   : > { %469 = vadd.xlane.f32.xlu0 %v468_v31  ;;  %v433_v32 = vpop.xlane.xlu0 %432  ;;  %v436_v33 = vpop.xlane.xlu1 %435  ;;  %v4941_v31 = vld [vmem:[%s8291_s2] ss:$0 sm:$0xff] }
 0x114   : > { %v448_v35 = vmul.f32 0.03125, %v433_v32  ;;  %v449_v36 = vmul.f32 0.03125, %v436_v33  ;;  %v461_v37 = vmul.f32 %v6916_v29, %v6916_v29  ;;  %v463_v38 = vmul.f32 %v6918_v30, %v6918_v30 }
 0x116   : > { %v6926_v39 = vsub.f32 %v414_v9, %v448_v35  ;;  %v6928_v40 = vsub.f32 %v415_v10, %v449_v36  ;;  %v471_v41 = vsel %vm418_vm1, %v461_v37, 0.0  ;;  %v477_v44 = vsel %vm418_vm1, %v463_v38, 0.0 }
 0x117   : > { %475 = vadd.xlane.f32.xlu0 %v474_v34  ;;  %472 = vadd.xlane.f32.xlu1 %v471_v41  ;;  %v439_v42 = vpop.xlane.xlu0 %438  ;;  %v442_v43 = vpop.xlane.xlu1 %441  ;;  %v4942_v34 = vld [vmem:[#allocation8] ss:$0 sm:$0xff] }
 0x118   : > { %v450_v45 = vmul.f32 0.03125, %v439_v42  ;;  %v451_v46 = vmul.f32 0.03125, %v442_v43  ;;  %v464_v47 = vmul.f32 %v6926_v39, %v6926_v39  ;;  %v465_v48 = vmul.f32 %v6928_v40, %v6928_v40 }
 0x11a   : > { %v6936_v49 = vsub.f32 %v416_v13, %v450_v45  ;;  %v6938_v50 = vsub.f32 %v417_v14, %v451_v46  ;;  %v480_v51 = vsel %vm418_vm1, %v464_v47, 0.0  ;;  %v483_v52 = vsel %vm418_vm1, %v465_v48, 0.0 }
 0x11b   : > { %478 = vadd.xlane.f32.xlu1 %v477_v44  ;;  %481 = vadd.xlane.f32.xlu0 %v480_v51 }
 0x11c   : > { %v466_v53 = vmul.f32 %v6936_v49, %v6936_v49  ;;  %v467_v54 = vmul.f32 %v6938_v50, %v6938_v50 }
 0x11e   : > { %v486_v55 = vsel %vm418_vm1, %v466_v53, 0.0  ;;  %v489_v56 = vsel %vm418_vm1, %v467_v54, 0.0 }
 0x11f   : > { %484 = vadd.xlane.f32.xlu1 %v483_v52  ;;  %487 = vadd.xlane.f32.xlu0 %v486_v55 }
 0x123   : > { %490 = vadd.xlane.f32.xlu1 %v489_v56 }
 0x19c   : > { %v470_v3 = vpop.xlane.xlu0 %469 }
 0x19d   : > { %v492_v4 = vmul.f32 0.03125, %v470_v3  ;;  %v6991_v3 = vld [vmem:[#allocation11] sm:$0xff] }
 0x19f   : > { %v500_v5 = vadd.f32 1e-05, %v492_v4 }
 0x1a0   : > { %v473_v6 = vpop.xlane.xlu1 %472  ;;  %v476_v7 = vpop.xlane.xlu0 %475 }
 0x1a1   : > { %5718 = vrsqrt.f32 %v500_v5  ;;  %v493_v8 = vmul.f32 0.03125, %v473_v6  ;;  %v494_v9 = vmul.f32 0.03125, %v476_v7  ;;  %v7000_v5 = vld [vmem:[#allocation2] sm:$0xff]  ;;  %v7004_v6 = vld [vmem:[#allocation11 + $0x38] sm:$0xff] }
 0x1a2   : > { %v7011_v7 = vld [vmem:[#allocation11 + $0x30] sm:$0xff] }
 0x1a3   : > { %v501_v10 = vadd.f32 1e-05, %v493_v8  ;;  %v502_v11 = vadd.f32 1e-05, %v494_v9  ;;  %v7013_v8 = vld [vmem:[#allocation11 + $0x58] sm:$0xff]  ;;  %v7019_v9 = vld [vmem:[#allocation11 + $0x28] sm:$0xff] }
 0x1a4   : > { %v479_v12 = vpop.xlane.xlu1 %478  ;;  %v482_v13 = vpop.xlane.xlu0 %481 }
 0x1a5   : > { %5720 = vrsqrt.f32 %v501_v10  ;;  %v495_v14 = vmul.f32 0.03125, %v479_v12  ;;  %v496_v15 = vmul.f32 0.03125, %v482_v13  ;;  %v7027_v10 = vld [vmem:[#allocation11 + $0x20] sm:$0xff]  ;;  %v7037_v12 = vld [vmem:[#allocation11 + $0x48] sm:$0xff] }
 0x1a6   : > { %5722 = vrsqrt.f32 %v502_v11  ;;  %v7029_v11 = vld [vmem:[#allocation11 + $0x50] sm:$0xff]  ;;  %v7045_v13 = vld [vmem:[#allocation11 + $0x40] sm:$0xff] }
 0x1a7   : > { %v503_v16 = vadd.f32 1e-05, %v495_v14  ;;  %v504_v17 = vadd.f32 1e-05, %v496_v15 }
 0x1a8   : > { %v485_v18 = vpop.xlane.xlu1 %484  ;;  %v488_v19 = vpop.xlane.xlu0 %487 }
 0x1a9   : > { %5724 = vrsqrt.f32 %v503_v16  ;;  %v497_v20 = vmul.f32 0.03125, %v485_v18  ;;  %v498_v23 = vmul.f32 0.03125, %v488_v19 }
 0x1aa   : > { %5726 = vrsqrt.f32 %v504_v17 }
 0x1ab   : > { %v505_v24 = vadd.f32 1e-05, %v497_v20  ;;  %v506_v25 = vadd.f32 1e-05, %v498_v23 }
 0x1ac   : > { %v491_v26 = vpop.xlane.xlu1 %490 }
 0x1ad   : > { %5728 = vrsqrt.f32 %v505_v24  ;;  %v499_v27 = vmul.f32 0.03125, %v491_v26 }
 0x1ae   : > { %v5719_v28 = vpop.eup %5718  ;;  %5730 = vrsqrt.f32 %v506_v25 }
 0x1af   : > { %v507_v32 = vadd.f32 1e-05, %v499_v27  ;;  %v516_v33 = vmul.f32 %v5719_v28, %v6908_v21  ;;  %v6960_v21 = vld [vmem:[#allocation11 + $0x18] sm:$0xff] }
 0x1b1   : > { %5732 = vrsqrt.f32 %v507_v32  ;;  %v531_v35 = vmul.f32 %v4941_v31, %v516_v33  ;;  %v4943_v32 = vld [vmem:[%s8295_s6] ss:$0 sm:$0xff] }
 0x1b2   : > { %v5721_v36 = vpop.eup %5720 }
 0x1b3   : > { %v5723_v37 = vpop.eup %5722  ;;  %v546_v38 = vadd.f32 %v4942_v34, %v531_v35  ;;  %v517_v41 = vmul.f32 %v5721_v36, %v6916_v29  ;;  %v6968_v29 = vld [vmem:[#allocation11 + $0x10] sm:$0xff]  ;;  %v7090_v35 = vld [vmem:[%s8296_s7] ss:$0 sm:$0xff] }
 0x1b4   : > { %v518_v42 = vmul.f32 %v5723_v37, %v6910_v22 }
 0x1b5   : > { %5300 = vmatprep.mubr.msk.f32.mxu0 %vm418_vm1, %v546_v38  ;;  %5320 = vmatprep.mubr.msk.f32.mxu1 %vm418_vm1, %v546_v38  ;;  %v532_v43 = vmul.f32 %v4941_v31, %v517_v41 }
 0x1b6   : > { %v5725_v44 = vpop.eup %5724  ;;  %v533_v45 = vmul.f32 %v4941_v31, %v518_v42 }
 0x1b7   : > { %v5727_v46 = vpop.eup %5726  ;;  %v547_v47 = vadd.f32 %v4942_v34, %v532_v43  ;;  %v519_v48 = vmul.f32 %v5725_v44, %v6918_v30 }
 0x1b8   : > { %v6963_v51 = vadd.f32 %v4942_v34, %v533_v45  ;;  %v520_v52 = vmul.f32 %v5727_v46, %v6926_v39 }
 0x1b9   : > { %5301 = vmatmul.mubr.msk.f32.vlgmr.msra.gmra.mxu0 %vm418_vm1, %v547_v47  ;;  %5321 = vmatmul.mubr.msk.f32.vlgmr.msra.gmra.mxu1 %vm418_vm1, %v547_v47  ;;  %v534_v22 = vmul.f32 %v4941_v31, %v519_v48 }
 0x1ba   : > { %v5729_v53 = vpop.eup %5728  ;;  %5353 = vmatpush3.msra.mxu1 %v6960_v21  ;;  %5303 = vmatprep.mubr.msk.f32.mxu0 %vm418_vm1, %v6963_v51  ;;  %v535_v54 = vmul.f32 %v4941_v31, %v520_v52 }
 0x1bb   : > { %v5731_v55 = vpop.eup %5730  ;;  %5323 = vmatprep.mubr.msk.f32.mxu1 %vm418_vm1, %v6963_v51  ;;  %5354 = vmatprep.subr.mxu1 %v8305_v1  ;;  %v549_v30 = vadd.f32 %v4942_v34, %v534_v22  ;;  %v521_v39 = vmul.f32 %v5729_v53, %v6928_v40 }
 0x1bc   : > { %5355 = vmatpush3.msra.mxu1 %v6968_v29  ;;  %v550_v56 = vadd.f32 %v4942_v34, %v535_v54  ;;  %v522_v57 = vmul.f32 %v5731_v55, %v6936_v49  ;;  %5333 = vmatpush3.msra.mxu0 %v6949_v2 }
 0x1bd   : > { %5304 = vmatmul.mubr.msk.f32.gmra.mxu0 %vm418_vm1, %v549_v30  ;;  %5324 = vmatmul.mubr.msk.f32.gmra.mxu1 %vm418_vm1, %v549_v30  ;;  %v536_v59 = vmul.f32 %v4941_v31, %v521_v39 }
 0x1be   : > { %v5733_v61 = vpop.eup %5732  ;;  %5306 = vmatprep.mubr.msk.f32.mxu0 %vm418_vm1, %v550_v56  ;;  %5326 = vmatprep.mubr.msk.f32.mxu1 %vm418_vm1, %v550_v56  ;;  %v537_v40 = vmul.f32 %v4941_v31, %v522_v57 }
 0x1bf   : > { %5356 = vmatprep.subr.mxu1 %v8305_v1  ;;  %v551_v62 = vadd.f32 %v4942_v34, %v536_v59  ;;  %5334 = vmatprep.subr.mxu0 %v815_v58  ;;  %v523_v49 = vmul.f32 %v5733_v61, %v6938_v50  ;;  %v813_v50 = vld [vmem:[#allocation9 + $0x40] sm:$0xff] }
 0x1c0   : > { %5357 = vmatpush3.msra.mxu1 %v6982_v60  ;;  %v552_v63 = vadd.f32 %v4942_v34, %v537_v40  ;;  %5335 = vmatpush3.msra.mxu0 %v815_v58 }
 0x1c1   : > { %5307 = vmatmul.mubr.msk.f32.gmra.mxu0 %vm418_vm1, %v551_v62  ;;  %5327 = vmatmul.mubr.msk.f32.gmra.mxu1 %vm418_vm1, %v551_v62  ;;  %v538_v2 = vmul.f32 %v4941_v31, %v523_v49  ;;  %v7123_v49 = vld [vmem:[%s8295_s6 + $0x1] ss:$0 sm:$0xff] }
 0x1c2   : > { %5309 = vmatprep.mubr.msk.f32.mxu0 %vm418_vm1, %v552_v63  ;;  %5329 = vmatprep.mubr.msk.f32.mxu1 %vm418_vm1, %v552_v63 }
 0x1c3   : > { %5358 = vmatprep.subr.mxu1 %v8305_v1  ;;  %v553_v4 = vadd.f32 %v4942_v34, %v538_v2  ;;  %5336 = vmatprep.subr.mxu0 %v814_v0 }
 0x1c4   : > { %5359 = vmatpush3.msra.mxu1 %v6991_v3  ;;  %5337 = vmatpush3.msra.mxu0 %v814_v0 }
 0x1c5   : > { %5310 = vmatmul.mubr.msk.f32.gmra.mxu0 %vm418_vm1, %v553_v4  ;;  %5330 = vmatmul.mubr.msk.f32.gmra.mxu1 %vm418_vm1, %v553_v4 }
 0x1c6   : > { %5340 = vmatprep.mubr.msk.f32.mxu0 %vm418_vm1, %v546_v38  ;;  %5338 = vmatprep.subr.mxu0 %v813_v50 }
 0x1c7   : > { %5339 = vmatpush3.msra.mxu0 %v813_v50  ;;  %5360 = vmatprep.mubr.msk.f32.mxu1 %vm6662_vm2, %v8305_v1  ;;  %v7132_v50 = vld [vmem:[%s8296_s7 + $0x1] ss:$0 sm:$0xff] }
 0x1c8   : > { %5363 = vmatprep.subr.mxu1 %v8305_v1  ;;  %5374 = vmatprep.subr.mxu0 %v8305_v1 }
 0x1c9   : > { %5341 = vmatmul.mubr.msk.f32.vlgmr.msra.gmra.mxu0 %vm418_vm1, %v547_v47  ;;  %5361 = vmatmul.mubr.msk.f32.vlgmr.msra.gmra.mxu1 %vm418_vm1, %v7000_v5 }
 0x1ca   : > { %5364 = vmatpush3.msra.mxu1 %v7004_v6  ;;  %5343 = vmatprep.mubr.msk.f32.mxu0 %vm418_vm1, %v6963_v51 }
 0x1cb   : > { %5365 = vmatprep.subr.mxu1 %v8305_v1  ;;  %5371 = vmatprep.mubr.msk.f32.mxu1 %vm6662_vm2, %v8305_v1 }
 0x1cc   : > { %5366 = vmatpush3.msra.mxu1 %v7011_v7  ;;  %5375 = vmatpush3.msra.mxu0 %v7013_v8 }
 0x1cd   : > { %5367 = vmatprep.subr.mxu1 %v8305_v1  ;;  %5344 = vmatmul.mubr.msk.f32.gmra.mxu0 %vm418_vm1, %v549_v30 }
 0x1ce   : > { %5368 = vmatpush3.msra.mxu1 %v7019_v9  ;;  %5346 = vmatprep.mubr.msk.f32.mxu0 %vm418_vm1, %v550_v56 }
 0x1cf   : > { %5369 = vmatprep.subr.mxu1 %v8305_v1  ;;  %5376 = vmatprep.subr.mxu0 %v8305_v1 }
 0x1d0   : > { %5370 = vmatpush3.msra.mxu1 %v7027_v10  ;;  %5377 = vmatpush3.msra.mxu0 %v7029_v11 }
 0x1d1   : > { %5372 = vmatmul.mubr.msk.f32.vlgmr.msra.gmra.mxu1 %vm418_vm1, %v7000_v5  ;;  %5347 = vmatmul.mubr.msk.f32.gmra.mxu0 %vm418_vm1, %v551_v62 }
 0x1d2   : > { %5349 = vmatprep.mubr.msk.f32.mxu0 %vm418_vm1, %v552_v63  ;;  %5378 = vmatprep.subr.mxu0 %v8305_v1 }
 0x1d3   : > { %5379 = vmatpush3.msra.mxu0 %v7037_v12  ;;  %5385 = vmatprep.subr.mxu1 %v8305_v1 }
 0x1d4   : > { %5380 = vmatprep.subr.mxu0 %v8305_v1  ;;  %5386 = vmatpush3.msra.mxu1 %v6960_v21 }
 0x1d5   : > { %5350 = vmatmul.mubr.msk.f32.gmra.mxu0 %vm418_vm1, %v553_v4  ;;  %5387 = vmatprep.subr.mxu1 %v8305_v1 }
 0x1d6   : > { %5381 = vmatpush3.msra.mxu0 %v7045_v13  ;;  %5382 = vmatprep.mubr.msk.f32.mxu0 %vm6662_vm2, %v8305_v1 }
 0x1d7   : > { %5396 = vmatprep.subr.mxu0 %v8305_v1  ;;  %5388 = vmatpush3.msra.mxu1 %v6968_v29 }
 0x1d8   : > { %5389 = vmatprep.subr.mxu1 %v8305_v1  ;;  %5393 = vmatprep.mubr.msk.f32.mxu1 %vm6662_vm2, %v8305_v1 }
 0x1d9   : > { %5383 = vmatmul.mubr.msk.f32.vlgmr.msra.gmra.mxu0 %vm418_vm1, %v7000_v5  ;;  %5390 = vmatpush3.msra.mxu1 %v6982_v60 }
 0x1da   : > { %5397 = vmatpush3.msra.mxu0 %v7004_v6  ;;  %5391 = vmatprep.subr.mxu1 %v8305_v1 }
 0x1db   : > { %5398 = vmatprep.subr.mxu0 %v8305_v1  ;;  %5392 = vmatpush3.msra.mxu1 %v6991_v3 }
 0x1dc   : > { %5399 = vmatpush3.msra.mxu0 %v7011_v7  ;;  %5404 = vmatprep.mubr.msk.f32.mxu0 %vm6662_vm2, %v8305_v1 }
 0x1dd   : > { %5400 = vmatprep.subr.mxu0 %v8305_v1  ;;  %5407 = vmatprep.subr.mxu1 %v8305_v1 }
 0x1de   : > { %5401 = vmatpush3.msra.mxu0 %v7019_v9 }
 0x1df   : > { %5402 = vmatprep.subr.mxu0 %v8305_v1 }
 0x1e0   : > { %5403 = vmatpush3.msra.mxu0 %v7027_v10 }
 0x1e1   : > { %5418 = vmatprep.subr.mxu0 %v8305_v1 }
 0x279   : > { %v5302_v14 = vpop.f32.mrf.mxu0  ;;  %v5322_v15 = vpop.f32.mrf.mxu1 }
 0x27a   : > { %v7092_v36 = vadd.f32 %v5302_v14, %v4943_v32 }
 0x27b   : > { %v655_v16 = vpop.f32.mrf.mxu0  ;;  %v773_v17 = vpop.f32.mrf.mxu1 }
 0x27c   : > { %8379 = vst [vmem:[#allocation20_spill] sm:$0xff] %v7092_v36  ;;  %v7096_v41 = vadd.f32 %v4943_v32, %v655_v16 }
 0x27d   : > { %v5305_v18 = vpop.f32.mrf.mxu0  ;;  %v5325_v19 = vpop.f32.mrf.mxu1 }
 0x27e   : > { %v7098_v42 = vadd.f32 %v5305_v18, %v4943_v32 }
 0x27f   : > { %v665_v20 = vpop.f32.mrf.mxu0  ;;  %v783_v23 = vpop.f32.mrf.mxu1 }
 0x280   : > { %v7100_v43 = vadd.f32 %v4943_v32, %v665_v20 }
 0x281   : > { %v5308_v24 = vpop.f32.mrf.mxu0  ;;  %v7076_v25 = vpop.f32.mrf.mxu1 }
 0x282   : > { %8380 = vst [vmem:[#allocation21_spill] sm:$0xff] %v7100_v43  ;;  %v7103_v45 = vadd.f32 %v5308_v24, %v4943_v32 }
 0x283   : > { %v675_v26 = vpop.f32.mrf.mxu0  ;;  %v7078_v27 = vpop.f32.mrf.mxu1 }
 0x284   : > { %v7105_v46 = vadd.f32 %v4943_v32, %v675_v26 }
 0x285   : > { %v5311_v28 = vpop.f32.mrf.mxu0  ;;  %v7080_v31 = vpop.f32.mrf.mxu1 }
 0x286   : > { %8381 = vst [vmem:[#allocation22_spill] sm:$0xff] %v7105_v46  ;;  %v7107_v47 = vadd.f32 %v5311_v28, %v4943_v32 }
 0x287   : > { %v685_v33 = vpop.f32.mrf.mxu0  ;;  %v7085_v34 = vpop.f32.mrf.mxu1 }
 0x288   : > { %v7109_v48 = vadd.f32 %v4943_v32, %v685_v33  ;;  %v7138_v32 = vadd.f32 %v5322_v15, %v7123_v49 }
 0x289   : > { %v7094_v37 = vpop.f32.mrf.mxu0  ;;  %v1025_v38 = vpop.f32.mrf.mxu1 }
 0x28a   : > { %v1026_v44 = vadd.f32 %v7090_v35, %v1025_v38  ;;  %8382 = vst [vmem:[#allocation23_spill] sm:$0xff] %v7109_v48  ;;  %v7141_v38 = vadd.f32 %v7123_v49, %v773_v17 }
 0x28b   : > { %v7111_v51 = vpop.f32.mrf.mxu0  ;;  %v5362_v52 = vpop.f32.mrf.mxu1 }
 0x28c   : > { %v1182_v22 = vrot.slane %v1026_v44, 1  ;;  %v1183_v53 = vrot.slane %v1026_v44, 2  ;;  %v1184_v54 = vrot.slane %v1026_v44, 3  ;;  %v1185_v55 = vrot.slane %v1026_v44, 4 }
 0x28d   : > { %v1186_v30 = vrot.slane %v1026_v44, 5  ;;  %v1187_v39 = vrot.slane %v1026_v44, 6  ;;  %v1188_v56 = vrot.slane %v1026_v44, 7  ;;  %v1197_v57 = vadd.f32 %v1026_v44, %v7096_v41  ;;  %v7114_v58 = vpop.f32.mrf.mxu0 }
 0x28e   : > { %v1198_v59 = vadd.f32 %v1182_v22, %v7092_v36  ;;  %v1199_v61 = vadd.f32 %v1183_v53, %v7100_v43  ;;  %v1200_v40 = vadd.f32 %v1184_v54, %v7098_v42  ;;  %v1201_v62 = vadd.f32 %v1185_v55, %v7105_v46 }
 0x28f   : > { %v1202_v63 = vadd.f32 %v1186_v30, %v7103_v45  ;;  %v1203_v0 = vadd.f32 %v1187_v39, %v7109_v48  ;;  %v4980_v2 = vmul.f32 -1.442695, %v1197_v57  ;;  %v7127_v4 = vpop.f32.mrf.mxu0  ;;  %v1204_v14 = vadd.f32 %v1188_v56, %v7107_v47 }
 0x290   : > { %v4981_v16 = vmul.f32 -1.442695, %v1198_v59  ;;  %v4982_v18 = vmul.f32 -1.442695, %v1199_v61  ;;  %v4983_v20 = vmul.f32 -1.442695, %v1200_v40  ;;  %v7147_v54 = vadd.f32 %v5325_v19, %v7123_v49 }
 0x291   : > { %5734 = vpow2.f32 %v4980_v2  ;;  %v4984_v24 = vmul.f32 -1.442695, %v1201_v62  ;;  %v1101_v26 = vpop.f32.mrf.mxu1  ;;  %v7135_v28 = vpop.f32.mrf.mxu0  ;;  %v4985_v33 = vmul.f32 -1.442695, %v1202_v63  ;;  %v4986_v44 = vmul.f32 -1.442695, %v1203_v0 }
 0x292   : > { %5736 = vpow2.f32 %v4981_v16  ;;  %v1102_v52 = vadd.f32 %v7132_v50, %v1101_v26  ;;  %v7150_v55 = vadd.f32 %v7123_v49, %v783_v23  ;;  %v4987_v15 = vmul.f32 -1.442695, %v1204_v14 }
 0x293   : > { %5738 = vpow2.f32 %v4982_v18  ;;  %v7144_v22 = vpop.f32.mrf.mxu0  ;;  %v5373_v53 = vpop.f32.mrf.mxu1  ;;  %v7156_v57 = vadd.f32 %v7123_v49, %v7078_v27  ;;  %v7160_v19 = vadd.f32 %v7076_v25, %v7123_v49 }
 0x294   : > { %5740 = vpow2.f32 %v4983_v20  ;;  %v1254_v30 = vrot.slane %v1102_v52, 1  ;;  %v1255_v39 = vrot.slane %v1102_v52, 2  ;;  %v1256_v17 = vrot.slane %v1102_v52, 3 }
 0x295   : > { %5742 = vpow2.f32 %v4984_v24  ;;  %v7152_v56 = vpop.f32.mrf.mxu0  ;;  %v1257_v59 = vrot.slane %v1102_v52, 4  ;;  %v1258_v61 = vrot.slane %v1102_v52, 5  ;;  %v1269_v23 = vadd.f32 %v1102_v52, %v7141_v38 }
 0x296   : > { %5744 = vpow2.f32 %v4985_v33  ;;  %v1270_v40 = vadd.f32 %v1254_v30, %v7138_v32  ;;  %v1271_v63 = vadd.f32 %v1255_v39, %v7150_v55  ;;  %v1272_v27 = vadd.f32 %v1256_v17, %v7147_v54 }
 0x297   : > { %5746 = vpow2.f32 %v4986_v44  ;;  %v7164_v62 = vpop.f32.mrf.mxu0  ;;  %v1273_v0 = vadd.f32 %v1257_v59, %v7156_v57  ;;  %v1274_v2 = vadd.f32 %v1258_v61, %v7160_v19  ;;  %v4988_v14 = vmul.f32 -1.442695, %v1269_v23 }
 0x298   : > { %5748 = vpow2.f32 %v4987_v15  ;;  %v4989_v25 = vmul.f32 -1.442695, %v1270_v40  ;;  %v4990_v18 = vmul.f32 -1.442695, %v1271_v63  ;;  %v4991_v20 = vmul.f32 -1.442695, %v1272_v27 }
 0x299   : > { %v1177_v16 = vpop.f32.mrf.mxu0  ;;  %5750 = vpow2.f32 %v4988_v14  ;;  %v4992_v24 = vmul.f32 -1.442695, %v1273_v0  ;;  %v4993_v33 = vmul.f32 -1.442695, %v1274_v2  ;;  %v1259_v44 = vrot.slane %v1102_v52, 6 }
 0x29a   : > { %5752 = vpow2.f32 %v4989_v25  ;;  %v1260_v15 = vrot.slane %v1102_v52, 7  ;;  %v7172_v39 = vadd.f32 %v7123_v49, %v7085_v34  ;;  %v7176_v61 = vadd.f32 %v7080_v31, %v7123_v49 }
 0x29b   : > { %v5384_v26 = vpop.f32.mrf.mxu0  ;;  %5754 = vpow2.f32 %v4990_v18 }
 0x29c   : > { %5756 = vpow2.f32 %v4991_v20  ;;  %v1275_v52 = vadd.f32 %v1259_v44, %v7172_v39  ;;  %v1276_v34 = vadd.f32 %v1260_v15, %v7176_v61 }
 0x29d   : > { %5758 = vpow2.f32 %v4992_v24  ;;  %v7183_v24 = vld [vmem:[%s8296_s7 + $0x2] ss:$0 sm:$0xff] }
 0x29e   : > { %v5735_v53 = vpop.eup %5734  ;;  %5760 = vpow2.f32 %v4993_v33  ;;  %v4994_v20 = vmul.f32 -1.442695, %v1275_v52  ;;  %8383 = vst [vmem:[#allocation24_spill] sm:$0xff] %v7183_v24  ;;  %v4995_v33 = vmul.f32 -1.442695, %v1276_v34 }
 0x29f   : > { %v5737_v30 = vpop.eup %5736  ;;  %v1229_v17 = vadd.f32 1.0, %v5735_v53  ;;  %v1178_v53 = vadd.f32 %v7183_v24, %v1177_v16 }
 0x2a0   : > { %v5739_v59 = vpop.eup %5738  ;;  %v1230_v23 = vadd.f32 1.0, %v5737_v30 }
 0x2a1   : > { %v5741_v40 = vpop.eup %5740  ;;  %v1231_v63 = vadd.f32 1.0, %v5739_v59  ;;  %5762 = vrcp.f32 %v1229_v17  ;;  %v4963_v59 = vld [vmem:[%s8295_s6 + $0x2] ss:$0 sm:$0xff]  ;;  %v1327_v16 = vrot.slane %v1178_v53, 2  ;;  %v1332_v1 = vrot.slane %v1178_v53, 7 }
 0x2a2   : > { %v5743_v27 = vpop.eup %5742  ;;  %v1232_v0 = vadd.f32 1.0, %v5741_v40  ;;  %5764 = vrcp.f32 %v1230_v23  ;;  %v7204_v24 = vadd.f32 %v4963_v59, %v7144_v22 }
 0x2a3   : > { %v5745_v2 = vpop.eup %5744  ;;  %v1233_v14 = vadd.f32 1.0, %v5743_v27  ;;  %5766 = vrcp.f32 %v1231_v63 }
 0x2a4   : > { %v5747_v25 = vpop.eup %5746  ;;  %v1234_v18 = vadd.f32 1.0, %v5745_v2  ;;  %5768 = vrcp.f32 %v1232_v0  ;;  %v1326_v0 = vrot.slane %v1178_v53, 1  ;;  %v7190_v2 = vadd.f32 %v7094_v37, %v4963_v59  ;;  %8387 = vst [vmem:[#allocation28_spill] sm:$0xff] %v7204_v24 }
 0x2a5   : > { %v5749_v31 = vpop.eup %5748  ;;  %v1235_v49 = vadd.f32 1.0, %v5747_v25  ;;  %5770 = vrcp.f32 %v1233_v14  ;;  %v7199_v37 = vadd.f32 %v4963_v59, %v7127_v4 }
 0x2a6   : > { %v1236_v26 = vadd.f32 1.0, %v5749_v31  ;;  %5772 = vrcp.f32 %v1234_v18  ;;  %v5751_v44 = vpop.eup %5750  ;;  %v7193_v18 = vadd.f32 %v4963_v59, %v7111_v51  ;;  %v1328_v31 = vrot.slane %v1178_v53, 3 }
 0x2a7   : > { %5774 = vrcp.f32 %v1235_v49  ;;  %v5753_v15 = vpop.eup %5752  ;;  %v1301_v30 = vadd.f32 1.0, %v5751_v44  ;;  %8386 = vst [vmem:[#allocation27_spill] sm:$0xff] %v7199_v37  ;;  %v1331_v51 = vrot.slane %v1178_v53, 6 }
 0x2a8   : > { %5776 = vrcp.f32 %v1236_v26  ;;  %v5755_v17 = vpop.eup %5754  ;;  %v1302_v23 = vadd.f32 1.0, %v5753_v15  ;;  %8384 = vst [vmem:[#allocation25_spill] sm:$0xff] %v7193_v18  ;;  %v7196_v26 = vadd.f32 %v7114_v58, %v4963_v59 }
 0x2a9   : > { %5778 = vpow2.f32 %v4994_v20  ;;  %v5757_v40 = vpop.eup %5756  ;;  %v1303_v63 = vadd.f32 1.0, %v5755_v17 }
 0x2aa   : > { %5780 = vpow2.f32 %v4995_v33  ;;  %v5759_v52 = vpop.eup %5758  ;;  %v1304_v27 = vadd.f32 1.0, %v5757_v40  ;;  %8385 = vst [vmem:[#allocation26_spill] sm:$0xff] %v7196_v26  ;;  %v1329_v33 = vrot.slane %v1178_v53, 4 }
 0x2ab   : > { %v5761_v34 = vpop.eup %5760  ;;  %5782 = vrcp.f32 %v1301_v30  ;;  %v1305_v14 = vadd.f32 1.0, %v5759_v52  ;;  %v1330_v30 = vrot.slane %v1178_v53, 5 }
 0x2ac   : > { %5784 = vrcp.f32 %v1302_v23  ;;  %v1306_v49 = vadd.f32 1.0, %v5761_v34 }
 0x2ad   : > { %5786 = vrcp.f32 %v1303_v63 }
 0x2ae   : > { %v5763_v25 = vpop.eup %5762  ;;  %5788 = vrcp.f32 %v1304_v27 }
 0x2af   : > { %v5765_v20 = vpop.eup %5764  ;;  %v1341_v44 = vmul.f32 %v5763_v25, %v1178_v53  ;;  %5790 = vrcp.f32 %v1305_v14 }
 0x2b0   : > { %v5767_v15 = vpop.eup %5766  ;;  %v1342_v17 = vmul.f32 %v5765_v20, %v1326_v0  ;;  %5792 = vrcp.f32 %v1306_v49 }
 0x2b1   : > { %v5769_v40 = vpop.eup %5768  ;;  %v1343_v52 = vmul.f32 %v5767_v15, %v1327_v16  ;;  %v1349_v23 = vadd.f32 %v1341_v44, %v7193_v18  ;;  %v7208_v16 = vadd.f32 %v7135_v28, %v4963_v59  ;;  %v7216_v44 = vadd.f32 %v7152_v56, %v4963_v59 }
 0x2b2   : > { %v5771_v34 = vpop.eup %5770  ;;  %v1344_v58 = vmul.f32 %v5769_v40, %v1328_v31  ;;  %v1350_v63 = vadd.f32 %v1342_v17, %v7190_v2  ;;  %v7212_v31 = vadd.f32 %v4963_v59, %v7164_v62 }
 0x2b3   : > { %v5773_v25 = vpop.eup %5772  ;;  %v1345_v4 = vmul.f32 %v5771_v34, %v1329_v33  ;;  %v1351_v27 = vadd.f32 %v1343_v52, %v7199_v37  ;;  %5794 = vtanh.f32 %v1349_v23  ;;  %8388 = vst [vmem:[#allocation29_spill] sm:$0xff] %v7208_v16  ;;  %8390 = vst [vmem:[#allocation31_spill] sm:$0xff] %v7216_v44  ;;  %v1381_v34 = vrot.slane %v7000_v5, 1 }
 0x2b4   : > { %v5775_v0 = vpop.eup %5774  ;;  %v1346_v20 = vmul.f32 %v5773_v25, %v1330_v30  ;;  %v1352_v14 = vadd.f32 %v1344_v58, %v7196_v26  ;;  %5796 = vtanh.f32 %v1350_v63  ;;  %8389 = vst [vmem:[#allocation30_spill] sm:$0xff] %v7212_v31  ;;  %v1382_v25 = vrot.slane %v7000_v5, 2 }
 0x2b5   : > { %v5777_v53 = vpop.eup %5776  ;;  %v1347_v49 = vmul.f32 %v5775_v0, %v1331_v51  ;;  %v1353_v22 = vadd.f32 %v1345_v4, %v7204_v24  ;;  %5798 = vtanh.f32 %v1351_v27  ;;  %v1383_v4 = vrot.slane %v7000_v5, 3 }
 0x2b6   : > { %v5779_v33 = vpop.eup %5778  ;;  %5800 = vtanh.f32 %v1352_v14  ;;  %v1348_v15 = vmul.f32 %v5777_v53, %v1332_v1  ;;  %v1354_v28 = vadd.f32 %v1346_v20, %v7208_v16  ;;  %v1384_v27 = vrot.slane %v7000_v5, 4 }
 0x2b7   : > { %v5781_v30 = vpop.eup %5780  ;;  %5802 = vtanh.f32 %v1353_v22  ;;  %v1307_v17 = vadd.f32 1.0, %v5779_v33  ;;  %v1355_v40 = vadd.f32 %v1347_v49, %v7212_v31  ;;  %v1385_v14 = vrot.slane %v7000_v5, 5 }
 0x2b8   : > { %v1308_v52 = vadd.f32 1.0, %v5781_v30  ;;  %v1356_v62 = vadd.f32 %v1348_v15, %v7216_v44  ;;  %5804 = vtanh.f32 %v1354_v28  ;;  %v5783_v51 = vpop.eup %5782  ;;  %v1386_v53 = vrot.slane %v7000_v5, 6 }
 0x2b9   : > { %5806 = vrcp.f32 %v1307_v17  ;;  %v5785_v23 = vpop.eup %5784  ;;  %v1365_v63 = vsub.f32 1.0, %v5783_v51  ;;  %v1387_v49 = vrot.slane %v7000_v5, 7  ;;  %v1396_v28 = vmul.f32 %v5783_v51, %v7000_v5 }
 0x2ba   : > { %5808 = vrcp.f32 %v1308_v52  ;;  %v5787_v56 = vpop.eup %5786  ;;  %v1366_v20 = vsub.f32 1.0, %v5785_v23  ;;  %v1397_v52 = vmul.f32 %v5785_v23, %v1381_v34 }
 0x2bb   : > { %5810 = vtanh.f32 %v1355_v40  ;;  %v5789_v59 = vpop.eup %5788  ;;  %v1367_v33 = vsub.f32 1.0, %v5787_v56  ;;  %v1398_v16 = vmul.f32 %v5787_v56, %v1382_v25 }
 0x2bc   : > { %5812 = vtanh.f32 %v1356_v62  ;;  %v5791_v1 = vpop.eup %5790  ;;  %v1368_v17 = vsub.f32 1.0, %v5789_v59 }
 0x2bd   : > { %v5793_v58 = vpop.eup %5792  ;;  %v1369_v44 = vsub.f32 1.0, %v5791_v1 }
 0x2be   : > { %v1370_v37 = vsub.f32 1.0, %v5793_v58  ;;  %v1401_v25 = vmul.f32 %v5793_v58, %v1385_v14 }
 0x2c0   : > { %v5795_v0 = vpop.eup %5794 }
 0x2c1   : > { %v5797_v22 = vpop.eup %5796  ;;  %v1373_v15 = vmul.f32 %v5795_v0, %v1365_v63  ;;  %v1399_v63 = vmul.f32 %v5789_v59, %v1383_v4 }
 0x2c2   : > { %v5799_v30 = vpop.eup %5798  ;;  %v1374_v40 = vmul.f32 %v5797_v22, %v1366_v20  ;;  %v1400_v20 = vmul.f32 %v5791_v1, %v1384_v27 }
 0x2c3   : > { %v5801_v62 = vpop.eup %5800  ;;  %v1375_v31 = vmul.f32 %v5799_v30, %v1367_v33  ;;  %v7229_v24 = vadd.f32 %v1396_v28, %v1373_v15 }
 0x2c4   : > { %v5803_v26 = vpop.eup %5802  ;;  %v1376_v18 = vmul.f32 %v5801_v62, %v1368_v17  ;;  %v7231_v0 = vadd.f32 %v1397_v52, %v1374_v40 }
 0x2c5   : > { %v5805_v5 = vpop.eup %5804  ;;  %v1377_v51 = vmul.f32 %v5803_v26, %v1369_v44  ;;  %v7233_v23 = vadd.f32 %v1398_v16, %v1375_v31  ;;  %1413 = vst.msk [vmem:[%s6888_s17] sm:$0x1] %vm1412_vm3, %v7229_v24 }
 0x2c6   : > { %v5807_v56 = vpop.eup %5806  ;;  %v1378_v34 = vmul.f32 %v5805_v5, %v1370_v37  ;;  %v7238_v22 = vadd.f32 %v1399_v63, %v1376_v18  ;;  %1414 = vst.msk [vmem:[%s6888_s17 + $0x8] sm:$0x1] %vm1412_vm3, %v7231_v0  ;;  %v1429_v59 = vrot.slane %v7231_v0, 7 }
 0x2c7   : > { %v5809_v26 = vpop.eup %5808  ;;  %v1371_v44 = vsub.f32 1.0, %v5807_v56  ;;  %v7244_v16 = vadd.f32 %v1400_v20, %v1377_v51  ;;  %1415 = vst.msk [vmem:[%s6888_s17 + $0x10] sm:$0x1] %vm1412_vm3, %v7233_v23  ;;  %v1432_v31 = vrot.slane %v7233_v23, 6  ;;  %v1402_v14 = vmul.f32 %v5807_v56, %v1386_v53 }
 0x2c8   : > { %v5811_v37 = vpop.eup %5810  ;;  %v1372_v18 = vsub.f32 1.0, %v5809_v26  ;;  %v7250_v1 = vadd.f32 %v1401_v25, %v1378_v34  ;;  %1416 = vst.msk [vmem:[%s6888_s17 + $0x18] sm:$0x1] %vm1412_vm3, %v7238_v22  ;;  %v1431_v58 = vsel %vm1430_vm4, %v1429_v59, %v7229_v24  ;;  %v1435_v15 = vrot.slane %v7238_v22, 5 }
 0x2c9   : > { %v5813_v4 = vpop.eup %5812  ;;  %v1379_v27 = vmul.f32 %v5811_v37, %v1371_v44  ;;  %1417 = vst.msk [vmem:[%s6888_s17 + $0x20] sm:$0x1] %vm1412_vm3, %v7244_v16  ;;  %v1434_v33 = vsel %vm1433_vm5, %v1432_v31, %v1431_v58  ;;  %v1403_v30 = vmul.f32 %v5809_v26, %v1387_v49  ;;  %v1438_v17 = vrot.slane %v7244_v16, 4 }
 0x2ca   : > { %v1380_v28 = vmul.f32 %v5813_v4, %v1372_v18  ;;  %1418 = vst.msk [vmem:[%s6888_s17 + $0x28] sm:$0x1] %vm1412_vm3, %v7250_v1  ;;  %v1437_v53 = vsel %vm1436_vm6, %v1435_v15, %v1434_v33  ;;  %v1441_v52 = vrot.slane %v7250_v1, 3  ;;  %v8391_v34 = vmov 0.0  }
 0x2cb   : > { %v7268_v40 = vadd.f32 %v1402_v14, %v1379_v27  ;;  %v1440_v63 = vsel %vm1439_vm7, %v1438_v17, %v1437_v53 }
 0x2cc   : > { %v7272_v62 = vadd.f32 %v1403_v30, %v1380_v28  ;;  %v1443_v49 = vsel %vm1442_vm8, %v1441_v52, %v1440_v63 }
 0x2cd   : > { %1419 = vst.msk [vmem:[%s6888_s17 + $0x30] sm:$0x1] %vm1412_vm3, %v7268_v40  ;;  %v1444_v5 = vrot.slane %v7268_v40, 2 }
 0x2ce   : > { %1420 = vst.msk [vmem:[%s6888_s17 + $0x38] sm:$0x1] %vm1412_vm3, %v7272_v62  ;;  %v1447_v51 = vrot.slane %v7272_v62, 1 }
 0x2cf   : > { %v1446_v20 = vsel %vm1445_vm9, %v1444_v5, %v1443_v49 }
 0x2d0   : > { %v1449_v56 = vsel %vm1448_vm10, %v1447_v51, %v1446_v20 }
 0x2d1   : > { %5394 = vmatmul.mubr.msk.f32.vlgmr.msra.gmra.mxu1 %vm418_vm1, %v1449_v56  ;;  %5405 = vmatmul.mubr.msk.f32.vlgmr.msra.gmra.mxu0 %vm418_vm1, %v1449_v56 }
 0x2d2   : > { %5408 = vmatpush3.msra.mxu1 %v7013_v8  ;;  %5415 = vmatprep.mubr.msk.f32.mxu1 %vm6662_vm2, %v8391_v34 }
 0x2d3   : > { %5409 = vmatprep.subr.mxu1 %v8391_v34  ;;  %5419 = vmatpush3.msra.mxu0 %v6960_v21 }
 0x2d4   : > { %5410 = vmatpush3.msra.mxu1 %v7029_v11  ;;  %5420 = vmatprep.subr.mxu0 %v8391_v34 }
 0x2d5   : > { %5411 = vmatprep.subr.mxu1 %v8391_v34  ;;  %5421 = vmatpush3.msra.mxu0 %v6968_v29 }
 0x2d6   : > { %5412 = vmatpush3.msra.mxu1 %v7037_v12  ;;  %5422 = vmatprep.subr.mxu0 %v8391_v34 }
 0x2d7   : > { %5413 = vmatprep.subr.mxu1 %v8391_v34  ;;  %5423 = vmatpush3.msra.mxu0 %v6982_v60 }
 0x2d8   : > { %5414 = vmatpush3.msra.mxu1 %v7045_v13  ;;  %5424 = vmatprep.subr.mxu0 %v8391_v34 }
 0x2d9   : > { %5416 = vmatmul.mubr.msk.f32.vlgmr.msra.gmra.mxu1 %vm418_vm1, %v1449_v56  ;;  %5429 = vmatprep.subr.mxu1 %v8391_v34 }
 0x2da   : > { %5430 = vmatpush3.msra.mxu1 %v7004_v6  ;;  %5425 = vmatpush3.msra.mxu0 %v6991_v3 }
 0x2db   : > { %5431 = vmatprep.subr.mxu1 %v8391_v34  ;;  %5426 = vmatprep.mubr.msk.f32.mxu0 %vm6662_vm2, %v8391_v34 }
 0x2dc   : > { %5432 = vmatpush3.msra.mxu1 %v7011_v7  ;;  %5437 = vmatprep.mubr.msk.f32.mxu1 %vm6662_vm2, %v8391_v34 }
 0x2dd   : > { %5433 = vmatprep.subr.mxu1 %v8391_v34  ;;  %5440 = vmatprep.subr.mxu0 %v8391_v34 }
 0x2de   : > { %5434 = vmatpush3.msra.mxu1 %v7019_v9 }
 0x2df   : > { %5435 = vmatprep.subr.mxu1 %v8391_v34 }
 0x2e0   : > { %5436 = vmatpush3.msra.mxu1 %v7027_v10 }
 0x2e1   : > { %5451 = vmatprep.subr.mxu1 %v8391_v34 }
 0x391   : > { %v1518_v21 = vpop.f32.mrf.mxu1  ;;  %v1588_v29 = vpop.f32.mrf.mxu0 }
 0x392   : > { %v1519_v60 = vadd.f32 %v7090_v35, %v1518_v21  ;;  %v1589_v3 = vadd.f32 %v7132_v50, %v1588_v29 }
 0x393   : > { %v5395_v6 = vpop.f32.mrf.mxu1  ;;  %v5406_v7 = vpop.f32.mrf.mxu0 }
 0x394   : > { %v1663_v8 = vrot.slane %v1519_v60, 7  ;;  %v1664_v11 = vrot.slane %v1519_v60, 1  ;;  %v1665_v12 = vrot.slane %v1519_v60, 2  ;;  %v1666_v13 = vrot.slane %v1519_v60, 3 }
 0x395   : > { %v1667_v25 = vrot.slane %v1519_v60, 4  ;;  %v1668_v9 = vrot.slane %v1519_v60, 5  ;;  %v1669_v26 = vrot.slane %v1519_v60, 6  ;;  %v1679_v44 = vadd.f32 %v1519_v60, %v7092_v36 }
 0x396   : > { %v1678_v10 = vadd.f32 %v1663_v8, %v7096_v41  ;;  %v1680_v31 = vadd.f32 %v1664_v11, %v7100_v43  ;;  %v1681_v37 = vadd.f32 %v1665_v12, %v7098_v42  ;;  %v1682_v35 = vadd.f32 %v1666_v13, %v7105_v46 }
 0x397   : > { %v1683_v50 = vadd.f32 %v1667_v25, %v7103_v45  ;;  %v1684_v18 = vadd.f32 %v1668_v9, %v7109_v48  ;;  %v1685_v58 = vadd.f32 %v1669_v26, %v7107_v47  ;;  %v5000_v4 = vmul.f32 -1.442695, %v1679_v44 }
 0x398   : > { %v4999_v27 = vmul.f32 -1.442695, %v1678_v10  ;;  %v5001_v14 = vmul.f32 -1.442695, %v1680_v31  ;;  %v5002_v33 = vmul.f32 -1.442695, %v1681_v37  ;;  %v1751_v15 = vadd.f32 %v1589_v3, %v7138_v32 }
 0x399   : > { %5814 = vpow2.f32 %v5000_v4  ;;  %v5003_v28 = vmul.f32 -1.442695, %v1682_v35  ;;  %v5004_v30 = vmul.f32 -1.442695, %v1683_v50  ;;  %v5005_v17 = vmul.f32 -1.442695, %v1684_v18  ;;  %v7330_v53 = vpop.f32.mrf.mxu1 }
 0x39a   : > { %5816 = vpow2.f32 %v4999_v27  ;;  %v5006_v52 = vmul.f32 -1.442695, %v1685_v58  ;;  %v1735_v63 = vrot.slane %v1589_v3, 7  ;;  %v1736_v49 = vrot.slane %v1589_v3, 1 }
 0x39b   : > { %5818 = vpow2.f32 %v5001_v14  ;;  %v1737_v5 = vrot.slane %v1589_v3, 2  ;;  %v1738_v51 = vrot.slane %v1589_v3, 3  ;;  %v1739_v20 = vrot.slane %v1589_v3, 4  ;;  %v5417_v56 = vpop.f32.mrf.mxu1 }
 0x39c   : > { %5820 = vpow2.f32 %v5002_v33  ;;  %v1740_v21 = vrot.slane %v1589_v3, 5  ;;  %v1741_v29 = vrot.slane %v1589_v3, 6  ;;  %v1750_v60 = vadd.f32 %v1735_v63, %v7141_v38 }
 0x39d   : > { %5822 = vpow2.f32 %v5003_v28  ;;  %v1752_v6 = vadd.f32 %v1736_v49, %v7150_v55  ;;  %v1753_v7 = vadd.f32 %v1737_v5, %v7147_v54  ;;  %v1754_v8 = vadd.f32 %v1738_v51, %v7156_v57 }
 0x39e   : > { %5824 = vpow2.f32 %v5004_v30  ;;  %v1755_v11 = vadd.f32 %v1739_v20, %v7160_v19  ;;  %v1756_v12 = vadd.f32 %v1740_v21, %v7172_v39  ;;  %v5007_v13 = vmul.f32 -1.442695, %v1750_v60 }
 0x39f   : > { %5826 = vpow2.f32 %v5005_v17  ;;  %v5008_v25 = vmul.f32 -1.442695, %v1751_v15  ;;  %v5009_v9 = vmul.f32 -1.442695, %v1752_v6  ;;  %v1757_v3 = vadd.f32 %v1741_v29, %v7176_v61 }
 0x3a0   : > { %5828 = vpow2.f32 %v5006_v52  ;;  %v5010_v26 = vmul.f32 -1.442695, %v1753_v7  ;;  %v5011_v44 = vmul.f32 -1.442695, %v1754_v8  ;;  %v5012_v10 = vmul.f32 -1.442695, %v1755_v11 }
 0x3a1   : > { %5830 = vpow2.f32 %v5007_v13  ;;  %v5013_v31 = vmul.f32 -1.442695, %v1756_v12  ;;  %v5014_v37 = vmul.f32 -1.442695, %v1757_v3  ;;  %v8392_v11 = vld [vmem:[#allocation24_spill] sm:$0xff] }
 0x3a2   : > { %5832 = vpow2.f32 %v5008_v25  ;;  %v1659_v12 = vadd.f32 %v8392_v11, %v7330_v53 }
 0x3a3   : > { %5834 = vpow2.f32 %v5009_v9 }
 0x3a4   : > { %5836 = vpow2.f32 %v5010_v26 }
 0x3a5   : > { %5838 = vpow2.f32 %v5011_v44 }
 0x3a6   : > { %v5815_v35 = vpop.eup %5814  ;;  %5840 = vpow2.f32 %v5012_v10 }
 0x3a7   : > { %v5817_v50 = vpop.eup %5816  ;;  %v1711_v18 = vadd.f32 1.0, %v5815_v35  ;;  %5842 = vpow2.f32 %v5013_v31  ;;  %v1807_v31 = vrot.slane %v1659_v12, 7 }
 0x3a8   : > { %v5819_v58 = vpop.eup %5818  ;;  %v1710_v4 = vadd.f32 1.0, %v5817_v50  ;;  %5844 = vpow2.f32 %v5014_v37  ;;  %v1808_v50 = vrot.slane %v1659_v12, 1 }
 0x3a9   : > { %v5821_v27 = vpop.eup %5820  ;;  %v1712_v14 = vadd.f32 1.0, %v5819_v58  ;;  %5846 = vrcp.f32 %v1711_v18 }
 0x3aa   : > { %v5823_v33 = vpop.eup %5822  ;;  %v1713_v15 = vadd.f32 1.0, %v5821_v27  ;;  %5848 = vrcp.f32 %v1710_v4  ;;  %v1809_v4 = vrot.slane %v1659_v12, 2 }
 0x3ab   : > { %v5825_v28 = vpop.eup %5824  ;;  %v1714_v30 = vadd.f32 1.0, %v5823_v33  ;;  %5850 = vrcp.f32 %v1712_v14  ;;  %v1810_v14 = vrot.slane %v1659_v12, 3 }
 0x3ac   : > { %v5827_v17 = vpop.eup %5826  ;;  %v1715_v52 = vadd.f32 1.0, %v5825_v28  ;;  %5852 = vrcp.f32 %v1713_v15 }
 0x3ad   : > { %v5829_v63 = vpop.eup %5828  ;;  %v1716_v49 = vadd.f32 1.0, %v5827_v17  ;;  %5854 = vrcp.f32 %v1714_v30  ;;  %v1811_v30 = vrot.slane %v1659_v12, 4 }
 0x3ae   : > { %v5831_v5 = vpop.eup %5830  ;;  %v1717_v51 = vadd.f32 1.0, %v5829_v63  ;;  %5856 = vrcp.f32 %v1715_v52  ;;  %v8393_v52 = vld [vmem:[#allocation25_spill] sm:$0xff] }
 0x3af   : > { %v5833_v20 = vpop.eup %5832  ;;  %5858 = vrcp.f32 %v1716_v49  ;;  %v1782_v56 = vadd.f32 1.0, %v5831_v5  ;;  %v1812_v5 = vrot.slane %v1659_v12, 5 }
 0x3b0   : > { %v5835_v21 = vpop.eup %5834  ;;  %5860 = vrcp.f32 %v1717_v51  ;;  %v1783_v29 = vadd.f32 1.0, %v5833_v20  ;;  %v8394_v20 = vld [vmem:[#allocation27_spill] sm:$0xff] }
 0x3b1   : > { %v5837_v60 = vpop.eup %5836  ;;  %v1784_v6 = vadd.f32 1.0, %v5835_v21  ;;  %5862 = vrcp.f32 %v1782_v56 }
 0x3b2   : > { %v5839_v7 = vpop.eup %5838  ;;  %v1785_v8 = vadd.f32 1.0, %v5837_v60  ;;  %5864 = vrcp.f32 %v1783_v29  ;;  %v1813_v29 = vrot.slane %v1659_v12, 6 }
 0x3b3   : > { %v5841_v13 = vpop.eup %5840  ;;  %v1786_v25 = vadd.f32 1.0, %v5839_v7  ;;  %5866 = vrcp.f32 %v1784_v6  ;;  %v8395_v6 = vld [vmem:[#allocation26_spill] sm:$0xff] }
 0x3b4   : > { %v5843_v9 = vpop.eup %5842  ;;  %v1787_v3 = vadd.f32 1.0, %v5841_v13  ;;  %5868 = vrcp.f32 %v1785_v8  ;;  %v8396_v13 = vld [vmem:[#allocation28_spill] sm:$0xff] }
 0x3b5   : > { %v5845_v26 = vpop.eup %5844  ;;  %v1788_v44 = vadd.f32 1.0, %v5843_v9  ;;  %5870 = vrcp.f32 %v1786_v25 }
 0x3b6   : > { %v5847_v10 = vpop.eup %5846  ;;  %v1789_v37 = vadd.f32 1.0, %v5845_v26  ;;  %5872 = vrcp.f32 %v1787_v3  ;;  %v8397_v3 = vld [vmem:[#allocation29_spill] sm:$0xff] }
 0x3b7   : > { %v5849_v35 = vpop.eup %5848  ;;  %v1823_v18 = vmul.f32 %v5847_v10, %v1659_v12  ;;  %5874 = vrcp.f32 %v1788_v44  ;;  %v8398_v44 = vld [vmem:[#allocation30_spill] sm:$0xff] }
 0x3b8   : > { %v5851_v58 = vpop.eup %5850  ;;  %v1822_v53 = vmul.f32 %v5849_v35, %v1807_v31  ;;  %5876 = vrcp.f32 %v1789_v37  ;;  %v8399_v37 = vld [vmem:[#allocation31_spill] sm:$0xff] }
 0x3b9   : > { %v5853_v27 = vpop.eup %5852  ;;  %v1824_v33 = vmul.f32 %v5851_v58, %v1808_v50  ;;  %v1831_v15 = vadd.f32 %v1823_v18, %v7190_v2 }
 0x3ba   : > { %v5855_v28 = vpop.eup %5854  ;;  %v1825_v17 = vmul.f32 %v5853_v27, %v1809_v4  ;;  %v1830_v63 = vadd.f32 %v1822_v53, %v8393_v52  ;;  %v1862_v27 = vrot.slane %v7229_v24, 7 }
 0x3bb   : > { %v5857_v49 = vpop.eup %5856  ;;  %v1826_v51 = vmul.f32 %v5855_v28, %v1810_v14  ;;  %v1832_v56 = vadd.f32 %v1824_v33, %v8394_v20  ;;  %5878 = vtanh.f32 %v1831_v15  ;;  %v1863_v14 = vrot.slane %v7233_v23, 7 }
 0x3bc   : > { %v5859_v21 = vpop.eup %5858  ;;  %v1827_v60 = vmul.f32 %v5857_v49, %v1811_v30  ;;  %v1833_v7 = vadd.f32 %v1825_v17, %v8395_v6  ;;  %5880 = vtanh.f32 %v1830_v63  ;;  %v1864_v28 = vrot.slane %v7238_v22, 7 }
 0x3bd   : > { %v5861_v8 = vpop.eup %5860  ;;  %v1828_v11 = vmul.f32 %v5859_v21, %v1812_v5  ;;  %v1834_v25 = vadd.f32 %v1826_v51, %v8396_v13  ;;  %5882 = vtanh.f32 %v1832_v56  ;;  %v1865_v30 = vrot.slane %v7244_v16, 7 }
 0x3be   : > { %5884 = vtanh.f32 %v1833_v7  ;;  %v1829_v9 = vmul.f32 %v5861_v8, %v1813_v29  ;;  %v1835_v26 = vadd.f32 %v1827_v60, %v8397_v3  ;;  %v5863_v31 = vpop.eup %5862  ;;  %v1866_v17 = vrot.slane %v7250_v1, 7 }
 0x3bf   : > { %5886 = vtanh.f32 %v1834_v25  ;;  %v1836_v10 = vadd.f32 %v1828_v11, %v8398_v44  ;;  %v5865_v12 = vpop.eup %5864  ;;  %v1846_v49 = vsub.f32 1.0, %v5863_v31  ;;  %v1867_v5 = vrot.slane %v7268_v40, 7 }
 0x3c0   : > { %v1837_v35 = vadd.f32 %v1829_v9, %v8399_v37  ;;  %5888 = vtanh.f32 %v1835_v26  ;;  %v5867_v50 = vpop.eup %5866  ;;  %v1847_v15 = vsub.f32 1.0, %v5865_v12  ;;  %v1868_v51 = vrot.slane %v7272_v62, 7 }
 0x3c1   : > { %5890 = vtanh.f32 %v1836_v10  ;;  %v5869_v18 = vpop.eup %5868  ;;  %v1848_v21 = vsub.f32 1.0, %v5867_v50  ;;  %v1877_v29 = vmul.f32 %v5863_v31, %v1862_v27  ;;  %v1878_v23 = vmul.f32 %v5865_v12, %v1429_v59 }
 0x3c2   : > { %5892 = vtanh.f32 %v1837_v35  ;;  %v5871_v58 = vpop.eup %5870  ;;  %v1849_v22 = vsub.f32 1.0, %v5869_v18  ;;  %v1879_v16 = vmul.f32 %v5867_v50, %v1863_v14  ;;  %v1880_v8 = vmul.f32 %v5869_v18, %v1864_v28 }
 0x3c3   : > { %v5873_v4 = vpop.eup %5872  ;;  %v1850_v11 = vsub.f32 1.0, %v5871_v58  ;;  %v1881_v40 = vmul.f32 %v5871_v58, %v1865_v30 }
 0x3c4   : > { %v5875_v53 = vpop.eup %5874  ;;  %v1851_v26 = vsub.f32 1.0, %v5873_v4  ;;  %v1882_v31 = vmul.f32 %v5873_v4, %v1866_v17 }
 0x3c5   : > { %v5877_v33 = vpop.eup %5876  ;;  %v1852_v59 = vsub.f32 1.0, %v5875_v53  ;;  %v1883_v50 = vmul.f32 %v5875_v53, %v1867_v5 }
 0x3c6   : > { %v1853_v27 = vsub.f32 1.0, %v5877_v33  ;;  %v1884_v30 = vmul.f32 %v5877_v33, %v1868_v51 }
 0x3c8   : > { %v5879_v63 = vpop.eup %5878 }
 0x3c9   : > { %v5881_v56 = vpop.eup %5880  ;;  %v1855_v24 = vmul.f32 %v5879_v63, %v1847_v15 }
 0x3ca   : > { %v5883_v60 = vpop.eup %5882  ;;  %v1854_v7 = vmul.f32 %v5881_v56, %v1846_v49 }
 0x3cb   : > { %v5885_v1 = vpop.eup %5884  ;;  %v1856_v25 = vmul.f32 %v5883_v60, %v1848_v21  ;;  %v7358_v9 = vadd.f32 %v1878_v23, %v1855_v24 }
 0x3cc   : > { %v5887_v62 = vpop.eup %5886  ;;  %v1857_v10 = vmul.f32 %v5885_v1, %v1849_v22  ;;  %v7360_v35 = vadd.f32 %v1877_v29, %v1854_v7 }
 0x3cd   : > { %v5889_v0 = vpop.eup %5888  ;;  %v1858_v12 = vmul.f32 %v5887_v62, %v1850_v11  ;;  %v7362_v18 = vadd.f32 %v1879_v16, %v1856_v25  ;;  %1895 = vst.msk [vmem:[%s6888_s17 + $0x8] sm:$0x2] %vm1893_vm11, %v7358_v9  ;;  %v7417_v25 = vld [vmem:[#allocation11 + $0x58] sm:$0xff]  ;;  %v7426_v62 = vld [vmem:[#allocation11 + $0x50] sm:$0xff] }
 0x3ce   : > { %v5891_v58 = vpop.eup %5890  ;;  %v1859_v14 = vmul.f32 %v5889_v0, %v1851_v26  ;;  %v7367_v15 = vadd.f32 %v1880_v8, %v1857_v10  ;;  %1894 = vst.msk [vmem:[%s6888_s17] sm:$0x2] %vm1893_vm11, %v7360_v35  ;;  %v1910_v4 = vrot.slane %v7360_v35, 1  ;;  %v7431_v26 = vld [vmem:[#allocation11 + $0x10] sm:$0xff]  ;;  %v7434_v10 = vld [vmem:[#allocation11 + $0x48] sm:$0xff]  ;;  %v7442_v0 = vld [vmem:[#allocation11 + $0x40] sm:$0xff] }
 0x3cf   : > { %v5893_v28 = vpop.eup %5892  ;;  %v1860_v53 = vmul.f32 %v5891_v58, %v1852_v59  ;;  %v7373_v17 = vadd.f32 %v1881_v40, %v1858_v12  ;;  %1896 = vst.msk [vmem:[%s6888_s17 + $0x10] sm:$0x2] %vm1893_vm11, %v7362_v18  ;;  %v8322_v63 = vrot.slane %v7362_v18, 7  ;;  %v7423_v40 = vld [vmem:[#allocation11 + $0x18] sm:$0xff]  ;;  %v7451_v12 = vld [vmem:[#allocation11] sm:$0xff]  ;;  %v7464_v58 = vld [vmem:[#allocation11 + $0x28] sm:$0xff] }
 0x3d0   : > { %v1861_v49 = vmul.f32 %v5893_v28, %v1853_v27  ;;  %v7379_v5 = vadd.f32 %v1882_v31, %v1859_v14  ;;  %1897 = vst.msk [vmem:[%s6888_s17 + $0x18] sm:$0x2] %vm1893_vm11, %v7367_v15  ;;  %v1911_v56 = vsel %vm1430_vm4, %v7358_v9, %v1910_v4  ;;  %v1914_v33 = vrot.slane %v7367_v15, 6  ;;  %v7439_v31 = vld [vmem:[#allocation11 + $0x8] sm:$0xff]  ;;  %v7448_v59 = vld [vmem:[#allocation11 + $0x38] sm:$0xff]  ;;  %8400 = vst [vmem:[#allocation24_spill] sm:$0xff] %v7464_v58 }
 0x3d1   : > { %v7387_v51 = vadd.f32 %v1883_v50, %v1860_v53  ;;  %1898 = vst.msk [vmem:[%s6888_s17 + $0x20] sm:$0x2] %vm1893_vm11, %v7373_v17  ;;  %v1913_v21 = vsel %vm1433_vm5, %v8322_v63, %v1911_v56  ;;  %v1916_v24 = vrot.slane %v7373_v17, 5  ;;  %v7457_v50 = vld [vmem:[#allocation11 + $0x30] sm:$0xff]  ;;  %v7468_v27 = vld [vmem:[#allocation11 + $0x20] sm:$0xff] }
 0x3d2   : > { %v7396_v29 = vadd.f32 %v1884_v30, %v1861_v49  ;;  %1899 = vst.msk [vmem:[%s6888_s17 + $0x28] sm:$0x2] %vm1893_vm11, %v7379_v5  ;;  %v1915_v23 = vsel %vm1436_vm6, %v1914_v33, %v1913_v21  ;;  %v1918_v60 = vrot.slane %v7379_v5, 4  ;;  %8401 = vst [vmem:[#allocation25_spill] sm:$0xff] %v7468_v27  ;;  %v7475_v28 = vld [vmem:[%s8296_s7] ss:$0 sm:$0xff] }
 0x3d3   : > { %1900 = vst.msk [vmem:[%s6888_s17 + $0x30] sm:$0x2] %vm1893_vm11, %v7387_v51  ;;  %v1917_v22 = vsel %vm1439_vm7, %v1916_v24, %v1915_v23  ;;  %v1920_v7 = vrot.slane %v7387_v51, 3  ;;  %8402 = vst [vmem:[#allocation32_spill] sm:$0xff] %v7475_v28  ;;  %v7481_v30 = vld [vmem:[%s8296_s7 + $0x1] ss:$0 sm:$0xff] }
 0x3d4   : > { %1901 = vst.msk [vmem:[%s6888_s17 + $0x38] sm:$0x2] %vm1893_vm11, %v7396_v29  ;;  %v1919_v16 = vsel %vm1442_vm8, %v1918_v60, %v1917_v22  ;;  %v1922_v8 = vrot.slane %v7396_v29, 2  ;;  %8403 = vst [vmem:[#allocation33_spill] sm:$0xff] %v7481_v30 }
 0x3d5   : > { %v1921_v1 = vsel %vm1445_vm9, %v1920_v7, %v1919_v16 }
 0x3d6   : > { %v1923_v11 = vsel %vm1448_vm10, %v1922_v8, %v1921_v1 }
 0x3d7   : > { %5427 = vmatmul.mubr.msk.f32.vlgmr.msra.gmra.mxu0 %vm418_vm1, %v1923_v11  ;;  %5438 = vmatmul.mubr.msk.f32.vlgmr.msra.gmra.mxu1 %vm418_vm1, %v1923_v11 }
 0x3d8   : > { %5441 = vmatpush3.msra.mxu0 %v7417_v25  ;;  %5448 = vmatprep.mubr.msk.f32.mxu0 %vm6662_vm2, %v8391_v34 }
 0x3d9   : > { %5442 = vmatprep.subr.mxu0 %v8391_v34  ;;  %5452 = vmatpush3.msra.mxu1 %v7423_v40 }
 0x3da   : > { %5443 = vmatpush3.msra.mxu0 %v7426_v62  ;;  %5453 = vmatprep.subr.mxu1 %v8391_v34 }
 0x3db   : > { %5444 = vmatprep.subr.mxu0 %v8391_v34  ;;  %5454 = vmatpush3.msra.mxu1 %v7431_v26 }
 0x3dc   : > { %5445 = vmatpush3.msra.mxu0 %v7434_v10  ;;  %5455 = vmatprep.subr.mxu1 %v8391_v34 }
 0x3dd   : > { %5446 = vmatprep.subr.mxu0 %v8391_v34  ;;  %5456 = vmatpush3.msra.mxu1 %v7439_v31 }
 0x3de   : > { %5447 = vmatpush3.msra.mxu0 %v7442_v0  ;;  %5457 = vmatprep.subr.mxu1 %v8391_v34 }
 0x3df   : > { %5449 = vmatmul.mubr.msk.f32.vlgmr.msra.gmra.mxu0 %vm418_vm1, %v1923_v11  ;;  %5462 = vmatprep.subr.mxu0 %v8391_v34 }
 0x3e0   : > { %5463 = vmatpush3.msra.mxu0 %v7448_v59  ;;  %5458 = vmatpush3.msra.mxu1 %v7451_v12 }
 0x3e1   : > { %5464 = vmatprep.subr.mxu0 %v8391_v34  ;;  %5459 = vmatprep.mubr.msk.f32.mxu1 %vm6662_vm2, %v8391_v34 }
 0x3e2   : > { %5465 = vmatpush3.msra.mxu0 %v7457_v50  ;;  %5470 = vmatprep.mubr.msk.f32.mxu0 %vm6662_vm2, %v8391_v34 }
 0x3e3   : > { %5466 = vmatprep.subr.mxu0 %v8391_v34  ;;  %5473 = vmatprep.subr.mxu1 %v8391_v34 }
 0x3e4   : > { %5467 = vmatpush3.msra.mxu0 %v7464_v58 }
 0x3e5   : > { %5468 = vmatprep.subr.mxu0 %v8391_v34 }
 0x3e6   : > { %5469 = vmatpush3.msra.mxu0 %v7468_v27 }
 0x3e7   : > { %5484 = vmatprep.subr.mxu0 %v8391_v34 }
 0x497   : > { %v1992_v14 = vpop.f32.mrf.mxu0  ;;  %v2062_v4 = vpop.f32.mrf.mxu1 }
 0x498   : > { %v1993_v53 = vadd.f32 %v7475_v28, %v1992_v14  ;;  %v2063_v49 = vadd.f32 %v7481_v30, %v2062_v4 }
 0x499   : > { %v5428_v56 = vpop.f32.mrf.mxu0  ;;  %v5439_v33 = vpop.f32.mrf.mxu1 }
 0x49a   : > { %v2137_v21 = vrot.slane %v1993_v53, 6  ;;  %v2138_v24 = vrot.slane %v1993_v53, 7  ;;  %v2139_v23 = vrot.slane %v1993_v53, 1  ;;  %v2140_v60 = vrot.slane %v1993_v53, 2 }
 0x49b   : > { %v2141_v22 = vrot.slane %v1993_v53, 3  ;;  %v2142_v7 = vrot.slane %v1993_v53, 4  ;;  %v2143_v16 = vrot.slane %v1993_v53, 5  ;;  %v2154_v8 = vadd.f32 %v1993_v53, %v7100_v43 }
 0x49c   : > { %v2152_v1 = vadd.f32 %v2137_v21, %v7096_v41  ;;  %v2153_v11 = vadd.f32 %v2138_v24, %v7092_v36  ;;  %v2155_v14 = vadd.f32 %v2139_v23, %v7098_v42  ;;  %v2156_v63 = vadd.f32 %v2140_v60, %v7105_v46 }
 0x49d   : > { %v2157_v4 = vadd.f32 %v2141_v22, %v7103_v45  ;;  %v2158_v56 = vadd.f32 %v2142_v7, %v7109_v48  ;;  %v2159_v33 = vadd.f32 %v2143_v16, %v7107_v47  ;;  %v5020_v30 = vmul.f32 -1.442695, %v2154_v8 }
 0x49e   : > { %v5018_v28 = vmul.f32 -1.442695, %v2152_v1  ;;  %v5019_v27 = vmul.f32 -1.442695, %v2153_v11  ;;  %v5021_v58 = vmul.f32 -1.442695, %v2155_v14  ;;  %v2226_v53 = vadd.f32 %v2063_v49, %v7150_v55 }
 0x49f   : > { %5894 = vpow2.f32 %v5020_v30  ;;  %v5022_v21 = vmul.f32 -1.442695, %v2156_v63  ;;  %v5023_v43 = vmul.f32 -1.442695, %v2157_v4  ;;  %v5024_v24 = vmul.f32 -1.442695, %v2158_v56  ;;  %v7493_v36 = vpop.f32.mrf.mxu0 }
 0x4a0   : > { %5896 = vpow2.f32 %v5018_v28  ;;  %v5025_v23 = vmul.f32 -1.442695, %v2159_v33  ;;  %v2209_v60 = vrot.slane %v2063_v49, 6  ;;  %v2210_v22 = vrot.slane %v2063_v49, 7 }
 0x4a1   : > { %5898 = vpow2.f32 %v5019_v27  ;;  %v2211_v7 = vrot.slane %v2063_v49, 1  ;;  %v2212_v48 = vrot.slane %v2063_v49, 2  ;;  %v2213_v16 = vrot.slane %v2063_v49, 3  ;;  %v5450_v8 = vpop.f32.mrf.mxu0 }
 0x4a2   : > { %5900 = vpow2.f32 %v5021_v58  ;;  %v2214_v1 = vrot.slane %v2063_v49, 4  ;;  %v2215_v11 = vrot.slane %v2063_v49, 5  ;;  %v2224_v14 = vadd.f32 %v2209_v60, %v7141_v38 }
 0x4a3   : > { %5902 = vpow2.f32 %v5022_v21  ;;  %v2225_v63 = vadd.f32 %v2210_v22, %v7138_v32  ;;  %v2227_v30 = vadd.f32 %v2211_v7, %v7147_v54  ;;  %v2228_v28 = vadd.f32 %v2212_v48, %v7156_v57 }
 0x4a4   : > { %5904 = vpow2.f32 %v5023_v43  ;;  %v2229_v4 = vadd.f32 %v2213_v16, %v7160_v19  ;;  %v2230_v27 = vadd.f32 %v2214_v1, %v7172_v39  ;;  %v5026_v56 = vmul.f32 -1.442695, %v2224_v14 }
 0x4a5   : > { %5906 = vpow2.f32 %v5024_v24  ;;  %v5027_v33 = vmul.f32 -1.442695, %v2225_v63  ;;  %v5028_v58 = vmul.f32 -1.442695, %v2226_v53  ;;  %v2231_v49 = vadd.f32 %v2215_v11, %v7176_v61 }
 0x4a6   : > { %5908 = vpow2.f32 %v5025_v23  ;;  %v5029_v60 = vmul.f32 -1.442695, %v2227_v30  ;;  %v5030_v21 = vmul.f32 -1.442695, %v2228_v28  ;;  %v5031_v22 = vmul.f32 -1.442695, %v2229_v4 }
 0x4a7   : > { %5910 = vpow2.f32 %v5026_v56  ;;  %v5032_v7 = vmul.f32 -1.442695, %v2230_v27  ;;  %v5033_v43 = vmul.f32 -1.442695, %v2231_v49 }
 0x4a8   : > { %5912 = vpow2.f32 %v5027_v33 }
 0x4a9   : > { %5914 = vpow2.f32 %v5028_v58 }
 0x4aa   : > { %5916 = vpow2.f32 %v5029_v60 }
 0x4ab   : > { %5918 = vpow2.f32 %v5030_v21 }
 0x4ac   : > { %v5895_v48 = vpop.eup %5894  ;;  %5920 = vpow2.f32 %v5031_v22 }
 0x4ad   : > { %v5897_v16 = vpop.eup %5896  ;;  %v2186_v24 = vadd.f32 1.0, %v5895_v48  ;;  %5922 = vpow2.f32 %v5032_v7 }
 0x4ae   : > { %v5899_v8 = vpop.eup %5898  ;;  %v2184_v53 = vadd.f32 1.0, %v5897_v16  ;;  %5924 = vpow2.f32 %v5033_v43  ;;  %v7505_v16 = vld [vmem:[%s8296_s7 + $0x2] ss:$0 sm:$0xff] }
 0x4af   : > { %v5901_v23 = vpop.eup %5900  ;;  %v2185_v1 = vadd.f32 1.0, %v5899_v8  ;;  %5926 = vrcp.f32 %v2186_v24  ;;  %v2133_v24 = vadd.f32 %v7505_v16, %v7493_v36 }
 0x4b0   : > { %v5903_v11 = vpop.eup %5902  ;;  %v2187_v14 = vadd.f32 1.0, %v5901_v23  ;;  %5928 = vrcp.f32 %v2184_v53 }
 0x4b1   : > { %v5905_v63 = vpop.eup %5904  ;;  %v2188_v30 = vadd.f32 1.0, %v5903_v11  ;;  %5930 = vrcp.f32 %v2185_v1  ;;  %v2283_v36 = vrot.slane %v2133_v24, 1 }
 0x4b2   : > { %v5907_v28 = vpop.eup %5906  ;;  %v2189_v4 = vadd.f32 1.0, %v5905_v63  ;;  %5932 = vrcp.f32 %v2187_v14 }
 0x4b3   : > { %v5909_v27 = vpop.eup %5908  ;;  %v2190_v56 = vadd.f32 1.0, %v5907_v28  ;;  %5934 = vrcp.f32 %v2188_v30  ;;  %v2281_v28 = vrot.slane %v2133_v24, 6 }
 0x4b4   : > { %v5911_v33 = vpop.eup %5910  ;;  %v2191_v58 = vadd.f32 1.0, %v5909_v27  ;;  %5936 = vrcp.f32 %v2189_v4 }
 0x4b5   : > { %v5913_v49 = vpop.eup %5912  ;;  %5938 = vrcp.f32 %v2190_v56  ;;  %v2256_v60 = vadd.f32 1.0, %v5911_v33  ;;  %v2282_v56 = vrot.slane %v2133_v24, 7 }
 0x4b6   : > { %v5915_v21 = vpop.eup %5914  ;;  %5940 = vrcp.f32 %v2191_v58  ;;  %v2257_v22 = vadd.f32 1.0, %v5913_v49 }
 0x4b7   : > { %v5917_v7 = vpop.eup %5916  ;;  %v2258_v43 = vadd.f32 1.0, %v5915_v21  ;;  %5942 = vrcp.f32 %v2256_v60  ;;  %v2284_v21 = vrot.slane %v2133_v24, 2 }
 0x4b8   : > { %v5919_v48 = vpop.eup %5918  ;;  %v2259_v8 = vadd.f32 1.0, %v5917_v7  ;;  %5944 = vrcp.f32 %v2257_v22 }
 0x4b9   : > { %v5921_v53 = vpop.eup %5920  ;;  %v2260_v23 = vadd.f32 1.0, %v5919_v48  ;;  %5946 = vrcp.f32 %v2258_v43  ;;  %v2285_v43 = vrot.slane %v2133_v24, 3 }
 0x4ba   : > { %v5923_v1 = vpop.eup %5922  ;;  %v2261_v11 = vadd.f32 1.0, %v5921_v53  ;;  %5948 = vrcp.f32 %v2259_v8 }
 0x4bb   : > { %v5925_v14 = vpop.eup %5924  ;;  %v2262_v63 = vadd.f32 1.0, %v5923_v1  ;;  %5950 = vrcp.f32 %v2260_v23 }
 0x4bc   : > { %v5927_v30 = vpop.eup %5926  ;;  %v2263_v4 = vadd.f32 1.0, %v5925_v14  ;;  %5952 = vrcp.f32 %v2261_v11  ;;  %v2286_v14 = vrot.slane %v2133_v24, 4  ;;  %v2287_v11 = vrot.slane %v2133_v24, 5 }
 0x4bd   : > { %v5929_v27 = vpop.eup %5928  ;;  %v2298_v33 = vmul.f32 %v5927_v30, %v2133_v24  ;;  %5954 = vrcp.f32 %v2262_v63 }
 0x4be   : > { %v5931_v58 = vpop.eup %5930  ;;  %v2296_v49 = vmul.f32 %v5929_v27, %v2281_v28  ;;  %5956 = vrcp.f32 %v2263_v4 }
 0x4bf   : > { %v5933_v60 = vpop.eup %5932  ;;  %v2297_v7 = vmul.f32 %v5931_v58, %v2282_v56  ;;  %v2306_v22 = vadd.f32 %v2298_v33, %v8394_v20 }
 0x4c0   : > { %v5935_v48 = vpop.eup %5934  ;;  %v2299_v53 = vmul.f32 %v5933_v60, %v2283_v36  ;;  %v2304_v1 = vadd.f32 %v2296_v49, %v8393_v52 }
 0x4c1   : > { %v5937_v8 = vpop.eup %5936  ;;  %v2300_v30 = vmul.f32 %v5935_v48, %v2284_v21  ;;  %v2305_v23 = vadd.f32 %v2297_v7, %v7190_v2  ;;  %5958 = vtanh.f32 %v2306_v22 }
 0x4c2   : > { %v5939_v28 = vpop.eup %5938  ;;  %v2301_v27 = vmul.f32 %v5937_v8, %v2285_v43  ;;  %v2307_v56 = vadd.f32 %v2299_v53, %v8395_v6  ;;  %5960 = vtanh.f32 %v2304_v1  ;;  %v2337_v1 = vrot.slane %v7358_v9, 7 }
 0x4c3   : > { %v5941_v33 = vpop.eup %5940  ;;  %v2302_v63 = vmul.f32 %v5939_v28, %v2286_v14  ;;  %v2308_v58 = vadd.f32 %v2300_v30, %v8396_v13  ;;  %5962 = vtanh.f32 %v2305_v23  ;;  %v2336_v30 = vrot.slane %v7360_v35, 7 }
 0x4c4   : > { %5964 = vtanh.f32 %v2307_v56  ;;  %v2303_v36 = vmul.f32 %v5941_v33, %v2287_v11  ;;  %v2309_v4 = vadd.f32 %v2301_v27, %v8397_v3  ;;  %v5943_v60 = vpop.eup %5942  ;;  %v2338_v23 = vrot.slane %v7367_v15, 7 }
 0x4c5   : > { %5966 = vtanh.f32 %v2308_v58  ;;  %v2310_v49 = vadd.f32 %v2302_v63, %v8398_v44  ;;  %v5945_v24 = vpop.eup %5944  ;;  %v2339_v28 = vrot.slane %v7373_v17, 7  ;;  %v2320_v27 = vsub.f32 1.0, %v5943_v60 }
 0x4c6   : > { %v2311_v21 = vadd.f32 %v2303_v36, %v8399_v37  ;;  %5968 = vtanh.f32 %v2309_v4  ;;  %v5947_v7 = vpop.eup %5946  ;;  %v2340_v56 = vrot.slane %v7379_v5, 7  ;;  %v2341_v33 = vrot.slane %v7387_v51, 7 }
 0x4c7   : > { %5970 = vtanh.f32 %v2310_v49  ;;  %v5949_v22 = vpop.eup %5948  ;;  %v2322_v14 = vsub.f32 1.0, %v5947_v7  ;;  %v2342_v63 = vrot.slane %v7396_v29, 7  ;;  %v2321_v36 = vsub.f32 1.0, %v5945_v24 }
 0x4c8   : > { %5972 = vtanh.f32 %v2311_v21  ;;  %v5951_v48 = vpop.eup %5950  ;;  %v8404_v9 = vrot.slane %v7362_v18, 7  ;;  %v2323_v21 = vsub.f32 1.0, %v5949_v22  ;;  %v2351_v37 = vmul.f32 %v5943_v60, %v2336_v30 }
 0x4c9   : > { %v5953_v43 = vpop.eup %5952  ;;  %v2352_v17 = vmul.f32 %v5945_v24, %v2337_v1  ;;  %v2324_v3 = vsub.f32 1.0, %v5951_v48  ;;  %v2354_v13 = vmul.f32 %v5949_v22, %v2338_v23 }
 0x4ca   : > { %v5955_v53 = vpop.eup %5954  ;;  %v2353_v49 = vmul.f32 %v5947_v7, %v8404_v9  ;;  %v2325_v20 = vsub.f32 1.0, %v5953_v43  ;;  %v2356_v60 = vmul.f32 %v5953_v43, %v2340_v56 }
 0x4cb   : > { %v5957_v8 = vpop.eup %5956  ;;  %v2326_v9 = vsub.f32 1.0, %v5955_v53 }
 0x4cc   : > { %v2327_v1 = vsub.f32 1.0, %v5957_v8 }
 0x4ce   : > { %v5959_v11 = vpop.eup %5958 }
 0x4cf   : > { %v5961_v58 = vpop.eup %5960  ;;  %v2330_v4 = vmul.f32 %v5959_v11, %v2322_v14  ;;  %v2355_v11 = vmul.f32 %v5951_v48, %v2339_v28  ;;  %v2357_v48 = vmul.f32 %v5955_v53, %v2341_v33 }
 0x4d0   : > { %v5963_v35 = vpop.eup %5962  ;;  %v2328_v15 = vmul.f32 %v5961_v58, %v2320_v27 }
 0x4d1   : > { %v5965_v44 = vpop.eup %5964  ;;  %v2329_v5 = vmul.f32 %v5963_v35, %v2321_v36  ;;  %v7526_v51 = vadd.f32 %v2353_v49, %v2330_v4 }
 0x4d2   : > { %v5967_v29 = vpop.eup %5966  ;;  %v2331_v14 = vmul.f32 %v5965_v44, %v2323_v21  ;;  %v7528_v18 = vadd.f32 %v2351_v37, %v2328_v15 }
 0x4d3   : > { %v5969_v7 = vpop.eup %5968  ;;  %v2332_v27 = vmul.f32 %v5967_v29, %v2324_v3  ;;  %v7530_v24 = vadd.f32 %v2352_v17, %v2329_v5  ;;  %2370 = vst.msk [vmem:[%s6888_s17 + $0x10] sm:$0x4] %vm2367_vm12, %v7526_v51 }
 0x4d4   : > { %v5971_v22 = vpop.eup %5970  ;;  %v2333_v30 = vmul.f32 %v5969_v7, %v2325_v20  ;;  %v7535_v23 = vadd.f32 %v2354_v13, %v2331_v14  ;;  %2368 = vst.msk [vmem:[%s6888_s17] sm:$0x4] %vm2367_vm12, %v7528_v18  ;;  %v2384_v44 = vrot.slane %v7528_v18, 2  ;;  %v2358_v13 = vmul.f32 %v5957_v8, %v2342_v63 }
 0x4d5   : > { %v5973_v3 = vpop.eup %5972  ;;  %v2334_v37 = vmul.f32 %v5971_v22, %v2326_v9  ;;  %v7541_v43 = vadd.f32 %v2355_v11, %v2332_v27  ;;  %2369 = vst.msk [vmem:[%s6888_s17 + $0x8] sm:$0x4] %vm2367_vm12, %v7530_v24  ;;  %v2385_v28 = vrot.slane %v7530_v24, 1 }
 0x4d6   : > { %v2335_v20 = vmul.f32 %v5973_v3, %v2327_v1  ;;  %v7547_v56 = vadd.f32 %v2356_v60, %v2333_v30  ;;  %2371 = vst.msk [vmem:[%s6888_s17 + $0x18] sm:$0x4] %vm2367_vm12, %v7535_v23  ;;  %v2388_v33 = vrot.slane %v7535_v23, 7 }
 0x4d7   : > { %v7552_v58 = vadd.f32 %v2357_v48, %v2334_v37  ;;  %2372 = vst.msk [vmem:[%s6888_s17 + $0x20] sm:$0x4] %vm2367_vm12, %v7541_v43  ;;  %v2386_v53 = vsel %vm1430_vm4, %v2385_v28, %v2384_v44  ;;  %v2390_v63 = vrot.slane %v7541_v43, 6  ;;  %v8409_v44 = vld [vmem:[#allocation20_spill] sm:$0xff]  ;;  %v8410_v37 = vld [vmem:[#allocation21_spill] sm:$0xff] }
 0x4d8   : > { %v7559_v36 = vadd.f32 %v2358_v13, %v2335_v20  ;;  %2373 = vst.msk [vmem:[%s6888_s17 + $0x28] sm:$0x4] %vm2367_vm12, %v7547_v56  ;;  %v2387_v8 = vsel %vm1433_vm5, %v7526_v51, %v2386_v53  ;;  %v2392_v49 = vrot.slane %v7547_v56, 5  ;;  %v8411_v13 = vld [vmem:[#allocation23_spill] sm:$0xff] }
 0x4d9   : > { %2374 = vst.msk [vmem:[%s6888_s17 + $0x30] sm:$0x4] %vm2367_vm12, %v7552_v58  ;;  %v2389_v4 = vsel %vm1436_vm6, %v2388_v33, %v2387_v8  ;;  %v2394_v21 = vrot.slane %v7552_v58, 4 }
 0x4da   : > { %2375 = vst.msk [vmem:[%s6888_s17 + $0x38] sm:$0x4] %vm2367_vm12, %v7559_v36  ;;  %v2391_v35 = vsel %vm1439_vm7, %v2390_v63, %v2389_v4  ;;  %v2396_v17 = vrot.slane %v7559_v36, 3 }
 0x4db   : > { %v2393_v15 = vsel %vm1442_vm8, %v2392_v49, %v2391_v35 }
 0x4dc   : > { %v2395_v5 = vsel %vm1445_vm9, %v2394_v21, %v2393_v15 }
 0x4dd   : > { %v2397_v29 = vsel %vm1448_vm10, %v2396_v17, %v2395_v5 }
 0x4de   : > { %5460 = vmatmul.mubr.msk.f32.vlgmr.msra.gmra.mxu1 %vm418_vm1, %v2397_v29  ;;  %5471 = vmatmul.mubr.msk.f32.vlgmr.msra.gmra.mxu0 %vm418_vm1, %v2397_v29 }
 0x4df   : > { %5474 = vmatpush3.msra.mxu1 %v7417_v25  ;;  %5481 = vmatprep.mubr.msk.f32.mxu1 %vm6662_vm2, %v8391_v34  ;;  %v8405_v25 = vld [vmem:[#allocation24_spill] sm:$0xff] }
 0x4e0   : > { %5475 = vmatprep.subr.mxu1 %v8391_v34  ;;  %5485 = vmatpush3.msra.mxu0 %v7423_v40  ;;  %v8406_v40 = vld [vmem:[#allocation25_spill] sm:$0xff] }
 0x4e1   : > { %5476 = vmatpush3.msra.mxu1 %v7426_v62  ;;  %5486 = vmatprep.subr.mxu0 %v8391_v34 }
 0x4e2   : > { %5477 = vmatprep.subr.mxu1 %v8391_v34  ;;  %5487 = vmatpush3.msra.mxu0 %v7431_v26 }
 0x4e3   : > { %5478 = vmatpush3.msra.mxu1 %v7434_v10  ;;  %5488 = vmatprep.subr.mxu0 %v8391_v34  ;;  %v8407_v10 = vld [vmem:[#allocation32_spill] sm:$0xff] }
 0x4e4   : > { %5479 = vmatprep.subr.mxu1 %v8391_v34  ;;  %5489 = vmatpush3.msra.mxu0 %v7439_v31 }
 0x4e5   : > { %5480 = vmatpush3.msra.mxu1 %v7442_v0  ;;  %5490 = vmatprep.subr.mxu0 %v8391_v34  ;;  %v8408_v0 = vld [vmem:[#allocation33_spill] sm:$0xff] }
 0x4e6   : > { %5482 = vmatmul.mubr.msk.f32.vlgmr.msra.gmra.mxu1 %vm418_vm1, %v2397_v29  ;;  %5495 = vmatprep.subr.mxu1 %v8391_v34 }
 0x4e7   : > { %5496 = vmatpush3.msra.mxu1 %v7448_v59  ;;  %5491 = vmatpush3.msra.mxu0 %v7451_v12 }
 0x4e8   : > { %5497 = vmatprep.subr.mxu1 %v8391_v34  ;;  %5492 = vmatprep.mubr.msk.f32.mxu0 %vm6662_vm2, %v8391_v34 }
 0x4e9   : > { %5498 = vmatpush3.msra.mxu1 %v7457_v50  ;;  %5503 = vmatprep.mubr.msk.f32.mxu1 %vm6662_vm2, %v8391_v34 }
 0x4ea   : > { %5499 = vmatprep.subr.mxu1 %v8391_v34  ;;  %5506 = vmatprep.subr.mxu0 %v8391_v34 }
 0x4eb   : > { %5500 = vmatpush3.msra.mxu1 %v8405_v25 }
 0x4ec   : > { %5501 = vmatprep.subr.mxu1 %v8391_v34 }
 0x4ed   : > { %5502 = vmatpush3.msra.mxu1 %v8406_v40 }
 0x4ee   : > { %5517 = vmatprep.subr.mxu1 %v8391_v34 }
 0x59e   : > { %v2466_v62 = vpop.f32.mrf.mxu1  ;;  %v2536_v26 = vpop.f32.mrf.mxu0 }
 0x59f   : > { %v2467_v31 = vadd.f32 %v8407_v10, %v2466_v62  ;;  %v2537_v59 = vadd.f32 %v8408_v0, %v2536_v26 }
 0x5a0   : > { %v5461_v12 = vpop.f32.mrf.mxu1  ;;  %v5472_v50 = vpop.f32.mrf.mxu0 }
 0x5a1   : > { %v2611_v14 = vrot.slane %v2467_v31, 5  ;;  %v2612_v11 = vrot.slane %v2467_v31, 6  ;;  %v2613_v7 = vrot.slane %v2467_v31, 7  ;;  %v2614_v9 = vrot.slane %v2467_v31, 1 }
 0x5a2   : > { %v2615_v27 = vrot.slane %v2467_v31, 2  ;;  %v2616_v60 = vrot.slane %v2467_v31, 3  ;;  %v2617_v22 = vrot.slane %v2467_v31, 4  ;;  %v2629_v1 = vadd.f32 %v2467_v31, %v7098_v42 }
 0x5a3   : > { %v2626_v30 = vadd.f32 %v2611_v14, %v7096_v41  ;;  %v2627_v3 = vadd.f32 %v2612_v11, %v8409_v44  ;;  %v2628_v48 = vadd.f32 %v2613_v7, %v8410_v37  ;;  %v2630_v28 = vadd.f32 %v2614_v9, %v7105_v46 }
 0x5a4   : > { %v2631_v20 = vadd.f32 %v2615_v27, %v7103_v45  ;;  %v2632_v53 = vadd.f32 %v2616_v60, %v8411_v13  ;;  %v2633_v8 = vadd.f32 %v2617_v22, %v7107_v47  ;;  %v5040_v63 = vmul.f32 -1.442695, %v2629_v1 }
 0x5a5   : > { %v5037_v4 = vmul.f32 -1.442695, %v2626_v30  ;;  %v5038_v49 = vmul.f32 -1.442695, %v2627_v3  ;;  %v5039_v35 = vmul.f32 -1.442695, %v2628_v48  ;;  %v2701_v21 = vadd.f32 %v2537_v59, %v7147_v54 }
 0x5a6   : > { %5974 = vpow2.f32 %v5040_v63  ;;  %v5041_v15 = vmul.f32 -1.442695, %v2630_v28  ;;  %v5042_v17 = vmul.f32 -1.442695, %v2631_v20  ;;  %v5043_v5 = vmul.f32 -1.442695, %v2632_v53  ;;  %v7627_v29 = vpop.f32.mrf.mxu1 }
 0x5a7   : > { %5976 = vpow2.f32 %v5037_v4  ;;  %v5044_v25 = vmul.f32 -1.442695, %v2633_v8  ;;  %v2683_v40 = vrot.slane %v2537_v59, 5  ;;  %v2684_v62 = vrot.slane %v2537_v59, 6 }
 0x5a8   : > { %5978 = vpow2.f32 %v5038_v49  ;;  %v2685_v26 = vrot.slane %v2537_v59, 7  ;;  %v2686_v10 = vrot.slane %v2537_v59, 1  ;;  %v2687_v31 = vrot.slane %v2537_v59, 2  ;;  %v5483_v0 = vpop.f32.mrf.mxu1 }
 0x5a9   : > { %5980 = vpow2.f32 %v5039_v35  ;;  %v2688_v12 = vrot.slane %v2537_v59, 3  ;;  %v2689_v50 = vrot.slane %v2537_v59, 4  ;;  %v2698_v14 = vadd.f32 %v2683_v40, %v7141_v38 }
 0x5aa   : > { %5982 = vpow2.f32 %v5041_v15  ;;  %v2699_v11 = vadd.f32 %v2684_v62, %v7138_v32  ;;  %v2700_v7 = vadd.f32 %v2685_v26, %v7150_v55  ;;  %v2702_v9 = vadd.f32 %v2686_v10, %v7156_v57 }
 0x5ab   : > { %5984 = vpow2.f32 %v5042_v17  ;;  %v2703_v27 = vadd.f32 %v2687_v31, %v7160_v19  ;;  %v2704_v60 = vadd.f32 %v2688_v12, %v7172_v39  ;;  %v5045_v22 = vmul.f32 -1.442695, %v2698_v14 }
 0x5ac   : > { %5986 = vpow2.f32 %v5043_v5  ;;  %v5046_v1 = vmul.f32 -1.442695, %v2699_v11  ;;  %v5047_v30 = vmul.f32 -1.442695, %v2700_v7  ;;  %v2705_v59 = vadd.f32 %v2689_v50, %v7176_v61 }
 0x5ad   : > { %5988 = vpow2.f32 %v5044_v25  ;;  %v5048_v3 = vmul.f32 -1.442695, %v2701_v21  ;;  %v5049_v48 = vmul.f32 -1.442695, %v2702_v9  ;;  %v5050_v28 = vmul.f32 -1.442695, %v2703_v27 }
 0x5ae   : > { %5990 = vpow2.f32 %v5045_v22  ;;  %v5051_v20 = vmul.f32 -1.442695, %v2704_v60  ;;  %v5052_v53 = vmul.f32 -1.442695, %v2705_v59  ;;  %v2607_v22 = vadd.f32 %v7505_v16, %v7627_v29 }
 0x5af   : > { %5992 = vpow2.f32 %v5046_v1 }
 0x5b0   : > { %5994 = vpow2.f32 %v5047_v30  ;;  %v2757_v16 = vrot.slane %v2607_v22, 7 }
 0x5b1   : > { %5996 = vpow2.f32 %v5048_v3 }
 0x5b2   : > { %5998 = vpow2.f32 %v5049_v48 }
 0x5b3   : > { %v5975_v8 = vpop.eup %5974  ;;  %6000 = vpow2.f32 %v5050_v28 }
 0x5b4   : > { %v5977_v63 = vpop.eup %5976  ;;  %v2661_v4 = vadd.f32 1.0, %v5975_v8  ;;  %6002 = vpow2.f32 %v5051_v20  ;;  %v2755_v8 = vrot.slane %v2607_v22, 5 }
 0x5b5   : > { %v5979_v49 = vpop.eup %5978  ;;  %v2658_v35 = vadd.f32 1.0, %v5977_v63  ;;  %6004 = vpow2.f32 %v5052_v53 }
 0x5b6   : > { %v5981_v15 = vpop.eup %5980  ;;  %v2659_v17 = vadd.f32 1.0, %v5979_v49  ;;  %6006 = vrcp.f32 %v2661_v4  ;;  %v2756_v49 = vrot.slane %v2607_v22, 6 }
 0x5b7   : > { %v5983_v21 = vpop.eup %5982  ;;  %v2660_v5 = vadd.f32 1.0, %v5981_v15  ;;  %6008 = vrcp.f32 %v2658_v35 }
 0x5b8   : > { %v5985_v25 = vpop.eup %5984  ;;  %v2662_v40 = vadd.f32 1.0, %v5983_v21  ;;  %6010 = vrcp.f32 %v2659_v17  ;;  %v2758_v21 = vrot.slane %v2607_v22, 1 }
 0x5b9   : > { %v5987_v62 = vpop.eup %5986  ;;  %v2663_v26 = vadd.f32 1.0, %v5985_v25  ;;  %6012 = vrcp.f32 %v2660_v5 }
 0x5ba   : > { %v5989_v10 = vpop.eup %5988  ;;  %v2664_v31 = vadd.f32 1.0, %v5987_v62  ;;  %6014 = vrcp.f32 %v2662_v40  ;;  %v2759_v62 = vrot.slane %v2607_v22, 2 }
 0x5bb   : > { %v5991_v0 = vpop.eup %5990  ;;  %v2665_v12 = vadd.f32 1.0, %v5989_v10  ;;  %6016 = vrcp.f32 %v2663_v26 }
 0x5bc   : > { %v5993_v50 = vpop.eup %5992  ;;  %6018 = vrcp.f32 %v2664_v31  ;;  %v2730_v14 = vadd.f32 1.0, %v5991_v0  ;;  %v2760_v0 = vrot.slane %v2607_v22, 3 }
 0x5bd   : > { %v5995_v11 = vpop.eup %5994  ;;  %6020 = vrcp.f32 %v2665_v12  ;;  %v2731_v7 = vadd.f32 1.0, %v5993_v50 }
 0x5be   : > { %v5997_v9 = vpop.eup %5996  ;;  %v2732_v27 = vadd.f32 1.0, %v5995_v11  ;;  %6022 = vrcp.f32 %v2730_v14  ;;  %v2761_v11 = vrot.slane %v2607_v22, 4 }
 0x5bf   : > { %v5999_v60 = vpop.eup %5998  ;;  %v2733_v1 = vadd.f32 1.0, %v5997_v9  ;;  %6024 = vrcp.f32 %v2731_v7  ;;  %v8412_v9 = vld [vmem:[#allocation27_spill] sm:$0xff] }
 0x5c0   : > { %v6001_v30 = vpop.eup %6000  ;;  %v2734_v59 = vadd.f32 1.0, %v5999_v60  ;;  %6026 = vrcp.f32 %v2732_v27 }
 0x5c1   : > { %v6003_v3 = vpop.eup %6002  ;;  %v2735_v48 = vadd.f32 1.0, %v6001_v30  ;;  %6028 = vrcp.f32 %v2733_v1  ;;  %v8413_v30 = vld [vmem:[#allocation28_spill] sm:$0xff] }
 0x5c2   : > { %v6005_v28 = vpop.eup %6004  ;;  %v2736_v20 = vadd.f32 1.0, %v6003_v3  ;;  %6030 = vrcp.f32 %v2734_v59 }
 0x5c3   : > { %v6007_v53 = vpop.eup %6006  ;;  %v2737_v63 = vadd.f32 1.0, %v6005_v28  ;;  %6032 = vrcp.f32 %v2735_v48  ;;  %v8414_v48 = vld [vmem:[#allocation29_spill] sm:$0xff] }
 0x5c4   : > { %v6009_v4 = vpop.eup %6008  ;;  %v2773_v35 = vmul.f32 %v6007_v53, %v2607_v22  ;;  %6034 = vrcp.f32 %v2736_v20  ;;  %v8415_v20 = vld [vmem:[#allocation30_spill] sm:$0xff] }
 0x5c5   : > { %v6011_v15 = vpop.eup %6010  ;;  %v2770_v29 = vmul.f32 %v6009_v4, %v2755_v8  ;;  %6036 = vrcp.f32 %v2737_v63  ;;  %v8416_v63 = vld [vmem:[#allocation31_spill] sm:$0xff] }
 0x5c6   : > { %v6013_v17 = vpop.eup %6012  ;;  %v2771_v5 = vmul.f32 %v6011_v15, %v2756_v49  ;;  %v2781_v25 = vadd.f32 %v2773_v35, %v8395_v6 }
 0x5c7   : > { %v6015_v40 = vpop.eup %6014  ;;  %v2772_v26 = vmul.f32 %v6013_v17, %v2757_v16  ;;  %v2778_v10 = vadd.f32 %v2770_v29, %v8393_v52  ;;  %v2812_v17 = vrot.slane %v7526_v51, 7 }
 0x5c8   : > { %v6017_v31 = vpop.eup %6016  ;;  %v2774_v12 = vmul.f32 %v6015_v40, %v2758_v21  ;;  %v2779_v50 = vadd.f32 %v2771_v5, %v7190_v2  ;;  %6038 = vtanh.f32 %v2781_v25  ;;  %v2810_v25 = vrot.slane %v7528_v18, 7 }
 0x5c9   : > { %v6019_v14 = vpop.eup %6018  ;;  %v2775_v7 = vmul.f32 %v6017_v31, %v2759_v62  ;;  %v2780_v27 = vadd.f32 %v2772_v26, %v8412_v9  ;;  %6040 = vtanh.f32 %v2778_v10  ;;  %v2811_v40 = vrot.slane %v7530_v24, 7 }
 0x5ca   : > { %v6021_v60 = vpop.eup %6020  ;;  %v2776_v1 = vmul.f32 %v6019_v14, %v2760_v0  ;;  %6042 = vtanh.f32 %v2779_v50  ;;  %v2782_v59 = vadd.f32 %v2774_v12, %v8413_v30  ;;  %v2813_v62 = vrot.slane %v7541_v43, 7 }
 0x5cb   : > { %6044 = vtanh.f32 %v2780_v27  ;;  %v2777_v3 = vmul.f32 %v6021_v60, %v2761_v11  ;;  %v2783_v28 = vadd.f32 %v2775_v7, %v8414_v48  ;;  %v6023_v8 = vpop.eup %6022  ;;  %v2814_v31 = vrot.slane %v7547_v56, 7 }
 0x5cc   : > { %v2784_v53 = vadd.f32 %v2776_v1, %v8415_v20  ;;  %6046 = vtanh.f32 %v2782_v59  ;;  %v6025_v22 = vpop.eup %6024  ;;  %v2794_v10 = vsub.f32 1.0, %v6023_v8  ;;  %v2815_v0 = vrot.slane %v7552_v58, 7 }
 0x5cd   : > { %v2785_v4 = vadd.f32 %v2777_v3, %v8416_v63  ;;  %6048 = vtanh.f32 %v2783_v28  ;;  %v6027_v49 = vpop.eup %6026  ;;  %v2816_v12 = vrot.slane %v7559_v36, 7  ;;  %v2795_v14 = vsub.f32 1.0, %v6025_v22 }
 0x5ce   : > { %6050 = vtanh.f32 %v2784_v53  ;;  %v6029_v35 = vpop.eup %6028  ;;  %v2796_v7 = vsub.f32 1.0, %v6027_v49  ;;  %v2825_v27 = vmul.f32 %v6023_v8, %v2810_v25  ;;  %v2826_v43 = vmul.f32 %v6025_v22, %v2811_v40 }
 0x5cf   : > { %6052 = vtanh.f32 %v2785_v4  ;;  %v6031_v15 = vpop.eup %6030  ;;  %v2797_v5 = vsub.f32 1.0, %v6029_v35  ;;  %v2828_v51 = vmul.f32 %v6029_v35, %v2388_v33  ;;  %v2827_v59 = vmul.f32 %v6027_v49, %v2812_v17 }
 0x5d0   : > { %v6033_v16 = vpop.eup %6032  ;;  %v2798_v1 = vsub.f32 1.0, %v6031_v15  ;;  %v2829_v53 = vmul.f32 %v6031_v15, %v2813_v62 }
 0x5d1   : > { %v6035_v29 = vpop.eup %6034  ;;  %v2799_v3 = vsub.f32 1.0, %v6033_v16  ;;  %v2830_v8 = vmul.f32 %v6033_v16, %v2814_v31 }
 0x5d2   : > { %v6037_v21 = vpop.eup %6036  ;;  %v2800_v4 = vsub.f32 1.0, %v6035_v29  ;;  %v2831_v62 = vmul.f32 %v6035_v29, %v2815_v0 }
 0x5d3   : > { %v2801_v17 = vsub.f32 1.0, %v6037_v21 }
 0x5d5   : > { %v6039_v26 = vpop.eup %6038 }
 0x5d6   : > { %v6041_v50 = vpop.eup %6040  ;;  %v2805_v11 = vmul.f32 %v6039_v26, %v2797_v5 }
 0x5d7   : > { %v6043_v18 = vpop.eup %6042  ;;  %v2802_v24 = vmul.f32 %v6041_v50, %v2794_v10  ;;  %v2832_v50 = vmul.f32 %v6037_v21, %v2816_v12 }
 0x5d8   : > { %v6045_v60 = vpop.eup %6044  ;;  %v2803_v56 = vmul.f32 %v6043_v18, %v2795_v14  ;;  %v7655_v58 = vadd.f32 %v2828_v51, %v2805_v11 }
 0x5d9   : > { %v6047_v36 = vpop.eup %6046  ;;  %v2804_v28 = vmul.f32 %v6045_v60, %v2796_v7  ;;  %v7657_v23 = vadd.f32 %v2825_v27, %v2802_v24 }
 0x5da   : > { %v6049_v33 = vpop.eup %6048  ;;  %v2806_v35 = vmul.f32 %v6047_v36, %v2798_v1  ;;  %v7659_v22 = vadd.f32 %v2826_v43, %v2803_v56  ;;  %2845 = vst.msk [vmem:[%s6888_s17 + $0x18] sm:$0x8] %vm2841_vm13, %v7655_v58  ;;  %v7720_v36 = vld [vmem:[#allocation11 + $0x18] sm:$0xff] }
 0x5db   : > { %v6051_v49 = vpop.eup %6050  ;;  %v2807_v5 = vmul.f32 %v6049_v33, %v2799_v3  ;;  %v7664_v25 = vadd.f32 %v2827_v59, %v2804_v28  ;;  %2842 = vst.msk [vmem:[%s6888_s17] sm:$0x8] %vm2841_vm13, %v7657_v23  ;;  %v2858_v15 = vrot.slane %v7657_v23, 3  ;;  %v7714_v59 = vld [vmem:[#allocation11 + $0x58] sm:$0xff]  ;;  %v7723_v3 = vld [vmem:[#allocation11 + $0x50] sm:$0xff]  ;;  %v7736_v33 = vld [vmem:[#allocation11 + $0x8] sm:$0xff] }
 0x5dc   : > { %v6053_v40 = vpop.eup %6052  ;;  %v2808_v16 = vmul.f32 %v6051_v49, %v2800_v4  ;;  %v7670_v26 = vadd.f32 %v2829_v53, %v2806_v35  ;;  %2843 = vst.msk [vmem:[%s6888_s17 + $0x8] sm:$0x8] %vm2841_vm13, %v7659_v22  ;;  %v2859_v10 = vrot.slane %v7659_v22, 2  ;;  %v7728_v28 = vld [vmem:[#allocation11 + $0x10] sm:$0xff]  ;;  %v7731_v53 = vld [vmem:[#allocation11 + $0x48] sm:$0xff]  ;;  %v7739_v4 = vld [vmem:[#allocation11 + $0x40] sm:$0xff] }
 0x5dd   : > { %v2809_v31 = vmul.f32 %v6053_v40, %v2801_v17  ;;  %v7676_v14 = vadd.f32 %v2830_v8, %v2807_v5  ;;  %2844 = vst.msk [vmem:[%s6888_s17 + $0x10] sm:$0x8] %vm2841_vm13, %v7664_v25  ;;  %v2861_v11 = vrot.slane %v7664_v25, 1  ;;  %v7745_v35 = vld [vmem:[#allocation11 + $0x38] sm:$0xff]  ;;  %v7748_v8 = vld [vmem:[#allocation11] sm:$0xff]  ;;  %v7754_v49 = vld [vmem:[#allocation11 + $0x30] sm:$0xff] }
 0x5de   : > { %v7682_v51 = vadd.f32 %v2831_v62, %v2808_v16  ;;  %2846 = vst.msk [vmem:[%s6888_s17 + $0x20] sm:$0x8] %vm2841_vm13, %v7670_v26  ;;  %v2860_v29 = vsel %vm1430_vm4, %v2859_v10, %v2858_v15  ;;  %v8338_v12 = vrot.slane %v7670_v26, 7  ;;  %v7761_v17 = vld [vmem:[#allocation11 + $0x28] sm:$0xff]  ;;  %v7765_v5 = vld [vmem:[#allocation11 + $0x20] sm:$0xff] }
 0x5df   : > { %v7688_v0 = vadd.f32 %v2832_v50, %v2809_v31  ;;  %2847 = vst.msk [vmem:[%s6888_s17 + $0x28] sm:$0x8] %vm2841_vm13, %v7676_v14  ;;  %v2862_v21 = vsel %vm1433_vm5, %v2861_v11, %v2860_v29  ;;  %v2866_v7 = vrot.slane %v7676_v14, 6  ;;  %8417 = vst [vmem:[#allocation24_spill] sm:$0xff] %v7761_v17  ;;  %v7772_v16 = vld [vmem:[%s8296_s7] ss:$0 sm:$0xff] }
 0x5e0   : > { %2848 = vst.msk [vmem:[%s6888_s17 + $0x30] sm:$0x8] %vm2841_vm13, %v7682_v51  ;;  %v2863_v18 = vsel %vm1436_vm6, %v7655_v58, %v2862_v21  ;;  %v2868_v27 = vrot.slane %v7682_v51, 5  ;;  %8418 = vst [vmem:[#allocation25_spill] sm:$0xff] %v7765_v5  ;;  %v7778_v10 = vld [vmem:[%s8296_s7 + $0x1] ss:$0 sm:$0xff] }
 0x5e1   : > { %2849 = vst.msk [vmem:[%s6888_s17 + $0x38] sm:$0x8] %vm2841_vm13, %v7688_v0  ;;  %v2865_v24 = vsel %vm1439_vm7, %v8338_v12, %v2863_v18  ;;  %v2870_v60 = vrot.slane %v7688_v0, 4  ;;  %8419 = vst [vmem:[#allocation32_spill] sm:$0xff] %v7772_v16 }
 0x5e2   : > { %v2867_v43 = vsel %vm1442_vm8, %v2866_v7, %v2865_v24  ;;  %8420 = vst [vmem:[#allocation33_spill] sm:$0xff] %v7778_v10 }
 0x5e3   : > { %v2869_v1 = vsel %vm1445_vm9, %v2868_v27, %v2867_v43 }
 0x5e4   : > { %v2871_v56 = vsel %vm1448_vm10, %v2870_v60, %v2869_v1 }
 0x5e5   : > { %5493 = vmatmul.mubr.msk.f32.vlgmr.msra.gmra.mxu0 %vm418_vm1, %v2871_v56  ;;  %5504 = vmatmul.mubr.msk.f32.vlgmr.msra.gmra.mxu1 %vm418_vm1, %v2871_v56 }
 0x5e6   : > { %5507 = vmatpush3.msra.mxu0 %v7714_v59  ;;  %5514 = vmatprep.mubr.msk.f32.mxu0 %vm6662_vm2, %v8391_v34 }
 0x5e7   : > { %5508 = vmatprep.subr.mxu0 %v8391_v34  ;;  %5518 = vmatpush3.msra.mxu1 %v7720_v36 }
 0x5e8   : > { %5509 = vmatpush3.msra.mxu0 %v7723_v3  ;;  %5519 = vmatprep.subr.mxu1 %v8391_v34 }
 0x5e9   : > { %5510 = vmatprep.subr.mxu0 %v8391_v34  ;;  %5520 = vmatpush3.msra.mxu1 %v7728_v28 }
 0x5ea   : > { %5511 = vmatpush3.msra.mxu0 %v7731_v53  ;;  %5521 = vmatprep.subr.mxu1 %v8391_v34 }
 0x5eb   : > { %5512 = vmatprep.subr.mxu0 %v8391_v34  ;;  %5522 = vmatpush3.msra.mxu1 %v7736_v33 }
 0x5ec   : > { %5513 = vmatpush3.msra.mxu0 %v7739_v4  ;;  %5523 = vmatprep.subr.mxu1 %v8391_v34 }
 0x5ed   : > { %5515 = vmatmul.mubr.msk.f32.vlgmr.msra.gmra.mxu0 %vm418_vm1, %v2871_v56  ;;  %5528 = vmatprep.subr.mxu0 %v8391_v34 }
 0x5ee   : > { %5529 = vmatpush3.msra.mxu0 %v7745_v35  ;;  %5524 = vmatpush3.msra.mxu1 %v7748_v8 }
 0x5ef   : > { %5530 = vmatprep.subr.mxu0 %v8391_v34  ;;  %5525 = vmatprep.mubr.msk.f32.mxu1 %vm6662_vm2, %v8391_v34 }
 0x5f0   : > { %5531 = vmatpush3.msra.mxu0 %v7754_v49  ;;  %5536 = vmatprep.mubr.msk.f32.mxu0 %vm6662_vm2, %v8391_v34 }
 0x5f1   : > { %5532 = vmatprep.subr.mxu0 %v8391_v34  ;;  %5539 = vmatprep.subr.mxu1 %v8391_v34 }
 0x5f2   : > { %5533 = vmatpush3.msra.mxu0 %v7761_v17 }
 0x5f3   : > { %5534 = vmatprep.subr.mxu0 %v8391_v34 }
 0x5f4   : > { %5535 = vmatpush3.msra.mxu0 %v7765_v5 }
 0x5f5   : > { %5550 = vmatprep.subr.mxu0 %v8391_v34 }
 0x6a5   : > { %v2940_v15 = vpop.f32.mrf.mxu0  ;;  %v3010_v40 = vpop.f32.mrf.mxu1 }
 0x6a6   : > { %v2941_v62 = vadd.f32 %v7772_v16, %v2940_v15  ;;  %v3011_v31 = vadd.f32 %v7778_v10, %v3010_v40 }
 0x6a7   : > { %v5494_v50 = vpop.f32.mrf.mxu0  ;;  %v5505_v11 = vpop.f32.mrf.mxu1 }
 0x6a8   : > { %v3085_v29 = vrot.slane %v2941_v62, 4  ;;  %v3086_v21 = vrot.slane %v2941_v62, 5  ;;  %v3087_v18 = vrot.slane %v2941_v62, 6  ;;  %v3088_v7 = vrot.slane %v2941_v62, 7 }
 0x6a9   : > { %v3089_v24 = vrot.slane %v2941_v62, 1  ;;  %v3090_v27 = vrot.slane %v2941_v62, 2  ;;  %v3091_v43 = vrot.slane %v2941_v62, 3  ;;  %v3104_v60 = vadd.f32 %v2941_v62, %v7105_v46 }
 0x6aa   : > { %v3100_v1 = vadd.f32 %v3085_v29, %v7096_v41  ;;  %v3101_v56 = vadd.f32 %v3086_v21, %v8409_v44  ;;  %v3102_v15 = vadd.f32 %v3087_v18, %v8410_v37  ;;  %v3103_v12 = vadd.f32 %v3088_v7, %v7098_v42 }
 0x6ab   : > { %v3105_v40 = vadd.f32 %v3089_v24, %v7103_v45  ;;  %v3106_v50 = vadd.f32 %v3090_v27, %v8411_v13  ;;  %v3107_v11 = vadd.f32 %v3091_v43, %v7107_v47  ;;  %v5060_v10 = vmul.f32 -1.442695, %v3104_v60 }
 0x6ac   : > { %v5056_v16 = vmul.f32 -1.442695, %v3100_v1  ;;  %v5057_v5 = vmul.f32 -1.442695, %v3101_v56  ;;  %v5058_v17 = vmul.f32 -1.442695, %v3102_v15  ;;  %v3176_v62 = vadd.f32 %v3011_v31, %v7156_v57 }
 0x6ad   : > { %v5059_v46 = vmul.f32 -1.442695, %v3103_v12  ;;  %6054 = vpow2.f32 %v5060_v10  ;;  %v5061_v29 = vmul.f32 -1.442695, %v3105_v40  ;;  %v5062_v21 = vmul.f32 -1.442695, %v3106_v50  ;;  %v7790_v44 = vpop.f32.mrf.mxu0 }
 0x6ae   : > { %6056 = vpow2.f32 %v5056_v16  ;;  %v5063_v18 = vmul.f32 -1.442695, %v3107_v11  ;;  %v3157_v7 = vrot.slane %v3011_v31, 4  ;;  %v3158_v24 = vrot.slane %v3011_v31, 5 }
 0x6af   : > { %6058 = vpow2.f32 %v5057_v5  ;;  %v3159_v27 = vrot.slane %v3011_v31, 6  ;;  %v3160_v13 = vrot.slane %v3011_v31, 7  ;;  %v3161_v43 = vrot.slane %v3011_v31, 1  ;;  %v5516_v60 = vpop.f32.mrf.mxu0 }
 0x6b0   : > { %6060 = vpow2.f32 %v5058_v17  ;;  %v3162_v1 = vrot.slane %v3011_v31, 2  ;;  %v3163_v56 = vrot.slane %v3011_v31, 3  ;;  %v3172_v15 = vadd.f32 %v3157_v7, %v7141_v38 }
 0x6b1   : > { %6062 = vpow2.f32 %v5059_v46  ;;  %v3173_v12 = vadd.f32 %v3158_v24, %v7138_v32  ;;  %v3174_v10 = vadd.f32 %v3159_v27, %v7150_v55  ;;  %v3175_v16 = vadd.f32 %v3160_v13, %v7147_v54 }
 0x6b2   : > { %6064 = vpow2.f32 %v5061_v29  ;;  %v3177_v40 = vadd.f32 %v3161_v43, %v7160_v19  ;;  %v3178_v5 = vadd.f32 %v3162_v1, %v7172_v39  ;;  %v5064_v50 = vmul.f32 -1.442695, %v3172_v15 }
 0x6b3   : > { %6066 = vpow2.f32 %v5062_v21  ;;  %v5065_v11 = vmul.f32 -1.442695, %v3173_v12  ;;  %v5066_v17 = vmul.f32 -1.442695, %v3174_v10  ;;  %v3179_v31 = vadd.f32 %v3163_v56, %v7176_v61 }
 0x6b4   : > { %6068 = vpow2.f32 %v5063_v18  ;;  %v5067_v7 = vmul.f32 -1.442695, %v3175_v16  ;;  %v5068_v46 = vmul.f32 -1.442695, %v3176_v62  ;;  %v5069_v24 = vmul.f32 -1.442695, %v3177_v40 }
 0x6b5   : > { %6070 = vpow2.f32 %v5064_v50  ;;  %v5070_v27 = vmul.f32 -1.442695, %v3178_v5  ;;  %v5071_v13 = vmul.f32 -1.442695, %v3179_v31 }
 0x6b6   : > { %6072 = vpow2.f32 %v5065_v11 }
 0x6b7   : > { %6074 = vpow2.f32 %v5066_v17 }
 0x6b8   : > { %6076 = vpow2.f32 %v5067_v7 }
 0x6b9   : > { %6078 = vpow2.f32 %v5068_v46 }
 0x6ba   : > { %v6055_v29 = vpop.eup %6054  ;;  %6080 = vpow2.f32 %v5069_v24 }
 0x6bb   : > { %v6057_v43 = vpop.eup %6056  ;;  %v3136_v21 = vadd.f32 1.0, %v6055_v29  ;;  %6082 = vpow2.f32 %v5070_v27 }
 0x6bc   : > { %v6059_v60 = vpop.eup %6058  ;;  %v3132_v1 = vadd.f32 1.0, %v6057_v43  ;;  %6084 = vpow2.f32 %v5071_v13 }
 0x6bd   : > { %v6061_v18 = vpop.eup %6060  ;;  %v3133_v56 = vadd.f32 1.0, %v6059_v60  ;;  %6086 = vrcp.f32 %v3136_v21  ;;  %v7802_v21 = vld [vmem:[%s8296_s7 + $0x2] ss:$0 sm:$0xff] }
 0x6be   : > { %v6063_v15 = vpop.eup %6062  ;;  %v3134_v62 = vadd.f32 1.0, %v6061_v18  ;;  %6088 = vrcp.f32 %v3132_v1  ;;  %v3081_v60 = vadd.f32 %v7802_v21, %v7790_v44 }
 0x6bf   : > { %v6065_v12 = vpop.eup %6064  ;;  %v3135_v10 = vadd.f32 1.0, %v6063_v15  ;;  %6090 = vrcp.f32 %v3133_v56 }
 0x6c0   : > { %v6067_v16 = vpop.eup %6066  ;;  %v3137_v40 = vadd.f32 1.0, %v6065_v12  ;;  %6092 = vrcp.f32 %v3134_v62 }
 0x6c1   : > { %v6069_v5 = vpop.eup %6068  ;;  %v3138_v50 = vadd.f32 1.0, %v6067_v16  ;;  %6094 = vrcp.f32 %v3135_v10  ;;  %v3229_v16 = vrot.slane %v3081_v60, 4 }
 0x6c2   : > { %v6071_v11 = vpop.eup %6070  ;;  %v3139_v17 = vadd.f32 1.0, %v6069_v5  ;;  %6096 = vrcp.f32 %v3137_v40 }
 0x6c3   : > { %v6073_v31 = vpop.eup %6072  ;;  %6098 = vrcp.f32 %v3138_v50  ;;  %v3204_v7 = vadd.f32 1.0, %v6071_v11  ;;  %v3230_v50 = vrot.slane %v3081_v60, 5 }
 0x6c4   : > { %v6075_v46 = vpop.eup %6074  ;;  %6100 = vrcp.f32 %v3139_v17  ;;  %v3205_v24 = vadd.f32 1.0, %v6073_v31  ;;  %v3231_v31 = vrot.slane %v3081_v60, 6 }
 0x6c5   : > { %v6077_v27 = vpop.eup %6076  ;;  %v3206_v13 = vadd.f32 1.0, %v6075_v46  ;;  %6102 = vrcp.f32 %v3204_v7  ;;  %v3232_v46 = vrot.slane %v3081_v60, 7 }
 0x6c6   : > { %v6079_v29 = vpop.eup %6078  ;;  %v3207_v43 = vadd.f32 1.0, %v6077_v27  ;;  %6104 = vrcp.f32 %v3205_v24 }
 0x6c7   : > { %v6081_v1 = vpop.eup %6080  ;;  %v3208_v18 = vadd.f32 1.0, %v6079_v29  ;;  %6106 = vrcp.f32 %v3206_v13  ;;  %v3233_v29 = vrot.slane %v3081_v60, 1 }
 0x6c8   : > { %v6083_v56 = vpop.eup %6082  ;;  %v3209_v15 = vadd.f32 1.0, %v6081_v1  ;;  %6108 = vrcp.f32 %v3207_v43 }
 0x6c9   : > { %v6085_v62 = vpop.eup %6084  ;;  %v3210_v12 = vadd.f32 1.0, %v6083_v56  ;;  %6110 = vrcp.f32 %v3208_v18 }
 0x6ca   : > { %v6087_v10 = vpop.eup %6086  ;;  %v3211_v40 = vadd.f32 1.0, %v6085_v62  ;;  %6112 = vrcp.f32 %v3209_v15  ;;  %v3234_v62 = vrot.slane %v3081_v60, 2  ;;  %v3235_v15 = vrot.slane %v3081_v60, 3 }
 0x6cb   : > { %v6089_v5 = vpop.eup %6088  ;;  %v3248_v11 = vmul.f32 %v6087_v10, %v3081_v60  ;;  %6114 = vrcp.f32 %v3210_v12 }
 0x6cc   : > { %v6091_v17 = vpop.eup %6090  ;;  %v3244_v44 = vmul.f32 %v6089_v5, %v3229_v16  ;;  %6116 = vrcp.f32 %v3211_v40 }
 0x6cd   : > { %v6093_v7 = vpop.eup %6092  ;;  %v3245_v27 = vmul.f32 %v6091_v17, %v3230_v50  ;;  %v3256_v24 = vadd.f32 %v3248_v11, %v8413_v30 }
 0x6ce   : > { %v6095_v13 = vpop.eup %6094  ;;  %v3246_v1 = vmul.f32 %v6093_v7, %v3231_v31  ;;  %v3252_v43 = vadd.f32 %v3244_v44, %v8393_v52 }
 0x6cf   : > { %v6097_v56 = vpop.eup %6096  ;;  %v3247_v10 = vmul.f32 %v6095_v13, %v3232_v46  ;;  %v3253_v18 = vadd.f32 %v3245_v27, %v7190_v2  ;;  %6118 = vtanh.f32 %v3256_v24 }
 0x6d0   : > { %v6099_v16 = vpop.eup %6098  ;;  %v3249_v5 = vmul.f32 %v6097_v56, %v3233_v29  ;;  %v3254_v50 = vadd.f32 %v3246_v1, %v8412_v9  ;;  %6120 = vtanh.f32 %v3252_v43  ;;  %v3287_v43 = vrot.slane %v7655_v58, 7 }
 0x6d1   : > { %v6101_v12 = vpop.eup %6100  ;;  %v3250_v11 = vmul.f32 %v6099_v16, %v3234_v62  ;;  %v3255_v17 = vadd.f32 %v3247_v10, %v8395_v6  ;;  %6122 = vtanh.f32 %v3253_v18  ;;  %v3284_v10 = vrot.slane %v7657_v23, 7 }
 0x6d2   : > { %6124 = vtanh.f32 %v3254_v50  ;;  %v3251_v31 = vmul.f32 %v6101_v12, %v3235_v15  ;;  %v3257_v40 = vadd.f32 %v3249_v5, %v8414_v48  ;;  %v6103_v7 = vpop.eup %6102  ;;  %v3285_v18 = vrot.slane %v7659_v22, 7 }
 0x6d3   : > { %6126 = vtanh.f32 %v3255_v17  ;;  %v3258_v44 = vadd.f32 %v3250_v11, %v8415_v20  ;;  %v6105_v60 = vpop.eup %6104  ;;  %v3286_v16 = vrot.slane %v7664_v25, 7  ;;  %v3268_v5 = vsub.f32 1.0, %v6103_v7 }
 0x6d4   : > { %v3259_v46 = vadd.f32 %v3251_v31, %v8416_v63  ;;  %6128 = vtanh.f32 %v3257_v40  ;;  %v6107_v27 = vpop.eup %6106  ;;  %v3288_v50 = vrot.slane %v7676_v14, 7  ;;  %v3289_v12 = vrot.slane %v7682_v51, 7 }
 0x6d5   : > { %6130 = vtanh.f32 %v3258_v44  ;;  %v6109_v24 = vpop.eup %6108  ;;  %v3290_v11 = vrot.slane %v7688_v0, 7  ;;  %v3269_v31 = vsub.f32 1.0, %v6105_v60  ;;  %v8421_v58 = vrot.slane %v7670_v26, 7 }
 0x6d6   : > { %6132 = vtanh.f32 %v3259_v46  ;;  %v6111_v13 = vpop.eup %6110  ;;  %v3270_v46 = vsub.f32 1.0, %v6107_v27  ;;  %v3299_v63 = vmul.f32 %v6103_v7, %v3284_v10  ;;  %v3300_v25 = vmul.f32 %v6105_v60, %v3285_v18 }
 0x6d7   : > { %v6113_v29 = vpop.eup %6112  ;;  %v3272_v62 = vsub.f32 1.0, %v6111_v13  ;;  %v3303_v44 = vmul.f32 %v6111_v13, %v8421_v58  ;;  %v3271_v30 = vsub.f32 1.0, %v6109_v24  ;;  %v3301_v6 = vmul.f32 %v6107_v27, %v3286_v16 }
 0x6d8   : > { %v6115_v1 = vpop.eup %6114  ;;  %v3273_v9 = vsub.f32 1.0, %v6113_v29  ;;  %v3304_v7 = vmul.f32 %v6113_v29, %v3288_v50 }
 0x6d9   : > { %v6117_v56 = vpop.eup %6116  ;;  %v3274_v58 = vsub.f32 1.0, %v6115_v1 }
 0x6da   : > { %v3275_v10 = vsub.f32 1.0, %v6117_v56 }
 0x6dc   : > { %v6119_v15 = vpop.eup %6118 }
 0x6dd   : > { %v6121_v17 = vpop.eup %6120  ;;  %v3280_v40 = vmul.f32 %v6119_v15, %v3272_v62  ;;  %v3302_v15 = vmul.f32 %v6109_v24, %v3287_v43  ;;  %v3305_v24 = vmul.f32 %v6115_v1, %v3289_v12  ;;  %v3306_v43 = vmul.f32 %v6117_v56, %v3290_v11 }
 0x6de   : > { %v6123_v23 = vpop.eup %6122  ;;  %v3276_v22 = vmul.f32 %v6121_v17, %v3268_v5 }
 0x6df   : > { %v6125_v20 = vpop.eup %6124  ;;  %v3277_v14 = vmul.f32 %v6123_v23, %v3269_v31  ;;  %v7823_v51 = vadd.f32 %v3303_v44, %v3280_v40 }
 0x6e0   : > { %v6127_v0 = vpop.eup %6126  ;;  %v3278_v62 = vmul.f32 %v6125_v20, %v3270_v46  ;;  %v7825_v26 = vadd.f32 %v3299_v63, %v3276_v22 }
 0x6e1   : > { %v6129_v13 = vpop.eup %6128  ;;  %v3279_v5 = vmul.f32 %v6127_v0, %v3271_v30  ;;  %v7827_v60 = vadd.f32 %v3300_v25, %v3277_v14  ;;  %3320 = vst.msk [vmem:[%s6888_s17 + $0x20] sm:$0x10] %vm3315_vm14, %v7823_v51 }
 0x6e2   : > { %v6131_v27 = vpop.eup %6130  ;;  %v3281_v18 = vmul.f32 %v6129_v13, %v3273_v9  ;;  %v7832_v16 = vadd.f32 %v3301_v6, %v3278_v62  ;;  %3316 = vst.msk [vmem:[%s6888_s17] sm:$0x10] %vm3315_vm14, %v7825_v26  ;;  %v3332_v20 = vrot.slane %v7825_v26, 4 }
 0x6e3   : > { %v6133_v63 = vpop.eup %6132  ;;  %v3282_v30 = vmul.f32 %v6131_v27, %v3274_v58  ;;  %v7838_v29 = vadd.f32 %v3302_v15, %v3279_v5  ;;  %3317 = vst.msk [vmem:[%s6888_s17 + $0x8] sm:$0x10] %vm3315_vm14, %v7827_v60  ;;  %v3333_v9 = vrot.slane %v7827_v60, 3 }
 0x6e4   : > { %v3283_v6 = vmul.f32 %v6133_v63, %v3275_v10  ;;  %v7844_v50 = vadd.f32 %v3304_v7, %v3281_v18  ;;  %3318 = vst.msk [vmem:[%s6888_s17 + $0x10] sm:$0x10] %vm3315_vm14, %v7832_v16  ;;  %v3335_v17 = vrot.slane %v7832_v16, 2 }
 0x6e5   : > { %v7850_v31 = vadd.f32 %v3305_v24, %v3282_v30  ;;  %3319 = vst.msk [vmem:[%s6888_s17 + $0x18] sm:$0x10] %vm3315_vm14, %v7838_v29  ;;  %v3334_v1 = vsel %vm1430_vm4, %v3333_v9, %v3332_v20  ;;  %v3337_v12 = vrot.slane %v7838_v29, 1  ;;  %v8426_v20 = vld [vmem:[#allocation20_spill] sm:$0xff]  ;;  %v8427_v9 = vld [vmem:[#allocation22_spill] sm:$0xff] }
 0x6e6   : > { %v7857_v40 = vadd.f32 %v3306_v43, %v3283_v6  ;;  %3321 = vst.msk [vmem:[%s6888_s17 + $0x28] sm:$0x10] %vm3315_vm14, %v7844_v50  ;;  %v3336_v56 = vsel %vm1433_vm5, %v3335_v17, %v3334_v1  ;;  %v3340_v44 = vrot.slane %v7844_v50, 7  ;;  %v8428_v43 = vld [vmem:[#allocation23_spill] sm:$0xff] }
 0x6e7   : > { %3322 = vst.msk [vmem:[%s6888_s17 + $0x30] sm:$0x10] %vm3315_vm14, %v7850_v31  ;;  %v3338_v11 = vsel %vm1436_vm6, %v3337_v12, %v3336_v56  ;;  %v3342_v46 = vrot.slane %v7850_v31, 6 }
 0x6e8   : > { %3323 = vst.msk [vmem:[%s6888_s17 + $0x38] sm:$0x10] %vm3315_vm14, %v7857_v40  ;;  %v3339_v23 = vsel %vm1439_vm7, %v7823_v51, %v3338_v11  ;;  %v3344_v25 = vrot.slane %v7857_v40, 5 }
 0x6e9   : > { %v3341_v22 = vsel %vm1442_vm8, %v3340_v44, %v3339_v23 }
 0x6ea   : > { %v3343_v14 = vsel %vm1445_vm9, %v3342_v46, %v3341_v22 }
 0x6eb   : > { %v3345_v0 = vsel %vm1448_vm10, %v3344_v25, %v3343_v14 }
 0x6ec   : > { %5526 = vmatmul.mubr.msk.f32.vlgmr.msra.gmra.mxu1 %vm418_vm1, %v3345_v0  ;;  %5537 = vmatmul.mubr.msk.f32.vlgmr.msra.gmra.mxu0 %vm418_vm1, %v3345_v0 }
 0x6ed   : > { %5540 = vmatpush3.msra.mxu1 %v7714_v59  ;;  %5547 = vmatprep.mubr.msk.f32.mxu1 %vm6662_vm2, %v8391_v34  ;;  %v8422_v59 = vld [vmem:[#allocation24_spill] sm:$0xff] }
 0x6ee   : > { %5541 = vmatprep.subr.mxu1 %v8391_v34  ;;  %5551 = vmatpush3.msra.mxu0 %v7720_v36  ;;  %v8423_v36 = vld [vmem:[#allocation25_spill] sm:$0xff] }
 0x6ef   : > { %5542 = vmatpush3.msra.mxu1 %v7723_v3  ;;  %5552 = vmatprep.subr.mxu0 %v8391_v34 }
 0x6f0   : > { %5543 = vmatprep.subr.mxu1 %v8391_v34  ;;  %5553 = vmatpush3.msra.mxu0 %v7728_v28 }
 0x6f1   : > { %5544 = vmatpush3.msra.mxu1 %v7731_v53  ;;  %5554 = vmatprep.subr.mxu0 %v8391_v34  ;;  %v8424_v53 = vld [vmem:[#allocation32_spill] sm:$0xff] }
 0x6f2   : > { %5545 = vmatprep.subr.mxu1 %v8391_v34  ;;  %5555 = vmatpush3.msra.mxu0 %v7736_v33 }
 0x6f3   : > { %5546 = vmatpush3.msra.mxu1 %v7739_v4  ;;  %5556 = vmatprep.subr.mxu0 %v8391_v34  ;;  %v8425_v4 = vld [vmem:[#allocation33_spill] sm:$0xff] }
 0x6f4   : > { %5548 = vmatmul.mubr.msk.f32.vlgmr.msra.gmra.mxu1 %vm418_vm1, %v3345_v0  ;;  %5561 = vmatprep.subr.mxu1 %v8391_v34 }
 0x6f5   : > { %5562 = vmatpush3.msra.mxu1 %v7745_v35  ;;  %5557 = vmatpush3.msra.mxu0 %v7748_v8 }
 0x6f6   : > { %5563 = vmatprep.subr.mxu1 %v8391_v34  ;;  %5558 = vmatprep.mubr.msk.f32.mxu0 %vm6662_vm2, %v8391_v34 }
 0x6f7   : > { %5564 = vmatpush3.msra.mxu1 %v7754_v49  ;;  %5569 = vmatprep.mubr.msk.f32.mxu1 %vm6662_vm2, %v8391_v34 }
 0x6f8   : > { %5565 = vmatprep.subr.mxu1 %v8391_v34  ;;  %5572 = vmatprep.subr.mxu0 %v8391_v34 }
 0x6f9   : > { %5566 = vmatpush3.msra.mxu1 %v8422_v59 }
 0x6fa   : > { %5567 = vmatprep.subr.mxu1 %v8391_v34 }
 0x6fb   : > { %5568 = vmatpush3.msra.mxu1 %v8423_v36 }
 0x6fc   : > { %5583 = vmatprep.subr.mxu1 %v8391_v34 }
 0x7ac   : > { %v3414_v3 = vpop.f32.mrf.mxu1  ;;  %v3484_v28 = vpop.f32.mrf.mxu0 }
 0x7ad   : > { %v3415_v33 = vadd.f32 %v8424_v53, %v3414_v3  ;;  %v3485_v35 = vadd.f32 %v8425_v4, %v3484_v28 }
 0x7ae   : > { %v5527_v8 = vpop.f32.mrf.mxu1  ;;  %v5538_v49 = vpop.f32.mrf.mxu0 }
 0x7af   : > { %v3559_v62 = vrot.slane %v3415_v33, 3  ;;  %v3560_v15 = vrot.slane %v3415_v33, 4  ;;  %v3561_v13 = vrot.slane %v3415_v33, 5  ;;  %v3562_v58 = vrot.slane %v3415_v33, 6 }
 0x7b0   : > { %v3563_v5 = vrot.slane %v3415_v33, 7  ;;  %v3564_v7 = vrot.slane %v3415_v33, 1  ;;  %v3565_v27 = vrot.slane %v3415_v33, 2  ;;  %v3579_v10 = vadd.f32 %v3415_v33, %v7103_v45 }
 0x7b1   : > { %v3574_v18 = vadd.f32 %v3559_v62, %v7096_v41  ;;  %v3575_v63 = vadd.f32 %v3560_v15, %v8426_v20  ;;  %v3576_v30 = vadd.f32 %v3561_v13, %v8410_v37  ;;  %v3577_v24 = vadd.f32 %v3562_v58, %v7098_v42 }
 0x7b2   : > { %v3578_v6 = vadd.f32 %v3563_v5, %v8427_v9  ;;  %v3580_v17 = vadd.f32 %v3564_v7, %v8428_v43  ;;  %v3581_v1 = vadd.f32 %v3565_v27, %v7107_v47  ;;  %v5080_v12 = vmul.f32 -1.442695, %v3579_v10 }
 0x7b3   : > { %v5075_v56 = vmul.f32 -1.442695, %v3574_v18  ;;  %v5076_v11 = vmul.f32 -1.442695, %v3575_v63  ;;  %v5077_v23 = vmul.f32 -1.442695, %v3576_v30  ;;  %v3651_v5 = vadd.f32 %v3485_v35, %v7160_v19 }
 0x7b4   : > { %v5078_v46 = vmul.f32 -1.442695, %v3577_v24  ;;  %v5079_v22 = vmul.f32 -1.442695, %v3578_v6  ;;  %6134 = vpow2.f32 %v5080_v12  ;;  %v5081_v25 = vmul.f32 -1.442695, %v3580_v17  ;;  %v7923_v14 = vpop.f32.mrf.mxu1 }
 0x7b5   : > { %6136 = vpow2.f32 %v5075_v56  ;;  %v5082_v0 = vmul.f32 -1.442695, %v3581_v1  ;;  %v3631_v59 = vrot.slane %v3485_v35, 3  ;;  %v3632_v36 = vrot.slane %v3485_v35, 4 }
 0x7b6   : > { %6138 = vpow2.f32 %v5076_v11  ;;  %v3633_v3 = vrot.slane %v3485_v35, 5  ;;  %v3634_v28 = vrot.slane %v3485_v35, 6  ;;  %v3635_v53 = vrot.slane %v3485_v35, 7  ;;  %v5549_v33 = vpop.f32.mrf.mxu1 }
 0x7b7   : > { %6140 = vpow2.f32 %v5077_v23  ;;  %v3636_v4 = vrot.slane %v3485_v35, 1  ;;  %v3637_v8 = vrot.slane %v3485_v35, 2  ;;  %v3646_v49 = vadd.f32 %v3631_v59, %v7141_v38 }
 0x7b8   : > { %6142 = vpow2.f32 %v5078_v46  ;;  %v3647_v62 = vadd.f32 %v3632_v36, %v7138_v32  ;;  %v3648_v15 = vadd.f32 %v3633_v3, %v7150_v55  ;;  %v3649_v13 = vadd.f32 %v3634_v28, %v7147_v54 }
 0x7b9   : > { %6144 = vpow2.f32 %v5079_v22  ;;  %v3650_v58 = vadd.f32 %v3635_v53, %v7156_v57  ;;  %v3652_v7 = vadd.f32 %v3636_v4, %v7172_v39  ;;  %v5083_v27 = vmul.f32 -1.442695, %v3646_v49 }
 0x7ba   : > { %6146 = vpow2.f32 %v5081_v25  ;;  %v5084_v10 = vmul.f32 -1.442695, %v3647_v62  ;;  %v5085_v18 = vmul.f32 -1.442695, %v3648_v15  ;;  %v3653_v63 = vadd.f32 %v3637_v8, %v7176_v61 }
 0x7bb   : > { %6148 = vpow2.f32 %v5082_v0  ;;  %v5086_v30 = vmul.f32 -1.442695, %v3649_v13  ;;  %v5087_v24 = vmul.f32 -1.442695, %v3650_v58  ;;  %v5088_v6 = vmul.f32 -1.442695, %v3651_v5 }
 0x7bc   : > { %6150 = vpow2.f32 %v5083_v27  ;;  %v5089_v17 = vmul.f32 -1.442695, %v3652_v7  ;;  %v5090_v1 = vmul.f32 -1.442695, %v3653_v63 }
 0x7bd   : > { %6152 = vpow2.f32 %v5084_v10  ;;  %v3555_v10 = vadd.f32 %v7802_v21, %v7923_v14 }
 0x7be   : > { %6154 = vpow2.f32 %v5085_v18 }
 0x7bf   : > { %6156 = vpow2.f32 %v5086_v30 }
 0x7c0   : > { %6158 = vpow2.f32 %v5087_v24 }
 0x7c1   : > { %v6135_v35 = vpop.eup %6134  ;;  %6160 = vpow2.f32 %v5088_v6 }
 0x7c2   : > { %v6137_v12 = vpop.eup %6136  ;;  %v3611_v56 = vadd.f32 1.0, %v6135_v35  ;;  %6162 = vpow2.f32 %v5089_v17  ;;  %v3703_v35 = vrot.slane %v3555_v10, 3 }
 0x7c3   : > { %v6139_v11 = vpop.eup %6138  ;;  %v3606_v23 = vadd.f32 1.0, %v6137_v12  ;;  %6164 = vpow2.f32 %v5090_v1 }
 0x7c4   : > { %v6141_v46 = vpop.eup %6140  ;;  %v3607_v22 = vadd.f32 1.0, %v6139_v11  ;;  %6166 = vrcp.f32 %v3611_v56  ;;  %v3704_v11 = vrot.slane %v3555_v10, 4 }
 0x7c5   : > { %v6143_v25 = vpop.eup %6142  ;;  %v3608_v0 = vadd.f32 1.0, %v6141_v46  ;;  %6168 = vrcp.f32 %v3606_v23 }
 0x7c6   : > { %v6145_v59 = vpop.eup %6144  ;;  %v3609_v36 = vadd.f32 1.0, %v6143_v25  ;;  %6170 = vrcp.f32 %v3607_v22  ;;  %v3705_v22 = vrot.slane %v3555_v10, 5  ;;  %v3706_v25 = vrot.slane %v3555_v10, 6 }
 0x7c7   : > { %v6147_v3 = vpop.eup %6146  ;;  %v3610_v28 = vadd.f32 1.0, %v6145_v59  ;;  %6172 = vrcp.f32 %v3608_v0 }
 0x7c8   : > { %v6149_v53 = vpop.eup %6148  ;;  %v3612_v33 = vadd.f32 1.0, %v6147_v3  ;;  %6174 = vrcp.f32 %v3609_v36  ;;  %v3707_v3 = vrot.slane %v3555_v10, 7 }
 0x7c9   : > { %v6151_v4 = vpop.eup %6150  ;;  %v3613_v8 = vadd.f32 1.0, %v6149_v53  ;;  %6176 = vrcp.f32 %v3610_v28 }
 0x7ca   : > { %v6153_v49 = vpop.eup %6152  ;;  %6178 = vrcp.f32 %v3612_v33  ;;  %v3678_v62 = vadd.f32 1.0, %v6151_v4  ;;  %v3708_v4 = vrot.slane %v3555_v10, 1 }
 0x7cb   : > { %v6155_v15 = vpop.eup %6154  ;;  %6180 = vrcp.f32 %v3613_v8  ;;  %v3679_v13 = vadd.f32 1.0, %v6153_v49 }
 0x7cc   : > { %v6157_v58 = vpop.eup %6156  ;;  %v3680_v5 = vadd.f32 1.0, %v6155_v15  ;;  %6182 = vrcp.f32 %v3678_v62  ;;  %v3709_v15 = vrot.slane %v3555_v10, 2 }
 0x7cd   : > { %v6159_v7 = vpop.eup %6158  ;;  %v3681_v27 = vadd.f32 1.0, %v6157_v58  ;;  %6184 = vrcp.f32 %v3679_v13  ;;  %v8429_v58 = vld [vmem:[#allocation27_spill] sm:$0xff] }
 0x7ce   : > { %v6161_v18 = vpop.eup %6160  ;;  %v3682_v30 = vadd.f32 1.0, %v6159_v7  ;;  %6186 = vrcp.f32 %v3680_v5 }
 0x7cf   : > { %v6163_v63 = vpop.eup %6162  ;;  %v3683_v24 = vadd.f32 1.0, %v6161_v18  ;;  %6188 = vrcp.f32 %v3681_v27  ;;  %v8430_v27 = vld [vmem:[#allocation26_spill] sm:$0xff] }
 0x7d0   : > { %v6165_v6 = vpop.eup %6164  ;;  %v3684_v17 = vadd.f32 1.0, %v6163_v63 }
 0x7d1   : > { %v6167_v1 = vpop.eup %6166  ;;  %v3685_v12 = vadd.f32 1.0, %v6165_v6  ;;  %6190 = vrcp.f32 %v3683_v24 }
 0x7d2   : > { %v6169_v56 = vpop.eup %6168  ;;  %v3723_v23 = vmul.f32 %v6167_v1, %v3555_v10  ;;  %6192 = vrcp.f32 %v3682_v30  ;;  %v8431_v30 = vld [vmem:[#allocation28_spill] sm:$0xff] }
 0x7d3   : > { %v6171_v46 = vpop.eup %6170  ;;  %v3718_v21 = vmul.f32 %v6169_v56, %v3703_v35  ;;  %6194 = vrcp.f32 %v3684_v17  ;;  %v8432_v17 = vld [vmem:[#allocation30_spill] sm:$0xff] }
 0x7d4   : > { %v6173_v14 = vpop.eup %6172  ;;  %v3719_v0 = vmul.f32 %v6171_v46, %v3704_v11  ;;  %v3731_v59 = vadd.f32 %v3723_v23, %v8414_v48  ;;  %6196 = vrcp.f32 %v3685_v12  ;;  %v8433_v12 = vld [vmem:[#allocation31_spill] sm:$0xff] }
 0x7d5   : > { %v6175_v36 = vpop.eup %6174  ;;  %v3720_v28 = vmul.f32 %v6173_v14, %v3705_v22  ;;  %v3726_v53 = vadd.f32 %v3718_v21, %v8393_v52  ;;  %v3762_v14 = vrot.slane %v7823_v51, 7 }
 0x7d6   : > { %v6177_v33 = vpop.eup %6176  ;;  %v3721_v8 = vmul.f32 %v6175_v36, %v3706_v25  ;;  %v3727_v49 = vadd.f32 %v3719_v0, %v7190_v2  ;;  %6198 = vtanh.f32 %v3731_v59  ;;  %v3758_v59 = vrot.slane %v7825_v26, 7 }
 0x7d7   : > { %v6179_v62 = vpop.eup %6178  ;;  %v3722_v13 = vmul.f32 %v6177_v33, %v3707_v3  ;;  %v3728_v5 = vadd.f32 %v3720_v28, %v8429_v58  ;;  %6200 = vtanh.f32 %v3726_v53  ;;  %v3759_v36 = vrot.slane %v7827_v60, 7 }
 0x7d8   : > { %v6181_v7 = vpop.eup %6180  ;;  %v3729_v18 = vadd.f32 %v3721_v8, %v8430_v27  ;;  %6202 = vtanh.f32 %v3727_v49  ;;  %v3724_v63 = vmul.f32 %v6179_v62, %v3708_v4  ;;  %v3760_v3 = vrot.slane %v7832_v16, 7 }
 0x7d9   : > { %v3730_v24 = vadd.f32 %v3722_v13, %v8431_v30  ;;  %6204 = vtanh.f32 %v3728_v5  ;;  %v3725_v6 = vmul.f32 %v6181_v7, %v3709_v15  ;;  %v6183_v35 = vpop.eup %6182  ;;  %v3761_v33 = vrot.slane %v7838_v29, 7 }
 0x7da   : > { %6206 = vtanh.f32 %v3729_v18  ;;  %v3732_v1 = vadd.f32 %v3724_v63, %v8432_v17  ;;  %v6185_v56 = vpop.eup %6184  ;;  %v3742_v53 = vsub.f32 1.0, %v6183_v35  ;;  %v3763_v4 = vrot.slane %v7850_v31, 7 }
 0x7db   : > { %6208 = vtanh.f32 %v3730_v24  ;;  %v3733_v10 = vadd.f32 %v3725_v6, %v8433_v12  ;;  %v6187_v11 = vpop.eup %6186  ;;  %v3764_v8 = vrot.slane %v7857_v40, 7  ;;  %v3743_v62 = vsub.f32 1.0, %v6185_v56 }
 0x7dc   : > { %6210 = vtanh.f32 %v3732_v1  ;;  %v6189_v23 = vpop.eup %6188  ;;  %v3744_v13 = vsub.f32 1.0, %v6187_v11  ;;  %v3773_v5 = vmul.f32 %v6183_v35, %v3758_v59  ;;  %v3774_v16 = vmul.f32 %v6185_v56, %v3759_v36 }
 0x7dd   : > { %6212 = vtanh.f32 %v3733_v10  ;;  %v3745_v18 = vsub.f32 1.0, %v6189_v23  ;;  %v3775_v63 = vmul.f32 %v6187_v11, %v3760_v3  ;;  %v3776_v1 = vmul.f32 %v6189_v23, %v3761_v33 }
 0x7de   : > { %v6191_v46 = vpop.eup %6190 }
 0x7df   : > { %v6193_v22 = vpop.eup %6192  ;;  %v3747_v0 = vsub.f32 1.0, %v6191_v46  ;;  %v3778_v51 = vmul.f32 %v6191_v46, %v3340_v44 }
 0x7e0   : > { %v6195_v21 = vpop.eup %6194  ;;  %v3746_v24 = vsub.f32 1.0, %v6193_v22  ;;  %v3777_v35 = vmul.f32 %v6193_v22, %v3762_v14 }
 0x7e1   : > { %v6197_v25 = vpop.eup %6196  ;;  %v3748_v10 = vsub.f32 1.0, %v6195_v21  ;;  %v3779_v14 = vmul.f32 %v6195_v21, %v3763_v4 }
 0x7e3   : > { %v6199_v28 = vpop.eup %6198 }
 0x7e4   : > { %v6201_v49 = vpop.eup %6200  ;;  %v3755_v15 = vmul.f32 %v6199_v28, %v3747_v0  ;;  %v3749_v0 = vsub.f32 1.0, %v6197_v25 }
 0x7e5   : > { %v6203_v26 = vpop.eup %6202  ;;  %v3750_v60 = vmul.f32 %v6201_v49, %v3742_v53  ;;  %v3780_v49 = vmul.f32 %v6197_v25, %v3764_v8 }
 0x7e6   : > { %v6205_v7 = vpop.eup %6204  ;;  %v3751_v29 = vmul.f32 %v6203_v26, %v3743_v62  ;;  %v7952_v31 = vadd.f32 %v3778_v51, %v3755_v15 }
 0x7e7   : > { %v6207_v40 = vpop.eup %6206  ;;  %v3752_v6 = vmul.f32 %v6205_v7, %v3744_v13  ;;  %v7954_v50 = vadd.f32 %v3773_v5, %v3750_v60 }
 0x7e8   : > { %v6209_v44 = vpop.eup %6208  ;;  %v3753_v46 = vmul.f32 %v6207_v40, %v3745_v18  ;;  %v7956_v56 = vadd.f32 %v3774_v16, %v3751_v29  ;;  %3795 = vst.msk [vmem:[%s6888_s17 + $0x28] sm:$0x20] %vm3789_vm15, %v7952_v31  ;;  %v6405_v40 = vld [vmem:[#allocation11 + $0x18] sm:$0xff] }
 0x7e9   : > { %v6211_v11 = vpop.eup %6210  ;;  %v3754_v59 = vmul.f32 %v6209_v44, %v3746_v24  ;;  %v7961_v36 = vadd.f32 %v3775_v63, %v3752_v6  ;;  %3790 = vst.msk [vmem:[%s6888_s17] sm:$0x20] %vm3789_vm15, %v7954_v50  ;;  %v3806_v23 = vrot.slane %v7954_v50, 5  ;;  %v8011_v63 = vld [vmem:[#allocation11 + $0x58] sm:$0xff]  ;;  %v8017_v24 = vld [vmem:[#allocation11 + $0x50] sm:$0xff]  ;;  %v6409_v44 = vld [vmem:[#allocation11 + $0x8] sm:$0xff] }
 0x7ea   : > { %v6213_v3 = vpop.eup %6212  ;;  %v3756_v22 = vmul.f32 %v6211_v11, %v3748_v10  ;;  %v7967_v28 = vadd.f32 %v3776_v1, %v3753_v46  ;;  %3791 = vst.msk [vmem:[%s6888_s17 + $0x8] sm:$0x20] %vm3789_vm15, %v7956_v56  ;;  %v3807_v53 = vrot.slane %v7956_v56, 4  ;;  %v6407_v6 = vld [vmem:[#allocation11 + $0x10] sm:$0xff]  ;;  %v8022_v1 = vld [vmem:[#allocation11 + $0x48] sm:$0xff]  ;;  %v8027_v10 = vld [vmem:[#allocation11 + $0x40] sm:$0xff] }
 0x7eb   : > { %v3757_v33 = vmul.f32 %v6213_v3, %v3749_v0  ;;  %v7973_v62 = vadd.f32 %v3777_v35, %v3754_v59  ;;  %3792 = vst.msk [vmem:[%s6888_s17 + $0x10] sm:$0x20] %vm3789_vm15, %v7961_v36  ;;  %v3809_v15 = vrot.slane %v7961_v36, 3  ;;  %v6411_v46 = vld [vmem:[#allocation11 + $0x38] sm:$0xff]  ;;  %v6412_v35 = vld [vmem:[#allocation11] sm:$0xff]  ;;  %v6413_v11 = vld [vmem:[#allocation11 + $0x30] sm:$0xff] }
 0x7ec   : > { %v7979_v51 = vadd.f32 %v3779_v14, %v3756_v22  ;;  %3793 = vst.msk [vmem:[%s6888_s17 + $0x18] sm:$0x20] %vm3789_vm15, %v7967_v28  ;;  %v3808_v21 = vsel %vm1430_vm4, %v3807_v53, %v3806_v23  ;;  %v3811_v4 = vrot.slane %v7967_v28, 2  ;;  %v6414_v0 = vld [vmem:[#allocation11 + $0x28] sm:$0xff]  ;;  %v6415_v59 = vld [vmem:[#allocation11 + $0x20] sm:$0xff] }
 0x7ed   : > { %v7986_v26 = vadd.f32 %v3780_v49, %v3757_v33  ;;  %3794 = vst.msk [vmem:[%s6888_s17 + $0x20] sm:$0x20] %vm3789_vm15, %v7973_v62  ;;  %v3810_v25 = vsel %vm1433_vm5, %v3809_v15, %v3808_v21  ;;  %v3813_v8 = vrot.slane %v7973_v62, 1  ;;  %v8044_v22 = vld [vmem:[%s8296_s7] ss:$0 sm:$0xff] }
 0x7ee   : > { %3796 = vst.msk [vmem:[%s6888_s17 + $0x30] sm:$0x20] %vm3789_vm15, %v7979_v51  ;;  %v3812_v13 = vsel %vm1436_vm6, %v3811_v4, %v3810_v25  ;;  %v8352_v5 = vrot.slane %v7979_v51, 7  ;;  %v8050_v53 = vld [vmem:[%s8296_s7 + $0x1] ss:$0 sm:$0xff] }
 0x7ef   : > { %3797 = vst.msk [vmem:[%s6888_s17 + $0x38] sm:$0x20] %vm3789_vm15, %v7986_v26  ;;  %v3814_v60 = vsel %vm1439_vm7, %v3813_v8, %v3812_v13  ;;  %v3818_v7 = vrot.slane %v7986_v26, 6 }
 0x7f0   : > { %v3815_v16 = vsel %vm1442_vm8, %v7952_v31, %v3814_v60 }
 0x7f1   : > { %v3817_v18 = vsel %vm1445_vm9, %v8352_v5, %v3815_v16 }
 0x7f2   : > { %v3819_v29 = vsel %vm1448_vm10, %v3818_v7, %v3817_v18 }
 0x7f3   : > { %5559 = vmatmul.mubr.msk.f32.vlgmr.msra.gmra.mxu0 %vm418_vm1, %v3819_v29  ;;  %5570 = vmatmul.mubr.msk.f32.vlgmr.msra.gmra.mxu1 %vm418_vm1, %v3819_v29 }
 0x7f4   : > { %5573 = vmatpush3.msra.mxu0 %v8011_v63  ;;  %5580 = vmatprep.mubr.msk.f32.mxu0 %vm6662_vm2, %v8391_v34 }
 0x7f5   : > { %5574 = vmatprep.subr.mxu0 %v8391_v34  ;;  %5584 = vmatpush3.msra.mxu1 %v6405_v40 }
 0x7f6   : > { %5575 = vmatpush3.msra.mxu0 %v8017_v24  ;;  %5585 = vmatprep.subr.mxu1 %v8391_v34 }
 0x7f7   : > { %5576 = vmatprep.subr.mxu0 %v8391_v34  ;;  %5586 = vmatpush3.msra.mxu1 %v6407_v6 }
 0x7f8   : > { %5577 = vmatpush3.msra.mxu0 %v8022_v1  ;;  %5587 = vmatprep.subr.mxu1 %v8391_v34 }
 0x7f9   : > { %5578 = vmatprep.subr.mxu0 %v8391_v34  ;;  %5588 = vmatpush3.msra.mxu1 %v6409_v44 }
 0x7fa   : > { %5579 = vmatpush3.msra.mxu0 %v8027_v10  ;;  %5589 = vmatprep.subr.mxu1 %v8391_v34 }
 0x7fb   : > { %5581 = vmatmul.mubr.msk.f32.vlgmr.msra.gmra.mxu0 %vm418_vm1, %v3819_v29  ;;  %5594 = vmatprep.subr.mxu0 %v8391_v34 }
 0x7fc   : > { %5595 = vmatpush3.msra.mxu0 %v6411_v46  ;;  %5590 = vmatpush3.msra.mxu1 %v6412_v35 }
 0x7fd   : > { %5596 = vmatprep.subr.mxu0 %v8391_v34  ;;  %5591 = vmatprep.mubr.msk.f32.mxu1 %vm6662_vm2, %v8391_v34 }
 0x7fe   : > { %5597 = vmatpush3.msra.mxu0 %v6413_v11  ;;  %5602 = vmatprep.mubr.msk.f32.mxu0 %vm6662_vm2, %v8391_v34 }
 0x7ff   : > { %5598 = vmatprep.subr.mxu0 %v8391_v34  ;;  %5605 = vmatprep.subr.mxu1 %v8391_v34 }
 0x800   : > { %5599 = vmatpush3.msra.mxu0 %v6414_v0 }
 0x801   : > { %5600 = vmatprep.subr.mxu0 %v8391_v34 }
 0x802   : > { %5601 = vmatpush3.msra.mxu0 %v6415_v59 }
 0x8b3   : > { %v3888_v23 = vpop.f32.mrf.mxu0  ;;  %v3958_v3 = vpop.f32.mrf.mxu1 }
 0x8b4   : > { %v3889_v14 = vadd.f32 %v8044_v22, %v3888_v23  ;;  %v3959_v33 = vadd.f32 %v8050_v53, %v3958_v3 }
 0x8b5   : > { %v5560_v49 = vpop.f32.mrf.mxu0  ;;  %v5571_v15 = vpop.f32.mrf.mxu1 }
 0x8b6   : > { %v4033_v21 = vrot.slane %v3889_v14, 2  ;;  %v4034_v4 = vrot.slane %v3889_v14, 3  ;;  %v4035_v25 = vrot.slane %v3889_v14, 4  ;;  %v4036_v8 = vrot.slane %v3889_v14, 5 }
 0x8b7   : > { %v4037_v13 = vrot.slane %v3889_v14, 6  ;;  %v4038_v60 = vrot.slane %v3889_v14, 7  ;;  %v4039_v16 = vrot.slane %v3889_v14, 1  ;;  %v4054_v7 = vadd.f32 %v3889_v14, %v8428_v43 }
 0x8b8   : > { %v4048_v18 = vadd.f32 %v4033_v21, %v7096_v41  ;;  %v4049_v29 = vadd.f32 %v4034_v4, %v8426_v20  ;;  %v4050_v40 = vadd.f32 %v4035_v25, %v8410_v37  ;;  %v4051_v6 = vadd.f32 %v4036_v8, %v7098_v42 }
 0x8b9   : > { %v4052_v44 = vadd.f32 %v4037_v13, %v8427_v9  ;;  %v4053_v46 = vadd.f32 %v4038_v60, %v7103_v45  ;;  %v4055_v35 = vadd.f32 %v4039_v16, %v7107_v47  ;;  %v5100_v11 = vmul.f32 -1.442695, %v4054_v7 }
 0x8ba   : > { %v5094_v0 = vmul.f32 -1.442695, %v4048_v18  ;;  %v5095_v59 = vmul.f32 -1.442695, %v4049_v29  ;;  %v5096_v23 = vmul.f32 -1.442695, %v4050_v40 }
 0x8bb   : > { %v5097_v3 = vmul.f32 -1.442695, %v4051_v6  ;;  %v5098_v14 = vmul.f32 -1.442695, %v4052_v44  ;;  %v5099_v49 = vmul.f32 -1.442695, %v4053_v46  ;;  %6214 = vpow2.f32 %v5100_v11  ;;  %v8061_v15 = vpop.f32.mrf.mxu0 }
 0x8bc   : > { %6216 = vpow2.f32 %v5094_v0  ;;  %v5101_v21 = vmul.f32 -1.442695, %v4055_v35  ;;  %v4105_v4 = vrot.slane %v3959_v33, 2  ;;  %v4106_v25 = vrot.slane %v3959_v33, 3 }
 0x8bd   : > { %6218 = vpow2.f32 %v5095_v59  ;;  %v4107_v8 = vrot.slane %v3959_v33, 4  ;;  %v4108_v13 = vrot.slane %v3959_v33, 5  ;;  %v4109_v60 = vrot.slane %v3959_v33, 6  ;;  %v5582_v5 = vpop.f32.mrf.mxu0 }
 0x8be   : > { %6220 = vpow2.f32 %v5096_v23  ;;  %v4110_v16 = vrot.slane %v3959_v33, 7  ;;  %v4111_v7 = vrot.slane %v3959_v33, 1  ;;  %v4120_v18 = vadd.f32 %v4105_v4, %v7141_v38 }
 0x8bf   : > { %6222 = vpow2.f32 %v5097_v3  ;;  %v4121_v29 = vadd.f32 %v4106_v25, %v7138_v32  ;;  %v4122_v40 = vadd.f32 %v4107_v8, %v7150_v55  ;;  %v4123_v6 = vadd.f32 %v4108_v13, %v7147_v54 }
 0x8c0   : > { %6224 = vpow2.f32 %v5098_v14  ;;  %v4124_v44 = vadd.f32 %v4109_v60, %v7156_v57  ;;  %v4125_v46 = vadd.f32 %v4110_v16, %v7160_v19  ;;  %v5102_v35 = vmul.f32 -1.442695, %v4120_v18 }
 0x8c1   : > { %6226 = vpow2.f32 %v5099_v49  ;;  %v4126_v5 = vadd.f32 %v3959_v33, %v7172_v39  ;;  %v5103_v11 = vmul.f32 -1.442695, %v4121_v29  ;;  %v5104_v0 = vmul.f32 -1.442695, %v4122_v40 }
 0x8c2   : > { %6228 = vpow2.f32 %v5101_v21  ;;  %v5105_v59 = vmul.f32 -1.442695, %v4123_v6  ;;  %v5106_v23 = vmul.f32 -1.442695, %v4124_v44  ;;  %v4127_v3 = vadd.f32 %v4111_v7, %v7176_v61 }
 0x8c3   : > { %6230 = vpow2.f32 %v5102_v35  ;;  %v5107_v4 = vmul.f32 -1.442695, %v4125_v46  ;;  %v5108_v14 = vmul.f32 -1.442695, %v4126_v5 }
 0x8c4   : > { %6232 = vpow2.f32 %v5103_v11  ;;  %v5109_v25 = vmul.f32 -1.442695, %v4127_v3 }
 0x8c5   : > { %6234 = vpow2.f32 %v5104_v0 }
 0x8c6   : > { %6236 = vpow2.f32 %v5105_v59 }
 0x8c7   : > { %6238 = vpow2.f32 %v5106_v23 }
 0x8c8   : > { %v6215_v8 = vpop.eup %6214  ;;  %6240 = vpow2.f32 %v5107_v4 }
 0x8c9   : > { %v6217_v49 = vpop.eup %6216  ;;  %v4086_v13 = vadd.f32 1.0, %v6215_v8  ;;  %6242 = vpow2.f32 %v5108_v14 }
 0x8ca   : > { %v6219_v33 = vpop.eup %6218  ;;  %v4080_v60 = vadd.f32 1.0, %v6217_v49  ;;  %6244 = vpow2.f32 %v5109_v25  ;;  %v8074_v49 = vld [vmem:[%s8296_s7 + $0x2] ss:$0 sm:$0xff] }
 0x8cb   : > { %v6221_v21 = vpop.eup %6220  ;;  %v4081_v16 = vadd.f32 1.0, %v6219_v33  ;;  %6246 = vrcp.f32 %v4086_v13  ;;  %v4029_v13 = vadd.f32 %v8074_v49, %v8061_v15 }
 0x8cc   : > { %v6223_v18 = vpop.eup %6222  ;;  %v4082_v7 = vadd.f32 1.0, %v6221_v21  ;;  %6248 = vrcp.f32 %v4080_v60 }
 0x8cd   : > { %v6225_v29 = vpop.eup %6224  ;;  %v4083_v40 = vadd.f32 1.0, %v6223_v18  ;;  %6250 = vrcp.f32 %v4081_v16 }
 0x8ce   : > { %v6227_v6 = vpop.eup %6226  ;;  %v4084_v44 = vadd.f32 1.0, %v6225_v29  ;;  %6252 = vrcp.f32 %v4082_v7 }
 0x8cf   : > { %v6229_v46 = vpop.eup %6228  ;;  %v4085_v35 = vadd.f32 1.0, %v6227_v6  ;;  %6254 = vrcp.f32 %v4083_v40  ;;  %v4177_v40 = vrot.slane %v4029_v13, 2 }
 0x8d0   : > { %v6231_v5 = vpop.eup %6230  ;;  %v4087_v11 = vadd.f32 1.0, %v6229_v46  ;;  %6256 = vrcp.f32 %v4084_v44  ;;  %v4178_v46 = vrot.slane %v4029_v13, 3 }
 0x8d1   : > { %v6233_v0 = vpop.eup %6232  ;;  %6258 = vrcp.f32 %v4085_v35  ;;  %v4152_v59 = vadd.f32 1.0, %v6231_v5 }
 0x8d2   : > { %v6235_v23 = vpop.eup %6234  ;;  %6260 = vrcp.f32 %v4087_v11  ;;  %v4153_v3 = vadd.f32 1.0, %v6233_v0  ;;  %v4179_v11 = vrot.slane %v4029_v13, 4 }
 0x8d3   : > { %v6237_v4 = vpop.eup %6236  ;;  %v4154_v14 = vadd.f32 1.0, %v6235_v23  ;;  %6262 = vrcp.f32 %v4152_v59  ;;  %v4180_v59 = vrot.slane %v4029_v13, 5 }
 0x8d4   : > { %v6239_v25 = vpop.eup %6238  ;;  %v4155_v8 = vadd.f32 1.0, %v6237_v4  ;;  %6264 = vrcp.f32 %v4153_v3 }
 0x8d5   : > { %v6241_v33 = vpop.eup %6240  ;;  %v4156_v21 = vadd.f32 1.0, %v6239_v25  ;;  %6266 = vrcp.f32 %v4154_v14  ;;  %v4181_v14 = vrot.slane %v4029_v13, 6 }
 0x8d6   : > { %v6243_v60 = vpop.eup %6242  ;;  %v4157_v18 = vadd.f32 1.0, %v6241_v33  ;;  %6268 = vrcp.f32 %v4155_v8 }
 0x8d7   : > { %v6245_v16 = vpop.eup %6244  ;;  %v4158_v7 = vadd.f32 1.0, %v6243_v60  ;;  %v4182_v60 = vrot.slane %v4029_v13, 7 }
 0x8d8   : > { %v6247_v29 = vpop.eup %6246  ;;  %v4159_v6 = vadd.f32 1.0, %v6245_v16 }
 0x8d9   : > { %v6249_v44 = vpop.eup %6248  ;;  %6270 = vrcp.f32 %v4158_v7  ;;  %v4198_v35 = vmul.f32 %v6247_v29, %v4029_v13 }
 0x8da   : > { %v6251_v5 = vpop.eup %6250  ;;  %v4192_v15 = vmul.f32 %v6249_v44, %v4177_v40  ;;  %6272 = vrcp.f32 %v4156_v21  ;;  %v4183_v21 = vrot.slane %v4029_v13, 1 }
 0x8db   : > { %v6253_v0 = vpop.eup %6252  ;;  %v4193_v23 = vmul.f32 %v6251_v5, %v4178_v46  ;;  %6274 = vrcp.f32 %v4157_v18  ;;  %v4206_v3 = vadd.f32 %v4198_v35, %v8432_v17 }
 0x8dc   : > { %v6255_v4 = vpop.eup %6254  ;;  %v4194_v25 = vmul.f32 %v6253_v0, %v4179_v11  ;;  %v4200_v8 = vadd.f32 %v4192_v15, %v8393_v52  ;;  %6276 = vrcp.f32 %v4159_v6 }
 0x8dd   : > { %v6257_v33 = vpop.eup %6256  ;;  %v4195_v16 = vmul.f32 %v6255_v4, %v4180_v59  ;;  %v4201_v7 = vadd.f32 %v4193_v23, %v7190_v2  ;;  %6278 = vtanh.f32 %v4206_v3 }
 0x8de   : > { %v6259_v29 = vpop.eup %6258  ;;  %v4196_v40 = vmul.f32 %v6257_v33, %v4181_v14  ;;  %v4202_v44 = vadd.f32 %v4194_v25, %v8429_v58  ;;  %6280 = vtanh.f32 %v4200_v8  ;;  %v4237_v25 = vrot.slane %v7952_v31, 7 }
 0x8df   : > { %v6261_v18 = vpop.eup %6260  ;;  %v4197_v46 = vmul.f32 %v6259_v29, %v4182_v60  ;;  %v4203_v35 = vadd.f32 %v4195_v16, %v8430_v27  ;;  %6282 = vtanh.f32 %v4201_v7  ;;  %v4232_v60 = vrot.slane %v7954_v50, 7 }
 0x8e0   : > { %v4204_v5 = vadd.f32 %v4196_v40, %v8431_v30  ;;  %6284 = vtanh.f32 %v4202_v44  ;;  %v4199_v6 = vmul.f32 %v6261_v18, %v4183_v21  ;;  %v6263_v15 = vpop.eup %6262  ;;  %v4233_v16 = vrot.slane %v7956_v56, 7 }
 0x8e1   : > { %6286 = vtanh.f32 %v4203_v35  ;;  %v4205_v11 = vadd.f32 %v4197_v46, %v8414_v48  ;;  %v6265_v0 = vpop.eup %6264  ;;  %v4234_v7 = vrot.slane %v7961_v36, 7  ;;  %v4216_v21 = vsub.f32 1.0, %v6263_v15 }
 0x8e2   : > { %6288 = vtanh.f32 %v4204_v5  ;;  %v4207_v13 = vadd.f32 %v4199_v6, %v8433_v12  ;;  %v6267_v59 = vpop.eup %6266  ;;  %v4235_v40 = vrot.slane %v7967_v28, 7  ;;  %v4236_v44 = vrot.slane %v7973_v62, 7 }
 0x8e3   : > { %6290 = vtanh.f32 %v4205_v11  ;;  %v6269_v23 = vpop.eup %6268  ;;  %v4238_v18 = vrot.slane %v7986_v26, 7  ;;  %v4217_v35 = vsub.f32 1.0, %v6265_v0  ;;  %v8434_v31 = vrot.slane %v7979_v51, 7 }
 0x8e4   : > { %6292 = vtanh.f32 %v4207_v13  ;;  %v4218_v11 = vsub.f32 1.0, %v6267_v59  ;;  %v4247_v13 = vmul.f32 %v6263_v15, %v4232_v60  ;;  %v4248_v36 = vmul.f32 %v6265_v0, %v4233_v16 }
 0x8e5   : > { %v4219_v48 = vsub.f32 1.0, %v6269_v23  ;;  %v4249_v30 = vmul.f32 %v6267_v59, %v4234_v7 }
 0x8e6   : > { %v6271_v3 = vpop.eup %6270 }
 0x8e7   : > { %v6273_v4 = vpop.eup %6272  ;;  %v4222_v33 = vsub.f32 1.0, %v6271_v3  ;;  %v4253_v6 = vmul.f32 %v6271_v3, %v8434_v31 }
 0x8e8   : > { %v6275_v14 = vpop.eup %6274  ;;  %v4220_v27 = vsub.f32 1.0, %v6273_v4  ;;  %v4251_v15 = vmul.f32 %v6273_v4, %v4236_v44 }
 0x8e9   : > { %v6277_v8 = vpop.eup %6276  ;;  %v4221_v31 = vsub.f32 1.0, %v6275_v14  ;;  %v4252_v4 = vmul.f32 %v6275_v14, %v4237_v25 }
 0x8ea   : > { %v6279_v29 = vpop.eup %6278  ;;  %v4223_v60 = vsub.f32 1.0, %v6277_v8 }
 0x8eb   : > { %v6281_v46 = vpop.eup %6280  ;;  %v4230_v5 = vmul.f32 %v6279_v29, %v4222_v33  ;;  %v4250_v29 = vmul.f32 %v6269_v23, %v4235_v40 }
 0x8ec   : > { %v6283_v50 = vpop.eup %6282  ;;  %v4224_v56 = vmul.f32 %v6281_v46, %v4216_v21 }
 0x8ed   : > { %v6285_v17 = vpop.eup %6284  ;;  %v4225_v28 = vmul.f32 %v6283_v50, %v4217_v35  ;;  %v8095_v62 = vadd.f32 %v4253_v6, %v4230_v5 }
 0x8ee   : > { %v6287_v26 = vpop.eup %6286  ;;  %v4226_v33 = vmul.f32 %v6285_v17, %v4218_v11  ;;  %v8097_v51 = vadd.f32 %v4247_v13, %v4224_v56 }
 0x8ef   : > { %v6289_v3 = vpop.eup %6288  ;;  %v4227_v21 = vmul.f32 %v6287_v26, %v4219_v48  ;;  %v8099_v0 = vadd.f32 %v4248_v36, %v4225_v28  ;;  %4270 = vst.msk [vmem:[%s6888_s17 + $0x30] sm:$0x40] %vm4263_vm0, %v8095_v62 }
 0x8f0   : > { %v6291_v59 = vpop.eup %6290  ;;  %v4228_v16 = vmul.f32 %v6289_v3, %v4220_v27  ;;  %v8104_v7 = vadd.f32 %v4249_v30, %v4226_v33  ;;  %4264 = vst.msk [vmem:[%s6888_s17] sm:$0x40] %vm4263_vm0, %v8097_v51  ;;  %v4280_v17 = vrot.slane %v8097_v51, 6  ;;  %v4254_v30 = vmul.f32 %v6277_v8, %v4238_v18 }
 0x8f1   : > { %v6293_v23 = vpop.eup %6292  ;;  %v4229_v48 = vmul.f32 %v6291_v59, %v4221_v31  ;;  %v8110_v40 = vadd.f32 %v4250_v29, %v4227_v21  ;;  %4265 = vst.msk [vmem:[%s6888_s17 + $0x8] sm:$0x40] %vm4263_vm0, %v8099_v0  ;;  %v4281_v27 = vrot.slane %v8099_v0, 5 }
 0x8f2   : > { %v4231_v44 = vmul.f32 %v6293_v23, %v4223_v60  ;;  %v8116_v46 = vadd.f32 %v4251_v15, %v4228_v16  ;;  %4266 = vst.msk [vmem:[%s6888_s17 + $0x10] sm:$0x40] %vm4263_vm0, %v8104_v7  ;;  %v4283_v35 = vrot.slane %v8104_v7, 4 }
 0x8f3   : > { %v8122_v5 = vadd.f32 %v4252_v4, %v4229_v48  ;;  %4267 = vst.msk [vmem:[%s6888_s17 + $0x18] sm:$0x40] %vm4263_vm0, %v8110_v40  ;;  %v4282_v14 = vsel %vm1430_vm4, %v4281_v27, %v4280_v17  ;;  %v4285_v25 = vrot.slane %v8110_v40, 3 }
 0x8f4   : > { %v8129_v6 = vadd.f32 %v4254_v30, %v4231_v44  ;;  %4268 = vst.msk [vmem:[%s6888_s17 + $0x20] sm:$0x40] %vm4263_vm0, %v8116_v46  ;;  %v4284_v8 = vsel %vm1433_vm5, %v4283_v35, %v4282_v14  ;;  %v4287_v18 = vrot.slane %v8116_v46, 2 }
 0x8f5   : > { %4269 = vst.msk [vmem:[%s6888_s17 + $0x28] sm:$0x40] %vm4263_vm0, %v8122_v5  ;;  %v4286_v50 = vsel %vm1436_vm6, %v4285_v25, %v4284_v8  ;;  %v4289_v11 = vrot.slane %v8122_v5, 1 }
 0x8f6   : > { %4271 = vst.msk [vmem:[%s6888_s17 + $0x38] sm:$0x40] %vm4263_vm0, %v8129_v6  ;;  %v4288_v56 = vsel %vm1439_vm7, %v4287_v18, %v4286_v50  ;;  %v4292_v36 = vrot.slane %v8129_v6, 7 }
 0x8f7   : > { %v4290_v13 = vsel %vm1442_vm8, %v4289_v11, %v4288_v56 }
 0x8f8   : > { %v4291_v28 = vsel %vm1445_vm9, %v8095_v62, %v4290_v13 }
 0x8f9   : > { %v4293_v26 = vsel %vm1448_vm10, %v4292_v36, %v4291_v28 }
 0x8fa   : > { %5592 = vmatmul.mubr.msk.f32.vlgmr.msra.gmra.mxu1 %vm418_vm1, %v4293_v26  ;;  %5603 = vmatmul.mubr.msk.f32.vlgmr.msra.gmra.mxu0 %vm418_vm1, %v4293_v26 }
 0x8fb   : > { %5606 = vmatpush3.msra.mxu1 %v8011_v63  ;;  %5613 = vmatprep.mubr.msk.f32.mxu1 %vm6662_vm2, %v8391_v34  ;;  %vm4770_vm2 = vcmask 260096  }
 0x8fc   : > { %5607 = vmatprep.subr.mxu1 %v8391_v34 }
 0x8fd   : > { %5608 = vmatpush3.msra.mxu1 %v8017_v24 }
 0x8fe   : > { %5609 = vmatprep.subr.mxu1 %v8391_v34 }
 0x8ff   : > { %5610 = vmatpush3.msra.mxu1 %v8022_v1 }
 0x900   : > { %5611 = vmatprep.subr.mxu1 %v8391_v34 }
 0x901   : > { %5612 = vmatpush3.msra.mxu1 %v8027_v10 }
 0x902   : > { %5614 = vmatmul.mubr.msk.f32.vlgmr.msra.gmra.mxu1 %vm418_vm1, %v4293_v26  ;;  %vm4737_vm1 = vcmask 261127  }
 0x9ba   : > { %v4362_v33 = vpop.f32.mrf.mxu1  ;;  %v4432_v29 = vpop.f32.mrf.mxu0 }
 0x9bb   : > { %v4363_v63 = vadd.f32 %v8044_v22, %v4362_v33  ;;  %v4433_v3 = vadd.f32 %v8050_v53, %v4432_v29 }
 0x9bc   : > { %v5593_v31 = vpop.f32.mrf.mxu1  ;;  %v5604_v21 = vpop.f32.mrf.mxu0 }
 0x9bd   : > { %v4507_v15 = vrot.slane %v4363_v63, 1  ;;  %v4508_v24 = vrot.slane %v4363_v63, 2  ;;  %v4509_v59 = vrot.slane %v4363_v63, 3  ;;  %v4510_v60 = vrot.slane %v4363_v63, 4 }
 0x9be   : > { %v4511_v16 = vrot.slane %v4363_v63, 5  ;;  %v4512_v1 = vrot.slane %v4363_v63, 6  ;;  %v4513_v17 = vrot.slane %v4363_v63, 7  ;;  %v4529_v34 = vadd.f32 %v4363_v63, %v7107_v47 }
 0x9bf   : > { %v4522_v10 = vadd.f32 %v4507_v15, %v7096_v41  ;;  %v4523_v23 = vadd.f32 %v4508_v24, %v8426_v20  ;;  %v4524_v48 = vadd.f32 %v4509_v59, %v8410_v37  ;;  %v4525_v22 = vadd.f32 %v4510_v60, %v7098_v42 }
 0x9c0   : > { %v4526_v53 = vadd.f32 %v4511_v16, %v8427_v9  ;;  %v4527_v4 = vadd.f32 %v4512_v1, %v7103_v45  ;;  %v4528_v27 = vadd.f32 %v4513_v17, %v8428_v43  ;;  %v5120_v44 = vmul.f32 -1.442695, %v4529_v34 }
 0x9c1   : > { %v5113_v30 = vmul.f32 -1.442695, %v4522_v10  ;;  %v5114_v35 = vmul.f32 -1.442695, %v4523_v23  ;;  %v5115_v14 = vmul.f32 -1.442695, %v4524_v48 }
 0x9c2   : > { %v5116_v25 = vmul.f32 -1.442695, %v4525_v22  ;;  %v5117_v47 = vmul.f32 -1.442695, %v4526_v53  ;;  %v5118_v8 = vmul.f32 -1.442695, %v4527_v4  ;;  %6294 = vpow2.f32 %v5120_v44  ;;  %v8174_v41 = vpop.f32.mrf.mxu1 }
 0x9c3   : > { %6296 = vpow2.f32 %v5113_v30  ;;  %v5119_v37 = vmul.f32 -1.442695, %v4528_v27  ;;  %v4579_v20 = vrot.slane %v4433_v3, 1  ;;  %v4580_v42 = vrot.slane %v4433_v3, 2 }
 0x9c4   : > { %6298 = vpow2.f32 %v5114_v35  ;;  %v4581_v9 = vrot.slane %v4433_v3, 3  ;;  %v4582_v18 = vrot.slane %v4433_v3, 4  ;;  %v4583_v45 = vrot.slane %v4433_v3, 5  ;;  %v5615_v50 = vpop.f32.mrf.mxu1 }
 0x9c5   : > { %6300 = vpow2.f32 %v5115_v14  ;;  %v4584_v43 = vrot.slane %v4433_v3, 6  ;;  %v4585_v11 = vrot.slane %v4433_v3, 7  ;;  %v4594_v56 = vadd.f32 %v4579_v20, %v7141_v38 }
 0x9c6   : > { %6302 = vpow2.f32 %v5116_v25  ;;  %v4595_v13 = vadd.f32 %v4580_v42, %v7138_v32  ;;  %v4596_v28 = vadd.f32 %v4581_v9, %v7150_v55  ;;  %v4597_v26 = vadd.f32 %v4582_v18, %v7147_v54 }
 0x9c7   : > { %6304 = vpow2.f32 %v5117_v47  ;;  %v4598_v33 = vadd.f32 %v4583_v45, %v7156_v57  ;;  %v4599_v29 = vadd.f32 %v4584_v43, %v7160_v19  ;;  %v4600_v63 = vadd.f32 %v4585_v11, %v7172_v39 }
 0x9c8   : > { %6306 = vpow2.f32 %v5118_v8  ;;  %v5121_v31 = vmul.f32 -1.442695, %v4594_v56  ;;  %v5122_v21 = vmul.f32 -1.442695, %v4595_v13  ;;  %v5123_v15 = vmul.f32 -1.442695, %v4596_v28 }
 0x9c9   : > { %6308 = vpow2.f32 %v5119_v37  ;;  %v4601_v38 = vadd.f32 %v4433_v3, %v7176_v61  ;;  %v5124_v24 = vmul.f32 -1.442695, %v4597_v26  ;;  %v5125_v32 = vmul.f32 -1.442695, %v4598_v33 }
 0x9ca   : > { %6310 = vpow2.f32 %v5121_v31  ;;  %v5126_v55 = vmul.f32 -1.442695, %v4599_v29  ;;  %v5127_v54 = vmul.f32 -1.442695, %v4600_v63  ;;  %v4503_v20 = vadd.f32 %v8074_v49, %v8174_v41 }
 0x9cb   : > { %6312 = vpow2.f32 %v5122_v21  ;;  %v5128_v57 = vmul.f32 -1.442695, %v4601_v38 }
 0x9cc   : > { %6314 = vpow2.f32 %v5123_v15  ;;  %v4651_v13 = vrot.slane %v4503_v20, 1  ;;  %v4652_v26 = vrot.slane %v4503_v20, 2  ;;  %v4653_v49 = vrot.slane %v4503_v20, 3 }
 0x9cd   : > { %6316 = vpow2.f32 %v5124_v24  ;;  %v4654_v31 = vrot.slane %v4503_v20, 4  ;;  %v4655_v24 = vrot.slane %v4503_v20, 5 }
 0x9ce   : > { %6318 = vpow2.f32 %v5125_v32 }
 0x9cf   : > { %v6295_v19 = vpop.eup %6294  ;;  %6320 = vpow2.f32 %v5126_v55 }
 0x9d0   : > { %v6297_v39 = vpop.eup %6296  ;;  %v4561_v59 = vadd.f32 1.0, %v6295_v19  ;;  %6322 = vpow2.f32 %v5127_v54 }
 0x9d1   : > { %v6299_v60 = vpop.eup %6298  ;;  %v4554_v16 = vadd.f32 1.0, %v6297_v39  ;;  %6324 = vpow2.f32 %v5128_v57  ;;  %v4656_v57 = vrot.slane %v4503_v20, 6 }
 0x9d2   : > { %v6301_v1 = vpop.eup %6300  ;;  %v4555_v61 = vadd.f32 1.0, %v6299_v60  ;;  %6326 = vrcp.f32 %v4561_v59  ;;  %v4657_v60 = vrot.slane %v4503_v20, 7 }
 0x9d3   : > { %v6303_v3 = vpop.eup %6302  ;;  %v4556_v17 = vadd.f32 1.0, %v6301_v1  ;;  %6328 = vrcp.f32 %v4554_v16 }
 0x9d4   : > { %v6305_v34 = vpop.eup %6304  ;;  %v4557_v10 = vadd.f32 1.0, %v6303_v3  ;;  %6330 = vrcp.f32 %v4555_v61  ;;  %v8435_v3 = vld [vmem:[#allocation26_spill] sm:$0xff] }
 0x9d5   : > { %v6307_v23 = vpop.eup %6306  ;;  %v4558_v48 = vadd.f32 1.0, %v6305_v34  ;;  %6332 = vrcp.f32 %v4556_v17 }
 0x9d6   : > { %v6309_v22 = vpop.eup %6308  ;;  %v4559_v53 = vadd.f32 1.0, %v6307_v23  ;;  %6334 = vrcp.f32 %v4557_v10  ;;  %v8436_v10 = vld [vmem:[#allocation28_spill] sm:$0xff]  ;;  %v8437_v23 = vld [vmem:[#allocation29_spill] sm:$0xff] }
 0x9d7   : > { %v6311_v4 = vpop.eup %6310  ;;  %v4560_v27 = vadd.f32 1.0, %v6309_v22  ;;  %6336 = vrcp.f32 %v4558_v48  ;;  %v8438_v22 = vld [vmem:[#allocation30_spill] sm:$0xff] }
 0x9d8   : > { %v6313_v44 = vpop.eup %6312  ;;  %6338 = vrcp.f32 %v4559_v53  ;;  %v4626_v30 = vadd.f32 1.0, %v6311_v4 }
 0x9d9   : > { %v6315_v35 = vpop.eup %6314  ;;  %6340 = vrcp.f32 %v4560_v27  ;;  %v4627_v14 = vadd.f32 1.0, %v6313_v44 }
 0x9da   : > { %v6317_v25 = vpop.eup %6316  ;;  %v4628_v47 = vadd.f32 1.0, %v6315_v35  ;;  %6342 = vrcp.f32 %v4626_v30 }
 0x9db   : > { %v6319_v8 = vpop.eup %6318  ;;  %v4629_v37 = vadd.f32 1.0, %v6317_v25  ;;  %6344 = vrcp.f32 %v4627_v14  ;;  %v4706_v25 = vrot.slane %v8097_v51, 7 }
 0x9dc   : > { %v6321_v42 = vpop.eup %6320  ;;  %v4630_v9 = vadd.f32 1.0, %v6319_v8  ;;  %6346 = vrcp.f32 %v4628_v47  ;;  %v4707_v47 = vrot.slane %v8099_v0, 7  ;;  %v4712_v8 = vrot.slane %v8095_v62, 7 }
 0x9dd   : > { %v6323_v18 = vpop.eup %6322  ;;  %v4631_v50 = vadd.f32 1.0, %v6321_v42  ;;  %6348 = vrcp.f32 %v4629_v37  ;;  %v4708_v42 = vrot.slane %v8104_v7, 7 }
 0x9de   : > { %v6325_v45 = vpop.eup %6324  ;;  %v4632_v11 = vadd.f32 1.0, %v6323_v18  ;;  %6350 = vrcp.f32 %v4630_v9  ;;  %v4709_v9 = vrot.slane %v8110_v40, 7  ;;  %v4710_v18 = vrot.slane %v8116_v46, 7 }
 0x9df   : > { %v6327_v43 = vpop.eup %6326  ;;  %v4633_v56 = vadd.f32 1.0, %v6325_v45 }
 0x9e0   : > { %v6329_v28 = vpop.eup %6328  ;;  %v4673_v33 = vmul.f32 %v6327_v43, %v4503_v20  ;;  %v4711_v43 = vrot.slane %v8122_v5, 7 }
 0x9e1   : > { %v6331_v29 = vpop.eup %6330  ;;  %6352 = vrcp.f32 %v4633_v56  ;;  %v4666_v41 = vmul.f32 %v6329_v28, %v4651_v13 }
 0x9e2   : > { %v6333_v63 = vpop.eup %6332  ;;  %6354 = vrcp.f32 %v4631_v50  ;;  %v4667_v21 = vmul.f32 %v6331_v29, %v4652_v26  ;;  %v4681_v15 = vadd.f32 %v4673_v33, %v8433_v12 }
 0x9e3   : > { %v6335_v38 = vpop.eup %6334  ;;  %6356 = vrcp.f32 %v4632_v11  ;;  %v4668_v32 = vmul.f32 %v6333_v63, %v4653_v49  ;;  %v4674_v55 = vadd.f32 %v4666_v41, %v8393_v52 }
 0x9e4   : > { %v6337_v54 = vpop.eup %6336  ;;  %v4669_v19 = vmul.f32 %v6335_v38, %v4654_v31  ;;  %v4675_v39 = vadd.f32 %v4667_v21, %v7190_v2  ;;  %6358 = vtanh.f32 %v4681_v15 }
 0x9e5   : > { %v6339_v59 = vpop.eup %6338  ;;  %v4670_v16 = vmul.f32 %v6337_v54, %v4655_v24  ;;  %v4676_v1 = vadd.f32 %v4668_v32, %v8429_v58  ;;  %6360 = vtanh.f32 %v4674_v55 }
 0x9e6   : > { %v6341_v61 = vpop.eup %6340  ;;  %v4671_v12 = vmul.f32 %v6339_v59, %v4656_v57  ;;  %v4677_v17 = vadd.f32 %v4669_v19, %v8435_v3  ;;  %6362 = vtanh.f32 %v4675_v39 }
 0x9e7   : > { %v4672_v34 = vmul.f32 %v6341_v61, %v4657_v60  ;;  %v4678_v52 = vadd.f32 %v4670_v16, %v8436_v10  ;;  %6364 = vtanh.f32 %v4676_v1  ;;  %v6343_v2 = vpop.eup %6342 }
 0x9e8   : > { %v4679_v48 = vadd.f32 %v4671_v12, %v8437_v23  ;;  %6366 = vtanh.f32 %v4677_v17  ;;  %v6345_v4 = vpop.eup %6344  ;;  %v4690_v45 = vsub.f32 1.0, %v6343_v2  ;;  %v4721_v13 = vmul.f32 %v6343_v2, %v4706_v25 }
 0x9e9   : > { %v4680_v53 = vadd.f32 %v4672_v34, %v8438_v22  ;;  %6368 = vtanh.f32 %v4678_v52  ;;  %v6347_v58 = vpop.eup %6346  ;;  %v4691_v51 = vsub.f32 1.0, %v6345_v4  ;;  %v4722_v26 = vmul.f32 %v6345_v4, %v4707_v47 }
 0x9ea   : > { %6370 = vtanh.f32 %v4679_v48  ;;  %v6349_v27 = vpop.eup %6348  ;;  %v4692_v62 = vsub.f32 1.0, %v6347_v58  ;;  %v4723_v49 = vmul.f32 %v6347_v58, %v4708_v42 }
 0x9eb   : > { %6372 = vtanh.f32 %v4680_v53  ;;  %v6351_v44 = vpop.eup %6350  ;;  %v4693_v40 = vsub.f32 1.0, %v6349_v27  ;;  %v4724_v63 = vmul.f32 %v6349_v27, %v4709_v9 }
 0x9ec   : > { %v4694_v5 = vsub.f32 1.0, %v6351_v44  ;;  %v4725_v24 = vmul.f32 %v6351_v44, %v4710_v18 }
 0x9ee   : > { %v6353_v30 = vpop.eup %6352 }
 0x9ef   : > { %v6355_v35 = vpop.eup %6354  ;;  %v4697_v37 = vsub.f32 1.0, %v6353_v30  ;;  %v4728_v11 = vmul.f32 %v6353_v30, %v4292_v36 }
 0x9f0   : > { %v6357_v14 = vpop.eup %6356  ;;  %v4695_v31 = vsub.f32 1.0, %v6355_v35  ;;  %v4726_v19 = vmul.f32 %v6355_v35, %v4711_v43 }
 0x9f1   : > { %v6359_v20 = vpop.eup %6358  ;;  %v4696_v32 = vsub.f32 1.0, %v6357_v14  ;;  %v4727_v16 = vmul.f32 %v6357_v14, %v4712_v8 }
 0x9f2   : > { %v6361_v50 = vpop.eup %6360  ;;  %v4705_v56 = vmul.f32 %v6359_v20, %v4697_v37 }
 0x9f3   : > { %v6363_v0 = vpop.eup %6362  ;;  %v4698_v28 = vmul.f32 %v6361_v50, %v4690_v45 }
 0x9f4   : > { %v6365_v7 = vpop.eup %6364  ;;  %v4699_v33 = vmul.f32 %v6363_v0, %v4691_v51  ;;  %v4736_v46 = vadd.f32 %v4728_v11, %v4705_v56 }
 0x9f5   : > { %v6367_v29 = vpop.eup %6366  ;;  %v4700_v41 = vmul.f32 %v6365_v7, %v4692_v62  ;;  %v4729_v6 = vadd.f32 %v4721_v13, %v4698_v28 }
 0x9f6   : > { %v6369_v36 = vpop.eup %6368  ;;  %v4701_v21 = vmul.f32 %v6367_v29, %v4693_v40  ;;  %v4730_v15 = vadd.f32 %v4722_v26, %v4699_v33  ;;  %4745 = vst.msk [vmem:[%s6888_s17 + $0x38] sm:$0x80] %vm4737_vm1, %v4736_v46  ;;  %v4765_v4 = vrot.slane %v4736_v46, 1 }
 0x9f7   : > { %v6371_v38 = vpop.eup %6370  ;;  %v4702_v55 = vmul.f32 %v6369_v36, %v4694_v5  ;;  %v4731_v54 = vadd.f32 %v4723_v49, %v4700_v41  ;;  %4738 = vst.msk [vmem:[%s6888_s17] sm:$0x80] %vm4737_vm1, %v4729_v6  ;;  %4769 = vst.msk [vmem:[#allocation2 - $0x7] sm:$0x80] %vm4737_vm1, %v4729_v6 }
 0x9f8   : > { %v6373_v57 = vpop.eup %6372  ;;  %v4703_v39 = vmul.f32 %v6371_v38, %v4695_v31  ;;  %v4732_v59 = vadd.f32 %v4724_v63, %v4701_v21  ;;  %4739 = vst.msk [vmem:[%s6888_s17 + $0x8] sm:$0x80] %vm4737_vm1, %v4730_v15  ;;  %v4754_v60 = vrot.slane %v4730_v15, 7 }
 0x9f9   : > { %v4704_v1 = vmul.f32 %v6373_v57, %v4696_v32  ;;  %v4733_v61 = vadd.f32 %v4725_v24, %v4702_v55  ;;  %4740 = vst.msk [vmem:[%s6888_s17 + $0x10] sm:$0x80] %vm4737_vm1, %v4731_v54  ;;  %v4755_v12 = vrot.slane %v4731_v54, 6 }
 0x9fa   : > { %v4734_v3 = vadd.f32 %v4726_v19, %v4703_v39  ;;  %4741 = vst.msk [vmem:[%s6888_s17 + $0x18] sm:$0x80] %vm4737_vm1, %v4732_v59  ;;  %v4757_v17 = vrot.slane %v4732_v59, 5 }
 0x9fb   : > { %v4735_v34 = vadd.f32 %v4727_v16, %v4704_v1  ;;  %4742 = vst.msk [vmem:[%s6888_s17 + $0x20] sm:$0x80] %vm4737_vm1, %v4733_v61  ;;  %v4756_v10 = vsel %vm1430_vm4, %v4755_v12, %v4754_v60  ;;  %v4759_v52 = vrot.slane %v4733_v61, 4 }
 0x9fc   : > { %4743 = vst.msk [vmem:[%s6888_s17 + $0x28] sm:$0x80] %vm4737_vm1, %v4734_v3  ;;  %v4758_v23 = vsel %vm1433_vm5, %v4757_v17, %v4756_v10  ;;  %v4761_v48 = vrot.slane %v4734_v3, 3 }
 0x9fd   : > { %4744 = vst.msk [vmem:[%s6888_s17 + $0x30] sm:$0x80] %vm4737_vm1, %v4735_v34  ;;  %v4760_v2 = vsel %vm1436_vm6, %v4759_v52, %v4758_v23  ;;  %v4763_v22 = vrot.slane %v4735_v34, 2  ;;  %4775 = sbr.rel (%p5129_p4) target bundleno = 2564 (0xa04), region = 80 }
 0x9fe   : > { %v4762_v53 = vsel %vm1439_vm7, %v4761_v48, %v4760_v2 }
 0x9ff   : > { %v4764_v58 = vsel %vm1442_vm8, %v4763_v22, %v4762_v53 }
 0xa00   : > { %v4766_v27 = vsel %vm1445_vm9, %v4765_v4, %v4764_v58 }
 0xa01   : > { %4771 = vst.msk [vmem:[#allocation2 + $0x1] sm:$0x7f] %vm4770_vm2, %v4766_v27 }
 0xa02   : > { %4776 = vst.msk [vmem:[#allocation13 - $0x7] sm:$0x80] %vm4737_vm1, %v4729_v6 }
 0xa03   : > { %4777 = vst.msk [vmem:[#allocation13 + $0x1] sm:$0x7f] %vm4770_vm2, %v4766_v27 }
 0xa04 PF: > { %s5131_s27 = sshll.u32 %s6739_s13, 7  ;;  %s4791_s4 = sshll.u32 %s6888_s17, 4  ;;  %s8235_s4 = int_to_ptr.vmem [resolvable:$true] %s4791_s4 }
 0xa05   : > { %s8232_s21 = scalar_lea.hbm %s8297_s8, %s5131_s27  ;;  %s4779_s24 = scalar_lea.sflag [#allocation5], %s6870_s3 }
 0xa06   : > { %s6551_s20 = scalar_lea.vmem %s8235_s4, 1024  ;;  %p8439_p8 = scmp.ne.s32.totalorder %s8368_s23, 0 }
 0xa07   : > { %p6552_p6 = scmp.ne.s32.totalorder %s8235_s4, %s6551_s20  ;;  %s6663_s15 = smov [#allocation12]  }
 0xa08   : > { %s6555_s29 = sshll.u32 %s6663_s15, 4  ;;  %s6556_s29 = int_to_ptr.vmem [resolvable:$false] %s6555_s29 }
 0xa09   : > { %p6553_p10 = pnand %p6552_p6, %p8439_p8  ;;  %s6557_s14 = scalar_lea.vmem %s6556_s29, 2048 }
 0xa0a   : > { %p6558_p7 = scmp.lt.s32.totalorder %s8235_s4, %s6556_s29  ;;  %p6559_p0 = scmp.lt.s32.totalorder %s6557_s14, %s6551_s20 }
 0xa0b   : > { %p6554_p5 = pneg %p6553_p10 }
 0xa0c   : > { %p6560_p11 = por %p6559_p0, %p6558_p7 }
 0xa0e   : > { %p6561_p9 = pnand %p6560_p11, %p6554_p5 }
 0xa10   : > { %6564 = shalt.err (!%p6561_p9)
}
 0xa11   : > { %s6565_s17 = scalar_lea.hbm %s8232_s21, 1024  ;;  %s6569_s26 = scalar_lea.hbm %s8297_s8, 2048 }
 0xa12   : > { %p6566_p12 = scmp.ne.s32.totalorder %s8232_s21, %s6565_s17  ;;  %p6570_p2 = scmp.lt.s32.totalorder %s8232_s21, %s8297_s8 }
 0xa13   : > { %p6571_p13 = scmp.lt.s32.totalorder %s6569_s26, %s6565_s17 }
 0xa14   : > { %p6567_p3 = pnand %p6566_p12, %p8439_p8 }
 0xa15   : > { %p6572_p4 = por %p6571_p13, %p6570_p2 }
 0xa16   : > { %p6568_p1 = pneg %p6567_p3 }
 0xa18   : > { %p6573_p6 = pnand %p6572_p4, %p6568_p1 }
 0xa1a   : > { %6576 = shalt.err (!%p6573_p6)
}
 0xa1b   : > { %s6664_s28 = smov 128   ;;  %s6665_s20 = smov 256  }
 0xa1c   : > { %s6666_s15 = smov 8   ;;  %s6667_s29 = smov [#allocation13]  }
 0xa1d   : > { %5634 = dma.vmem_to_hbm [thread:$0]  (%p8439_p8), %s8235_s4, 1024, %s8232_s21, %s4779_s24, %s6664_s28, %s6665_s20, %s6666_s15  }
 0xa1e   : > { %s4805_s14 = sshll.u32 %s6667_s29, 4  ;;  %p8440_p5 = scmp.eq.s32.totalorder %s6739_s13, 1  ;;  %s4806_s14 = int_to_ptr.vmem [resolvable:$true] %s4805_s14 }
 0xa1f   : > { %s6577_s18 = scalar_lea.vmem %s4806_s14, 128  ;;  %p6584_p11 = scmp.lt.s32.totalorder %s4806_s14, %s4806_s14 }
 0xa20   : > { %p6578_p10 = scmp.ne.s32.totalorder %s4806_s14, %s6577_s18  ;;  %p6585_p9 = scmp.lt.s32.totalorder %s6577_s18, %s6577_s18 }
 0xa22   : > { %p6579_p7 = pnand %p6578_p10, %p8440_p5  ;;  %p6586_p12 = por %p6585_p9, %p6584_p11 }
 0xa24   : > { %p6580_p0 = pneg %p6579_p7 }
 0xa26   : > { %p6587_p3 = pnand %p6586_p12, %p6580_p0 }
 0xa28   : > { %6590 = shalt.err (!%p6587_p3)
}
 0xa29   : > { %p8441_p1 = pmov %p8440_p5 }
 0xa2b   : > { %5636 = dma.vmem_to_hbm [thread:$0]  (%p8441_p1), %s4806_s14, 128, %s8298_s9, [#allocation14]  }
 0xa2c   : > { %p8442_p8 = pmov %p8441_p1 }
 0xa2d   : > { %p8443_p2 = pmov %p8441_p1 }
 0xa2e   : > { %6630 = dma.done.wait (%p8442_p8), [#allocation14], 128  }
 0xa2f   : > { %6632 = vsyncadd (%p8443_p2), [#allocation14], 4294967168 }
 0xa30 PF: > { %s4821_s23 = sand.u32 1, %s6639_s30   ;;  %p8444_p13 = scmp.ne.s32.totalorder %s8361_s16, 0 }
 0xa31   : > { %p8445_p4 = scmp.ge.s32.totalorder %s6651_s12, 2  ;;  %s4822_s3 = scalar_lea.sflag [#allocation5], %s4821_s23 }
 0xa33   : > { %p5658_p6 = pnand %p8445_p4, %p8444_p13 }
 0xa35   : > { %p5659_p10 = pneg %p5658_p6 }
 0xa37   : > { %6634 = dma.done.wait (%p5659_p10), %s4822_s3, 1024  }
 0xa38   : > { %6636 = vsyncadd (%p5659_p10), %s4822_s3, 4294966272  ;;  %p26_p5 = scmp.ge.s32.totalorder %s6813_s19, 4   ;;  %s8446_s30 = smov %s6643_s10 }
 0xa39   : > { %s8447_s10 = smov %s6647_s11  ;;  %s8448_s11 = smov %s6829_s25 }
 0xa3a   : > { %s8449_s12 = smov %s6813_s19  ;;  %28 = sbr.rel (!%p26_p5) target bundleno = 12 (0xc), region = 137 }
 0xa3f   :  { %4827 = vsyncpa [#allocation4], 1 }
 0xa40   :  { %4829 = vsyncpa [#allocation4 + $0x1], 1 }
 0xa41   :  { %4830 = vsyncpa [#allocation7], 1 }
 0xa42   :  { %4831 = vsyncpa [#allocation10], 1 }
 0xa43   :  { %4832 = vsyncpa [#allocation5], 1 }
 0xa44   :  { %4834 = vsyncpa [#allocation5 + $0x1], 1 }
 0xa45   :  { %4835 = vsyncpa [#allocation14], 1 }

</bundles_post_ra>
